<compile_context>
chip_gen: v6e
topology: v6e:2x2x1
jax: 0.10.0
libtpu: 0.0.40
codegen_flags: <defaults>
</compile_context>

<pallas_src>
import functools

import jax
import jax.numpy as jnp
import numpy as np
from jax.experimental import pallas as pl
from jax.experimental.pallas import tpu as pltpu

_BN_EPS = 1e-5


# ----------------------------- Pallas kernel ------------------------------ #
def decoder_kernel(x_ref, band1_ref, g1_ref, be1_ref,
                   band2_ref, g2_ref, be2_ref,
                   sw1_ref, sb1_ref, sw2_ref, sb2_ref,
                   out_ref, h1pad_ref, *, B, H, W):
    Cmid = g1_ref.shape[1]
    Cout = g2_ref.shape[1]
    Hp = H + 2

    def gather_shifted(src_ref):
        # src_ref: (B*(H+2), W*C) f32, H-padded per batch.
        # Returns (B*H, 3*W*C) bf16: the three dh-shifted row slabs
        # concatenated along K (lane-aligned concat, offsets are multiples of
        # 128), cast once to bf16 for the MXU.
        cols = []
        for dh in range(3):
            blocks = [src_ref[pl.ds(b * Hp + dh, H), :] for b in range(B)]
            cols.append(jnp.concatenate(blocks, axis=0))
        return jnp.concatenate(cols, axis=1).astype(jnp.bfloat16)

    def lane_group_sum(mat, C):
        # (R, W*C) -> (R, C): sum the W channel groups along lanes.
        # R is tiny (2 or B); this is cheap XLU/VPU work on 1-2 rows.
        acc = mat[:, 0:C]
        for w in range(1, W):
            acc = acc + mat[:, w * C:(w + 1) * C]
        return acc

    def bn_relu(h, g_ref, be_ref, C):
        # nn.BatchNorm2d training mode (biased batch stats), single pass:
        # sum and sum-of-squares together, var = E[x^2] - m^2 (safe in f32 for
        # these post-conv magnitudes; conv bias dropped so means are small).
        inv_n = 1.0 / (h.shape[0] * W)
        cs = jnp.concatenate([jnp.sum(h, axis=0, keepdims=True),
                              jnp.sum(h * h, axis=0, keepdims=True)],
                             axis=0)                                  # (2, W*C)
        tot = lane_group_sum(cs, C)                                   # (2, C)
        m = tot[0:1, :] * inv_n
        var = tot[1:2, :] * inv_n - m * m
        scale = g_ref[...] * jax.lax.rsqrt(var + _BN_EPS)             # (1, C)
        shift = be_ref[...] - m * scale
        scale_l = jnp.tile(scale, (1, W))                             # (1, W*C)
        shift_l = jnp.tile(shift, (1, W))
        return jnp.maximum(h * scale_l + shift_l, 0.0)

    # ---------------- conv1 (single banded MXU matmul) -> BN1 -> ReLU -------
    h1 = bn_relu(jnp.dot(gather_shifted(x_ref), band1_ref[...],
                         preferred_element_type=jnp.float32),
                 g1_ref, be1_ref, Cmid)                               # (B*H, W*Cmid)

    # Stash h1 into the H-padded scratch: zero only the 1-row top/bottom
    # borders; the interior is one contiguous lane-dense store per batch.
    zrow = jnp.zeros((1, W * Cmid), jnp.float32)
    for b in range(B):
        h1pad_ref[pl.ds(b * Hp, 1), :] = zrow
        h1pad_ref[pl.ds(b * Hp + 1, H), :] = h1[b * H:(b + 1) * H, :]
        h1pad_ref[pl.ds(b * Hp + H + 1, 1), :] = zrow

    # ---------------- conv2 (single banded MXU matmul) -> BN2 -> ReLU -------
    h2 = bn_relu(jnp.dot(gather_shifted(h1pad_ref), band2_ref[...],
                         preferred_element_type=jnp.float32),
                 g2_ref, be2_ref, Cout)                               # (B*H, W*Cout)

    # ---------------- SE block (no indicator-matrix matmuls) ----------------
    # Global average pool per batch: sliced row sums + lane-group fold.
    rowsums = jnp.concatenate(
        [jnp.sum(h2[b * H:(b + 1) * H, :], axis=0, keepdims=True)
         for b in range(B)], axis=0)                                  # (B, W*Cout)
    pooled = lane_group_sum(rowsums, Cout) * (1.0 / (H * W))          # (B, Cout)

    # Tiny FC -> ReLU -> FC -> sigmoid; kept in f32 (negligible MXU work).
    z = jnp.maximum(jnp.dot(pooled, sw1_ref[...],
                            preferred_element_type=jnp.float32) + sb1_ref[...],
                    0.0)
    gate = jnp.dot(z, sw2_ref[...],
                   preferred_element_type=jnp.float32) + sb2_ref[...]
    gate = 1.0 / (1.0 + jnp.exp(-gate))                               # (B, Cout)

    # Per-batch rescale: broadcast multiply + lane-dense full-width stores.
    for b in range(B):
        g_row = jnp.tile(gate[b:b + 1, :], (1, W))                    # (1, W*Cout)
        out_ref[pl.ds(b * H, H), :] = h2[b * H:(b + 1) * H, :] * g_row


# ------------------------------- JAX glue --------------------------------- #
def make_band(w_hwio, width):
    """Fold the 3 dw taps and the 'same' W zero-padding of a 3x3 conv into a
    banded matmul weight of shape (3*width*cin, width*cout), dh-major rows.
    Row index = dh*(width*cin) + w_in*cin + cin_idx; col = w_out*cout + cout_idx.
    Built once in the wrapper (trace-time constant)."""
    kh, kw, cin, cout = w_hwio.shape
    ind = np.zeros((kw, width, width), np.float32)
    for dw in range(kw):
        for j in range(width):
            i = j + dw - 1
            if 0 <= i < width:
                ind[dw, i, j] = 1.0
    band = jnp.einsum("kij,hkco->hicjo", jnp.asarray(ind), w_hwio)
    return band.reshape(kh * width * cin, width * cout)


def upsample2x_bilinear_align_corners(x):  # x: NHWC
    B, H, W, C = x.shape
    Ho, Wo = 2 * H, 2 * W

    def axis_coords(n_in, n_out):
        denom = max(n_out - 1, 1)
        pos = jnp.arange(n_out, dtype=jnp.float32) * (n_in - 1) / denom
        lo = jnp.clip(jnp.floor(pos).astype(jnp.int32), 0, max(n_in - 2, 0))
        frac = pos - lo.astype(jnp.float32)
        return lo, frac

    hlo, hf = axis_coords(H, Ho)
    wlo, wf = axis_coords(W, Wo)
    top = jnp.take(x, hlo, axis=1)
    bot = jnp.take(x, jnp.minimum(hlo + 1, H - 1), axis=1)
    rows = top * (1.0 - hf)[None, :, None, None] + bot * hf[None, :, None, None]
    left = jnp.take(rows, wlo, axis=2)
    right = jnp.take(rows, jnp.minimum(wlo + 1, W - 1), axis=2)
    return left * (1.0 - wf)[None, None, :, None] + right * wf[None, None, :, None]


def init_params(key, in_channels, mid_channels, out_channels, reduction=16):
    ks = jax.random.split(key, 8)
    cr = max(out_channels // reduction, 1)

    def conv_init(k, cin, cout):
        return jax.random.normal(k, (3, 3, cin, cout), jnp.float32) / np.sqrt(9 * cin)

    return dict(
        w1=conv_init(ks[0], in_channels, mid_channels),
        b1=0.1 * jax.random.normal(ks[1], (1, mid_channels), jnp.float32),
        g1=jnp.ones((1, mid_channels), jnp.float32),
        be1=jnp.zeros((1, mid_channels), jnp.float32),
        w2=conv_init(ks[2], mid_channels, out_channels),
        b2=0.1 * jax.random.normal(ks[3], (1, out_channels), jnp.float32),
        g2=jnp.ones((1, out_channels), jnp.float32),
        be2=jnp.zeros((1, out_channels), jnp.float32),
        sw1=jax.random.normal(ks[4], (out_channels, cr), jnp.float32) / np.sqrt(out_channels),
        sb1=0.1 * jax.random.normal(ks[5], (1, cr), jnp.float32),
        sw2=jax.random.normal(ks[6], (cr, out_channels), jnp.float32) / np.sqrt(cr),
        sb2=0.1 * jax.random.normal(ks[7], (1, out_channels), jnp.float32),
    )


def decoder_forward(params, x_nchw, y_nchw=None, upsample=True):
    x = jnp.transpose(x_nchw, (0, 2, 3, 1)).astype(jnp.float32)  # NCHW -> NHWC
    if upsample:
        x = upsample2x_bilinear_align_corners(x)
    if y_nchw is not None:
        y = jnp.transpose(y_nchw, (0, 2, 3, 1)).astype(jnp.float32)
        x = jnp.concatenate([x, y], axis=-1)

    B, H, W, Cin = x.shape
    w1, w2 = params["w1"], params["w2"]
    assert w1.shape[2] == Cin, "in_channels mismatch (did you forget y?)"
    Cmid, Cout = w1.shape[-1], w2.shape[-1]

    # H-only zero pad; 'same' padding along W is folded into the banded weights.
    xpad = jnp.pad(x, ((0, 0), (1, 1), (0, 0), (0, 0)))
    x_flat = xpad.reshape(B * (H + 2), W * Cin)

    # Banded conv weights (trace-time constants), bf16 MXU operands.
    # Conv biases are intentionally NOT passed: train-mode BN cancels them.
    band1 = make_band(w1, W).astype(jnp.bfloat16)   # (3*W*Cin,  W*Cmid)
    band2 = make_band(w2, W).astype(jnp.bfloat16)   # (3*W*Cmid, W*Cout)

    args = (x_flat, band1, params["g1"], params["be1"],
            band2, params["g2"], params["be2"],
            params["sw1"], params["sb1"], params["sw2"], params["sb2"])

    out2d = pl.pallas_call(
        functools.partial(decoder_kernel, B=B, H=H, W=W),
        out_shape=jax.ShapeDtypeStruct((B * H, W * Cout), jnp.float32),
        in_specs=[pl.BlockSpec(memory_space=pltpu.MemorySpace.VMEM)] * len(args),
        out_specs=pl.BlockSpec(memory_space=pltpu.MemorySpace.VMEM),
        scratch_shapes=[pltpu.VMEM((B * (H + 2), W * Cmid), jnp.float32)],
        compiler_params=pltpu.CompilerParams(vmem_limit_bytes=32 * 1024 * 1024),
    )(*args)

    out = out2d.reshape(B, H, W, Cout)          # wrapper-side layout plumbing
    return jnp.transpose(out, (0, 3, 1, 2))     # NHWC -> NCHW


# --------------------------- pure-JAX reference ---------------------------- #
def decoder_reference(params, x_nchw, y_nchw=None, upsample=True):
    x = jnp.transpose(x_nchw, (0, 2, 3, 1)).astype(jnp.float32)
    if upsample:
        x = upsample2x_bilinear_align_corners(x)
    if y_nchw is not None:
        x = jnp.concatenate([x, jnp.transpose(y_nchw, (0, 2, 3, 1))], axis=-1)

    def conv_bn_relu(h, w, b, g, be):
        c = jax.lax.conv_general_dilated(
            h, w, (1, 1), "SAME",
            dimension_numbers=("NHWC", "HWIO", "NHWC")) + b[0]
        m = c.mean(axis=(0, 1, 2))
        v = ((c - m) ** 2).mean(axis=(0, 1, 2))
        return jnp.maximum((c - m) * (g[0] / jnp.sqrt(v + _BN_EPS)) + be[0], 0.0)

    h1 = conv_bn_relu(x, params["w1"], params["b1"], params["g1"], params["be1"])
    h2 = conv_bn_relu(h1, params["w2"], params["b2"], params["g2"], params["be2"])
    pooled = h2.mean(axis=(1, 2))
    z = jnp.maximum(pooled @ params["sw1"] + params["sb1"][0], 0.0)
    s = jax.nn.sigmoid(z @ params["sw2"] + params["sb2"][0])
    out = h2 * s[:, None, None, :]
    return jnp.transpose(out, (0, 3, 1, 2))


# --------------------------------- main ------------------------------------ #
if __name__ == "__main__":
    key = jax.random.PRNGKey(0)
    kx, kp = jax.random.split(key)

    # Decoder(in_channels=4, mid_channels=8, out_channels=16, upsample=True)
    B, Cin, H0, W0 = 2, 4, 16, 16
    Cmid, Cout = 8, 16

    x = jax.random.normal(kx, (B, Cin, H0, W0), jnp.float32)
    params = init_params(kp, Cin, Cmid, Cout)

    out = jax.block_until_ready(decoder_forward(params, x, upsample=True))
    assert out.shape == (B, Cout, 2 * H0, 2 * W0)

    ref = jax.block_until_ready(decoder_reference(params, x, upsample=True))
    # Kernel conv matmuls use bf16 operands (f32 accumulate) and the XLA
    # reference conv runs at default TPU matmul precision (bf16 passes), so
    # allow a bf16-level numerical tolerance.
    np.testing.assert_allclose(np.asarray(out), np.asarray(ref),
                               rtol=3e-2, atol=3e-2)
    print("KERNEL_OK")
</pallas_src>

<mosaic_0001>
module attributes {stable_mosaic.version = 11 : i64} {
  func.func @decoder_kernel(%arg0: memref<68x128xf32, #tpu.memory_space<vmem>>, %arg1: memref<384x256xbf16, #tpu.memory_space<vmem>>, %arg2: memref<1x8xf32, #tpu.memory_space<vmem>>, %arg3: memref<1x8xf32, #tpu.memory_space<vmem>>, %arg4: memref<768x512xbf16, #tpu.memory_space<vmem>>, %arg5: memref<1x16xf32, #tpu.memory_space<vmem>>, %arg6: memref<1x16xf32, #tpu.memory_space<vmem>>, %arg7: memref<16x1xf32, #tpu.memory_space<vmem>>, %arg8: memref<1x1xf32, #tpu.memory_space<vmem>>, %arg9: memref<1x16xf32, #tpu.memory_space<vmem>>, %arg10: memref<1x16xf32, #tpu.memory_space<vmem>>, %arg11: memref<64x512xf32, #tpu.memory_space<vmem>>, %arg12: memref<68x256xf32, #tpu.memory_space<vmem>>) attributes {dimension_semantics = [], scalar_prefetch = 0 : i64, scratch_operands = 1 : i64, tpu.core_type = #tpu.core_type<tc>} {
    %c0 = arith.constant 0 : index
    %c0_0 = arith.constant 0 : index
    %0 = vector.load %arg0[%c0, %c0_0] : memref<68x128xf32, #tpu.memory_space<vmem>>, vector<32x128xf32>
    %c34 = arith.constant 34 : index
    %c0_1 = arith.constant 0 : index
    %1 = vector.load %arg0[%c34, %c0_1] : memref<68x128xf32, #tpu.memory_space<vmem>>, vector<32x128xf32>
    %2 = tpu.concatenate %0, %1 in 0 : vector<32x128xf32>, vector<32x128xf32> -> vector<64x128xf32>
    %c1 = arith.constant 1 : index
    %c0_2 = arith.constant 0 : index
    %3 = vector.load %arg0[%c1, %c0_2] : memref<68x128xf32, #tpu.memory_space<vmem>>, vector<32x128xf32>
    %c35 = arith.constant 35 : index
    %c0_3 = arith.constant 0 : index
    %4 = vector.load %arg0[%c35, %c0_3] : memref<68x128xf32, #tpu.memory_space<vmem>>, vector<32x128xf32>
    %5 = tpu.concatenate %3, %4 in 0 : vector<32x128xf32>, vector<32x128xf32> -> vector<64x128xf32>
    %c2 = arith.constant 2 : index
    %c0_4 = arith.constant 0 : index
    %6 = vector.load %arg0[%c2, %c0_4] : memref<68x128xf32, #tpu.memory_space<vmem>>, vector<32x128xf32>
    %c36 = arith.constant 36 : index
    %c0_5 = arith.constant 0 : index
    %7 = vector.load %arg0[%c36, %c0_5] : memref<68x128xf32, #tpu.memory_space<vmem>>, vector<32x128xf32>
    %8 = tpu.concatenate %6, %7 in 0 : vector<32x128xf32>, vector<32x128xf32> -> vector<64x128xf32>
    %9 = tpu.concatenate %2, %5, %8 in 1 : vector<64x128xf32>, vector<64x128xf32>, vector<64x128xf32> -> vector<64x384xf32>
    %10 = arith.truncf %9 : vector<64x384xf32> to vector<64x384xbf16>
    %c0_6 = arith.constant 0 : index
    %c0_7 = arith.constant 0 : index
    %11 = vector.load %arg1[%c0_6, %c0_7] : memref<384x256xbf16, #tpu.memory_space<vmem>>, vector<384x256xbf16>
    %cst = arith.constant dense<0.000000e+00> : vector<64x256xf32>
    %12 = tpu.matmul %10, %11, %cst {dimension_numbers = #tpu.dot_dimension_numbers<[1], [0], [0], [1], [0, 0, 1, 1], [], []>} : vector<64x384xbf16>, vector<384x256xbf16>, vector<64x256xf32> -> vector<64x256xf32>
    %cst_8 = arith.constant dense<0.000000e+00> : vector<256xf32>
    %13 = vector.multi_reduction <add>, %12, %cst_8 [0] : vector<64x256xf32> to vector<256xf32>
    %14 = vector.shape_cast %13 : vector<256xf32> to vector<1x256xf32>
    %15 = arith.mulf %12, %12 : vector<64x256xf32>
    %cst_9 = arith.constant dense<0.000000e+00> : vector<256xf32>
    %16 = vector.multi_reduction <add>, %15, %cst_9 [0] : vector<64x256xf32> to vector<256xf32>
    %17 = vector.shape_cast %16 : vector<256xf32> to vector<1x256xf32>
    %18 = tpu.concatenate %14, %17 in 0 : vector<1x256xf32>, vector<1x256xf32> -> vector<2x256xf32>
    %19 = vector.extract_strided_slice %18 {offsets = [0, 0], sizes = [2, 8], strides = [1, 1]} : vector<2x256xf32> to vector<2x8xf32>
    %20 = vector.extract_strided_slice %18 {offsets = [0, 8], sizes = [2, 8], strides = [1, 1]} : vector<2x256xf32> to vector<2x8xf32>
    %21 = arith.addf %19, %20 : vector<2x8xf32>
    %22 = vector.extract_strided_slice %18 {offsets = [0, 16], sizes = [2, 8], strides = [1, 1]} : vector<2x256xf32> to vector<2x8xf32>
    %23 = arith.addf %21, %22 : vector<2x8xf32>
    %24 = vector.extract_strided_slice %18 {offsets = [0, 24], sizes = [2, 8], strides = [1, 1]} : vector<2x256xf32> to vector<2x8xf32>
    %25 = arith.addf %23, %24 : vector<2x8xf32>
    %26 = vector.extract_strided_slice %18 {offsets = [0, 32], sizes = [2, 8], strides = [1, 1]} : vector<2x256xf32> to vector<2x8xf32>
    %27 = arith.addf %25, %26 : vector<2x8xf32>
    %28 = vector.extract_strided_slice %18 {offsets = [0, 40], sizes = [2, 8], strides = [1, 1]} : vector<2x256xf32> to vector<2x8xf32>
    %29 = arith.addf %27, %28 : vector<2x8xf32>
    %30 = vector.extract_strided_slice %18 {offsets = [0, 48], sizes = [2, 8], strides = [1, 1]} : vector<2x256xf32> to vector<2x8xf32>
    %31 = arith.addf %29, %30 : vector<2x8xf32>
    %32 = vector.extract_strided_slice %18 {offsets = [0, 56], sizes = [2, 8], strides = [1, 1]} : vector<2x256xf32> to vector<2x8xf32>
    %33 = arith.addf %31, %32 : vector<2x8xf32>
    %34 = vector.extract_strided_slice %18 {offsets = [0, 64], sizes = [2, 8], strides = [1, 1]} : vector<2x256xf32> to vector<2x8xf32>
    %35 = arith.addf %33, %34 : vector<2x8xf32>
    %36 = vector.extract_strided_slice %18 {offsets = [0, 72], sizes = [2, 8], strides = [1, 1]} : vector<2x256xf32> to vector<2x8xf32>
    %37 = arith.addf %35, %36 : vector<2x8xf32>
    %38 = vector.extract_strided_slice %18 {offsets = [0, 80], sizes = [2, 8], strides = [1, 1]} : vector<2x256xf32> to vector<2x8xf32>
    %39 = arith.addf %37, %38 : vector<2x8xf32>
    %40 = vector.extract_strided_slice %18 {offsets = [0, 88], sizes = [2, 8], strides = [1, 1]} : vector<2x256xf32> to vector<2x8xf32>
    %41 = arith.addf %39, %40 : vector<2x8xf32>
    %42 = vector.extract_strided_slice %18 {offsets = [0, 96], sizes = [2, 8], strides = [1, 1]} : vector<2x256xf32> to vector<2x8xf32>
    %43 = arith.addf %41, %42 : vector<2x8xf32>
    %44 = vector.extract_strided_slice %18 {offsets = [0, 104], sizes = [2, 8], strides = [1, 1]} : vector<2x256xf32> to vector<2x8xf32>
    %45 = arith.addf %43, %44 : vector<2x8xf32>
    %46 = vector.extract_strided_slice %18 {offsets = [0, 112], sizes = [2, 8], strides = [1, 1]} : vector<2x256xf32> to vector<2x8xf32>
    %47 = arith.addf %45, %46 : vector<2x8xf32>
    %48 = vector.extract_strided_slice %18 {offsets = [0, 120], sizes = [2, 8], strides = [1, 1]} : vector<2x256xf32> to vector<2x8xf32>
    %49 = arith.addf %47, %48 : vector<2x8xf32>
    %50 = vector.extract_strided_slice %18 {offsets = [0, 128], sizes = [2, 8], strides = [1, 1]} : vector<2x256xf32> to vector<2x8xf32>
    %51 = arith.addf %49, %50 : vector<2x8xf32>
    %52 = vector.extract_strided_slice %18 {offsets = [0, 136], sizes = [2, 8], strides = [1, 1]} : vector<2x256xf32> to vector<2x8xf32>
    %53 = arith.addf %51, %52 : vector<2x8xf32>
    %54 = vector.extract_strided_slice %18 {offsets = [0, 144], sizes = [2, 8], strides = [1, 1]} : vector<2x256xf32> to vector<2x8xf32>
    %55 = arith.addf %53, %54 : vector<2x8xf32>
    %56 = vector.extract_strided_slice %18 {offsets = [0, 152], sizes = [2, 8], strides = [1, 1]} : vector<2x256xf32> to vector<2x8xf32>
    %57 = arith.addf %55, %56 : vector<2x8xf32>
    %58 = vector.extract_strided_slice %18 {offsets = [0, 160], sizes = [2, 8], strides = [1, 1]} : vector<2x256xf32> to vector<2x8xf32>
    %59 = arith.addf %57, %58 : vector<2x8xf32>
    %60 = vector.extract_strided_slice %18 {offsets = [0, 168], sizes = [2, 8], strides = [1, 1]} : vector<2x256xf32> to vector<2x8xf32>
    %61 = arith.addf %59, %60 : vector<2x8xf32>
    %62 = vector.extract_strided_slice %18 {offsets = [0, 176], sizes = [2, 8], strides = [1, 1]} : vector<2x256xf32> to vector<2x8xf32>
    %63 = arith.addf %61, %62 : vector<2x8xf32>
    %64 = vector.extract_strided_slice %18 {offsets = [0, 184], sizes = [2, 8], strides = [1, 1]} : vector<2x256xf32> to vector<2x8xf32>
    %65 = arith.addf %63, %64 : vector<2x8xf32>
    %66 = vector.extract_strided_slice %18 {offsets = [0, 192], sizes = [2, 8], strides = [1, 1]} : vector<2x256xf32> to vector<2x8xf32>
    %67 = arith.addf %65, %66 : vector<2x8xf32>
    %68 = vector.extract_strided_slice %18 {offsets = [0, 200], sizes = [2, 8], strides = [1, 1]} : vector<2x256xf32> to vector<2x8xf32>
    %69 = arith.addf %67, %68 : vector<2x8xf32>
    %70 = vector.extract_strided_slice %18 {offsets = [0, 208], sizes = [2, 8], strides = [1, 1]} : vector<2x256xf32> to vector<2x8xf32>
    %71 = arith.addf %69, %70 : vector<2x8xf32>
    %72 = vector.extract_strided_slice %18 {offsets = [0, 216], sizes = [2, 8], strides = [1, 1]} : vector<2x256xf32> to vector<2x8xf32>
    %73 = arith.addf %71, %72 : vector<2x8xf32>
    %74 = vector.extract_strided_slice %18 {offsets = [0, 224], sizes = [2, 8], strides = [1, 1]} : vector<2x256xf32> to vector<2x8xf32>
    %75 = arith.addf %73, %74 : vector<2x8xf32>
    %76 = vector.extract_strided_slice %18 {offsets = [0, 232], sizes = [2, 8], strides = [1, 1]} : vector<2x256xf32> to vector<2x8xf32>
    %77 = arith.addf %75, %76 : vector<2x8xf32>
    %78 = vector.extract_strided_slice %18 {offsets = [0, 240], sizes = [2, 8], strides = [1, 1]} : vector<2x256xf32> to vector<2x8xf32>
    %79 = arith.addf %77, %78 : vector<2x8xf32>
    %80 = vector.extract_strided_slice %18 {offsets = [0, 248], sizes = [2, 8], strides = [1, 1]} : vector<2x256xf32> to vector<2x8xf32>
    %81 = arith.addf %79, %80 : vector<2x8xf32>
    %82 = vector.extract_strided_slice %81 {offsets = [0, 0], sizes = [1, 8], strides = [1, 1]} : vector<2x8xf32> to vector<1x8xf32>
    %cst_10 = arith.constant 4.8828125E-4 : f32
    %83 = vector.broadcast %cst_10 : f32 to vector<1x8xf32>
    %84 = arith.mulf %82, %83 : vector<1x8xf32>
    %85 = vector.extract_strided_slice %81 {offsets = [1, 0], sizes = [1, 8], strides = [1, 1]} : vector<2x8xf32> to vector<1x8xf32>
    %cst_11 = arith.constant 4.8828125E-4 : f32
    %86 = vector.broadcast %cst_11 : f32 to vector<1x8xf32>
    %87 = arith.mulf %85, %86 : vector<1x8xf32>
    %88 = arith.mulf %84, %84 : vector<1x8xf32>
    %89 = arith.subf %87, %88 : vector<1x8xf32>
    %c0_12 = arith.constant 0 : index
    %c0_13 = arith.constant 0 : index
    %90 = vector.load %arg2[%c0_12, %c0_13] : memref<1x8xf32, #tpu.memory_space<vmem>>, vector<1x8xf32>
    %cst_14 = arith.constant 9.99999974E-6 : f32
    %91 = vector.broadcast %cst_14 : f32 to vector<1x8xf32>
    %92 = arith.addf %89, %91 : vector<1x8xf32>
    %93 = math.rsqrt %92 : vector<1x8xf32>
    %94 = arith.mulf %90, %93 : vector<1x8xf32>
    %c0_15 = arith.constant 0 : index
    %c0_16 = arith.constant 0 : index
    %95 = vector.load %arg3[%c0_15, %c0_16] : memref<1x8xf32, #tpu.memory_space<vmem>>, vector<1x8xf32>
    %96 = arith.mulf %84, %94 : vector<1x8xf32>
    %97 = arith.subf %95, %96 : vector<1x8xf32>
    %98 = tpu.concatenate %94, %94, %94, %94, %94, %94, %94, %94, %94, %94, %94, %94, %94, %94, %94, %94, %94, %94, %94, %94, %94, %94, %94, %94, %94, %94, %94, %94, %94, %94, %94, %94 in 1 : vector<1x8xf32>, vector<1x8xf32>, vector<1x8xf32>, vector<1x8xf32>, vector<1x8xf32>, vector<1x8xf32>, vector<1x8xf32>, vector<1x8xf32>, vector<1x8xf32>, vector<1x8xf32>, vector<1x8xf32>, vector<1x8xf32>, vector<1x8xf32>, vector<1x8xf32>, vector<1x8xf32>, vector<1x8xf32>, vector<1x8xf32>, vector<1x8xf32>, vector<1x8xf32>, vector<1x8xf32>, vector<1x8xf32>, vector<1x8xf32>, vector<1x8xf32>, vector<1x8xf32>, vector<1x8xf32>, vector<1x8xf32>, vector<1x8xf32>, vector<1x8xf32>, vector<1x8xf32>, vector<1x8xf32>, vector<1x8xf32>, vector<1x8xf32> -> vector<1x256xf32>
    %99 = tpu.concatenate %97, %97, %97, %97, %97, %97, %97, %97, %97, %97, %97, %97, %97, %97, %97, %97, %97, %97, %97, %97, %97, %97, %97, %97, %97, %97, %97, %97, %97, %97, %97, %97 in 1 : vector<1x8xf32>, vector<1x8xf32>, vector<1x8xf32>, vector<1x8xf32>, vector<1x8xf32>, vector<1x8xf32>, vector<1x8xf32>, vector<1x8xf32>, vector<1x8xf32>, vector<1x8xf32>, vector<1x8xf32>, vector<1x8xf32>, vector<1x8xf32>, vector<1x8xf32>, vector<1x8xf32>, vector<1x8xf32>, vector<1x8xf32>, vector<1x8xf32>, vector<1x8xf32>, vector<1x8xf32>, vector<1x8xf32>, vector<1x8xf32>, vector<1x8xf32>, vector<1x8xf32>, vector<1x8xf32>, vector<1x8xf32>, vector<1x8xf32>, vector<1x8xf32>, vector<1x8xf32>, vector<1x8xf32>, vector<1x8xf32>, vector<1x8xf32> -> vector<1x256xf32>
    %100 = vector.broadcast %98 : vector<1x256xf32> to vector<64x256xf32>
    %101 = arith.mulf %12, %100 : vector<64x256xf32>
    %102 = vector.broadcast %99 : vector<1x256xf32> to vector<64x256xf32>
    %103 = arith.addf %101, %102 : vector<64x256xf32>
    %cst_17 = arith.constant 0.000000e+00 : f32
    %104 = vector.broadcast %cst_17 : f32 to vector<64x256xf32>
    %105 = arith.maximumf %103, %104 : vector<64x256xf32>
    %cst_18 = arith.constant 0.000000e+00 : f32
    %106 = vector.broadcast %cst_18 : f32 to vector<1x256xf32>
    %c0_19 = arith.constant 0 : index
    %c0_20 = arith.constant 0 : index
    %107 = vector.load %arg12[%c0_19, %c0_20] : memref<68x256xf32, #tpu.memory_space<vmem>>, vector<1x256xf32>
    tpu.vector_store %arg12[%c0_19, %c0_20], %106 {strides = array<i32>} : memref<68x256xf32, #tpu.memory_space<vmem>>, vector<1x256xf32>,
    %108 = vector.extract_strided_slice %105 {offsets = [0, 0], sizes = [32, 256], strides = [1, 1]} : vector<64x256xf32> to vector<32x256xf32>
    %c1_21 = arith.constant 1 : index
    %c0_22 = arith.constant 0 : index
    %109 = vector.load %arg12[%c1_21, %c0_22] : memref<68x256xf32, #tpu.memory_space<vmem>>, vector<32x256xf32>
    tpu.vector_store %arg12[%c1_21, %c0_22], %108 {strides = array<i32>} : memref<68x256xf32, #tpu.memory_space<vmem>>, vector<32x256xf32>,
    %c33 = arith.constant 33 : index
    %c0_23 = arith.constant 0 : index
    %110 = vector.load %arg12[%c33, %c0_23] : memref<68x256xf32, #tpu.memory_space<vmem>>, vector<1x256xf32>
    tpu.vector_store %arg12[%c33, %c0_23], %106 {strides = array<i32>} : memref<68x256xf32, #tpu.memory_space<vmem>>, vector<1x256xf32>,
    %c34_24 = arith.constant 34 : index
    %c0_25 = arith.constant 0 : index
    %111 = vector.load %arg12[%c34_24, %c0_25] : memref<68x256xf32, #tpu.memory_space<vmem>>, vector<1x256xf32>
    tpu.vector_store %arg12[%c34_24, %c0_25], %106 {strides = array<i32>} : memref<68x256xf32, #tpu.memory_space<vmem>>, vector<1x256xf32>,
    %112 = vector.extract_strided_slice %105 {offsets = [32, 0], sizes = [32, 256], strides = [1, 1]} : vector<64x256xf32> to vector<32x256xf32>
    %c35_26 = arith.constant 35 : index
    %c0_27 = arith.constant 0 : index
    %113 = vector.load %arg12[%c35_26, %c0_27] : memref<68x256xf32, #tpu.memory_space<vmem>>, vector<32x256xf32>
    tpu.vector_store %arg12[%c35_26, %c0_27], %112 {strides = array<i32>} : memref<68x256xf32, #tpu.memory_space<vmem>>, vector<32x256xf32>,
    %c67 = arith.constant 67 : index
    %c0_28 = arith.constant 0 : index
    %114 = vector.load %arg12[%c67, %c0_28] : memref<68x256xf32, #tpu.memory_space<vmem>>, vector<1x256xf32>
    tpu.vector_store %arg12[%c67, %c0_28], %106 {strides = array<i32>} : memref<68x256xf32, #tpu.memory_space<vmem>>, vector<1x256xf32>,
    %c0_29 = arith.constant 0 : index
    %c0_30 = arith.constant 0 : index
    %115 = vector.load %arg12[%c0_29, %c0_30] : memref<68x256xf32, #tpu.memory_space<vmem>>, vector<32x256xf32>
    %c34_31 = arith.constant 34 : index
    %c0_32 = arith.constant 0 : index
    %116 = vector.load %arg12[%c34_31, %c0_32] : memref<68x256xf32, #tpu.memory_space<vmem>>, vector<32x256xf32>
    %117 = tpu.concatenate %115, %116 in 0 : vector<32x256xf32>, vector<32x256xf32> -> vector<64x256xf32>
    %c1_33 = arith.constant 1 : index
    %c0_34 = arith.constant 0 : index
    %118 = vector.load %arg12[%c1_33, %c0_34] : memref<68x256xf32, #tpu.memory_space<vmem>>, vector<32x256xf32>
    %c35_35 = arith.constant 35 : index
    %c0_36 = arith.constant 0 : index
    %119 = vector.load %arg12[%c35_35, %c0_36] : memref<68x256xf32, #tpu.memory_space<vmem>>, vector<32x256xf32>
    %120 = tpu.concatenate %118, %119 in 0 : vector<32x256xf32>, vector<32x256xf32> -> vector<64x256xf32>
    %c2_37 = arith.constant 2 : index
    %c0_38 = arith.constant 0 : index
    %121 = vector.load %arg12[%c2_37, %c0_38] : memref<68x256xf32, #tpu.memory_space<vmem>>, vector<32x256xf32>
    %c36_39 = arith.constant 36 : index
    %c0_40 = arith.constant 0 : index
    %122 = vector.load %arg12[%c36_39, %c0_40] : memref<68x256xf32, #tpu.memory_space<vmem>>, vector<32x256xf32>
    %123 = tpu.concatenate %121, %122 in 0 : vector<32x256xf32>, vector<32x256xf32> -> vector<64x256xf32>
    %124 = tpu.concatenate %117, %120, %123 in 1 : vector<64x256xf32>, vector<64x256xf32>, vector<64x256xf32> -> vector<64x768xf32>
    %125 = arith.truncf %124 : vector<64x768xf32> to vector<64x768xbf16>
    %c0_41 = arith.constant 0 : index
    %c0_42 = arith.constant 0 : index
    %126 = vector.load %arg4[%c0_41, %c0_42] : memref<768x512xbf16, #tpu.memory_space<vmem>>, vector<768x512xbf16>
    %cst_43 = arith.constant dense<0.000000e+00> : vector<64x512xf32>
    %127 = tpu.matmul %125, %126, %cst_43 {dimension_numbers = #tpu.dot_dimension_numbers<[1], [0], [0], [1], [0, 0, 1, 1], [], []>} : vector<64x768xbf16>, vector<768x512xbf16>, vector<64x512xf32> -> vector<64x512xf32>
    %cst_44 = arith.constant dense<0.000000e+00> : vector<512xf32>
    %128 = vector.multi_reduction <add>, %127, %cst_44 [0] : vector<64x512xf32> to vector<512xf32>
    %129 = vector.shape_cast %128 : vector<512xf32> to vector<1x512xf32>
    %130 = arith.mulf %127, %127 : vector<64x512xf32>
    %cst_45 = arith.constant dense<0.000000e+00> : vector<512xf32>
    %131 = vector.multi_reduction <add>, %130, %cst_45 [0] : vector<64x512xf32> to vector<512xf32>
    %132 = vector.shape_cast %131 : vector<512xf32> to vector<1x512xf32>
    %133 = tpu.concatenate %129, %132 in 0 : vector<1x512xf32>, vector<1x512xf32> -> vector<2x512xf32>
    %134 = vector.extract_strided_slice %133 {offsets = [0, 0], sizes = [2, 16], strides = [1, 1]} : vector<2x512xf32> to vector<2x16xf32>
    %135 = vector.extract_strided_slice %133 {offsets = [0, 16], sizes = [2, 16], strides = [1, 1]} : vector<2x512xf32> to vector<2x16xf32>
    %136 = arith.addf %134, %135 : vector<2x16xf32>
    %137 = vector.extract_strided_slice %133 {offsets = [0, 32], sizes = [2, 16], strides = [1, 1]} : vector<2x512xf32> to vector<2x16xf32>
    %138 = arith.addf %136, %137 : vector<2x16xf32>
    %139 = vector.extract_strided_slice %133 {offsets = [0, 48], sizes = [2, 16], strides = [1, 1]} : vector<2x512xf32> to vector<2x16xf32>
    %140 = arith.addf %138, %139 : vector<2x16xf32>
    %141 = vector.extract_strided_slice %133 {offsets = [0, 64], sizes = [2, 16], strides = [1, 1]} : vector<2x512xf32> to vector<2x16xf32>
    %142 = arith.addf %140, %141 : vector<2x16xf32>
    %143 = vector.extract_strided_slice %133 {offsets = [0, 80], sizes = [2, 16], strides = [1, 1]} : vector<2x512xf32> to vector<2x16xf32>
    %144 = arith.addf %142, %143 : vector<2x16xf32>
    %145 = vector.extract_strided_slice %133 {offsets = [0, 96], sizes = [2, 16], strides = [1, 1]} : vector<2x512xf32> to vector<2x16xf32>
    %146 = arith.addf %144, %145 : vector<2x16xf32>
    %147 = vector.extract_strided_slice %133 {offsets = [0, 112], sizes = [2, 16], strides = [1, 1]} : vector<2x512xf32> to vector<2x16xf32>
    %148 = arith.addf %146, %147 : vector<2x16xf32>
    %149 = vector.extract_strided_slice %133 {offsets = [0, 128], sizes = [2, 16], strides = [1, 1]} : vector<2x512xf32> to vector<2x16xf32>
    %150 = arith.addf %148, %149 : vector<2x16xf32>
    %151 = vector.extract_strided_slice %133 {offsets = [0, 144], sizes = [2, 16], strides = [1, 1]} : vector<2x512xf32> to vector<2x16xf32>
    %152 = arith.addf %150, %151 : vector<2x16xf32>
    %153 = vector.extract_strided_slice %133 {offsets = [0, 160], sizes = [2, 16], strides = [1, 1]} : vector<2x512xf32> to vector<2x16xf32>
    %154 = arith.addf %152, %153 : vector<2x16xf32>
    %155 = vector.extract_strided_slice %133 {offsets = [0, 176], sizes = [2, 16], strides = [1, 1]} : vector<2x512xf32> to vector<2x16xf32>
    %156 = arith.addf %154, %155 : vector<2x16xf32>
    %157 = vector.extract_strided_slice %133 {offsets = [0, 192], sizes = [2, 16], strides = [1, 1]} : vector<2x512xf32> to vector<2x16xf32>
    %158 = arith.addf %156, %157 : vector<2x16xf32>
    %159 = vector.extract_strided_slice %133 {offsets = [0, 208], sizes = [2, 16], strides = [1, 1]} : vector<2x512xf32> to vector<2x16xf32>
    %160 = arith.addf %158, %159 : vector<2x16xf32>
    %161 = vector.extract_strided_slice %133 {offsets = [0, 224], sizes = [2, 16], strides = [1, 1]} : vector<2x512xf32> to vector<2x16xf32>
    %162 = arith.addf %160, %161 : vector<2x16xf32>
    %163 = vector.extract_strided_slice %133 {offsets = [0, 240], sizes = [2, 16], strides = [1, 1]} : vector<2x512xf32> to vector<2x16xf32>
    %164 = arith.addf %162, %163 : vector<2x16xf32>
    %165 = vector.extract_strided_slice %133 {offsets = [0, 256], sizes = [2, 16], strides = [1, 1]} : vector<2x512xf32> to vector<2x16xf32>
    %166 = arith.addf %164, %165 : vector<2x16xf32>
    %167 = vector.extract_strided_slice %133 {offsets = [0, 272], sizes = [2, 16], strides = [1, 1]} : vector<2x512xf32> to vector<2x16xf32>
    %168 = arith.addf %166, %167 : vector<2x16xf32>
    %169 = vector.extract_strided_slice %133 {offsets = [0, 288], sizes = [2, 16], strides = [1, 1]} : vector<2x512xf32> to vector<2x16xf32>
    %170 = arith.addf %168, %169 : vector<2x16xf32>
    %171 = vector.extract_strided_slice %133 {offsets = [0, 304], sizes = [2, 16], strides = [1, 1]} : vector<2x512xf32> to vector<2x16xf32>
    %172 = arith.addf %170, %171 : vector<2x16xf32>
    %173 = vector.extract_strided_slice %133 {offsets = [0, 320], sizes = [2, 16], strides = [1, 1]} : vector<2x512xf32> to vector<2x16xf32>
    %174 = arith.addf %172, %173 : vector<2x16xf32>
    %175 = vector.extract_strided_slice %133 {offsets = [0, 336], sizes = [2, 16], strides = [1, 1]} : vector<2x512xf32> to vector<2x16xf32>
    %176 = arith.addf %174, %175 : vector<2x16xf32>
    %177 = vector.extract_strided_slice %133 {offsets = [0, 352], sizes = [2, 16], strides = [1, 1]} : vector<2x512xf32> to vector<2x16xf32>
    %178 = arith.addf %176, %177 : vector<2x16xf32>
    %179 = vector.extract_strided_slice %133 {offsets = [0, 368], sizes = [2, 16], strides = [1, 1]} : vector<2x512xf32> to vector<2x16xf32>
    %180 = arith.addf %178, %179 : vector<2x16xf32>
    %181 = vector.extract_strided_slice %133 {offsets = [0, 384], sizes = [2, 16], strides = [1, 1]} : vector<2x512xf32> to vector<2x16xf32>
    %182 = arith.addf %180, %181 : vector<2x16xf32>
    %183 = vector.extract_strided_slice %133 {offsets = [0, 400], sizes = [2, 16], strides = [1, 1]} : vector<2x512xf32> to vector<2x16xf32>
    %184 = arith.addf %182, %183 : vector<2x16xf32>
    %185 = vector.extract_strided_slice %133 {offsets = [0, 416], sizes = [2, 16], strides = [1, 1]} : vector<2x512xf32> to vector<2x16xf32>
    %186 = arith.addf %184, %185 : vector<2x16xf32>
    %187 = vector.extract_strided_slice %133 {offsets = [0, 432], sizes = [2, 16], strides = [1, 1]} : vector<2x512xf32> to vector<2x16xf32>
    %188 = arith.addf %186, %187 : vector<2x16xf32>
    %189 = vector.extract_strided_slice %133 {offsets = [0, 448], sizes = [2, 16], strides = [1, 1]} : vector<2x512xf32> to vector<2x16xf32>
    %190 = arith.addf %188, %189 : vector<2x16xf32>
    %191 = vector.extract_strided_slice %133 {offsets = [0, 464], sizes = [2, 16], strides = [1, 1]} : vector<2x512xf32> to vector<2x16xf32>
    %192 = arith.addf %190, %191 : vector<2x16xf32>
    %193 = vector.extract_strided_slice %133 {offsets = [0, 480], sizes = [2, 16], strides = [1, 1]} : vector<2x512xf32> to vector<2x16xf32>
    %194 = arith.addf %192, %193 : vector<2x16xf32>
    %195 = vector.extract_strided_slice %133 {offsets = [0, 496], sizes = [2, 16], strides = [1, 1]} : vector<2x512xf32> to vector<2x16xf32>
    %196 = arith.addf %194, %195 : vector<2x16xf32>
    %197 = vector.extract_strided_slice %196 {offsets = [0, 0], sizes = [1, 16], strides = [1, 1]} : vector<2x16xf32> to vector<1x16xf32>
    %cst_46 = arith.constant 4.8828125E-4 : f32
    %198 = vector.broadcast %cst_46 : f32 to vector<1x16xf32>
    %199 = arith.mulf %197, %198 : vector<1x16xf32>
    %200 = vector.extract_strided_slice %196 {offsets = [1, 0], sizes = [1, 16], strides = [1, 1]} : vector<2x16xf32> to vector<1x16xf32>
    %cst_47 = arith.constant 4.8828125E-4 : f32
    %201 = vector.broadcast %cst_47 : f32 to vector<1x16xf32>
    %202 = arith.mulf %200, %201 : vector<1x16xf32>
    %203 = arith.mulf %199, %199 : vector<1x16xf32>
    %204 = arith.subf %202, %203 : vector<1x16xf32>
    %c0_48 = arith.constant 0 : index
    %c0_49 = arith.constant 0 : index
    %205 = vector.load %arg5[%c0_48, %c0_49] : memref<1x16xf32, #tpu.memory_space<vmem>>, vector<1x16xf32>
    %cst_50 = arith.constant 9.99999974E-6 : f32
    %206 = vector.broadcast %cst_50 : f32 to vector<1x16xf32>
    %207 = arith.addf %204, %206 : vector<1x16xf32>
    %208 = math.rsqrt %207 : vector<1x16xf32>
    %209 = arith.mulf %205, %208 : vector<1x16xf32>
    %c0_51 = arith.constant 0 : index
    %c0_52 = arith.constant 0 : index
    %210 = vector.load %arg6[%c0_51, %c0_52] : memref<1x16xf32, #tpu.memory_space<vmem>>, vector<1x16xf32>
    %211 = arith.mulf %199, %209 : vector<1x16xf32>
    %212 = arith.subf %210, %211 : vector<1x16xf32>
    %213 = tpu.concatenate %209, %209, %209, %209, %209, %209, %209, %209, %209, %209, %209, %209, %209, %209, %209, %209, %209, %209, %209, %209, %209, %209, %209, %209, %209, %209, %209, %209, %209, %209, %209, %209 in 1 : vector<1x16xf32>, vector<1x16xf32>, vector<1x16xf32>, vector<1x16xf32>, vector<1x16xf32>, vector<1x16xf32>, vector<1x16xf32>, vector<1x16xf32>, vector<1x16xf32>, vector<1x16xf32>, vector<1x16xf32>, vector<1x16xf32>, vector<1x16xf32>, vector<1x16xf32>, vector<1x16xf32>, vector<1x16xf32>, vector<1x16xf32>, vector<1x16xf32>, vector<1x16xf32>, vector<1x16xf32>, vector<1x16xf32>, vector<1x16xf32>, vector<1x16xf32>, vector<1x16xf32>, vector<1x16xf32>, vector<1x16xf32>, vector<1x16xf32>, vector<1x16xf32>, vector<1x16xf32>, vector<1x16xf32>, vector<1x16xf32>, vector<1x16xf32> -> vector<1x512xf32>
    %214 = tpu.concatenate %212, %212, %212, %212, %212, %212, %212, %212, %212, %212, %212, %212, %212, %212, %212, %212, %212, %212, %212, %212, %212, %212, %212, %212, %212, %212, %212, %212, %212, %212, %212, %212 in 1 : vector<1x16xf32>, vector<1x16xf32>, vector<1x16xf32>, vector<1x16xf32>, vector<1x16xf32>, vector<1x16xf32>, vector<1x16xf32>, vector<1x16xf32>, vector<1x16xf32>, vector<1x16xf32>, vector<1x16xf32>, vector<1x16xf32>, vector<1x16xf32>, vector<1x16xf32>, vector<1x16xf32>, vector<1x16xf32>, vector<1x16xf32>, vector<1x16xf32>, vector<1x16xf32>, vector<1x16xf32>, vector<1x16xf32>, vector<1x16xf32>, vector<1x16xf32>, vector<1x16xf32>, vector<1x16xf32>, vector<1x16xf32>, vector<1x16xf32>, vector<1x16xf32>, vector<1x16xf32>, vector<1x16xf32>, vector<1x16xf32>, vector<1x16xf32> -> vector<1x512xf32>
    %215 = vector.broadcast %213 : vector<1x512xf32> to vector<64x512xf32>
    %216 = arith.mulf %127, %215 : vector<64x512xf32>
    %217 = vector.broadcast %214 : vector<1x512xf32> to vector<64x512xf32>
    %218 = arith.addf %216, %217 : vector<64x512xf32>
    %cst_53 = arith.constant 0.000000e+00 : f32
    %219 = vector.broadcast %cst_53 : f32 to vector<64x512xf32>
    %220 = arith.maximumf %218, %219 : vector<64x512xf32>
    %221 = vector.extract_strided_slice %220 {offsets = [0, 0], sizes = [32, 512], strides = [1, 1]} : vector<64x512xf32> to vector<32x512xf32>
    %cst_54 = arith.constant dense<0.000000e+00> : vector<512xf32>
    %222 = vector.multi_reduction <add>, %221, %cst_54 [0] : vector<32x512xf32> to vector<512xf32>
    %223 = vector.shape_cast %222 : vector<512xf32> to vector<1x512xf32>
    %224 = vector.extract_strided_slice %220 {offsets = [32, 0], sizes = [32, 512], strides = [1, 1]} : vector<64x512xf32> to vector<32x512xf32>
    %cst_55 = arith.constant dense<0.000000e+00> : vector<512xf32>
    %225 = vector.multi_reduction <add>, %224, %cst_55 [0] : vector<32x512xf32> to vector<512xf32>
    %226 = vector.shape_cast %225 : vector<512xf32> to vector<1x512xf32>
    %227 = tpu.concatenate %223, %226 in 0 : vector<1x512xf32>, vector<1x512xf32> -> vector<2x512xf32>
    %228 = vector.extract_strided_slice %227 {offsets = [0, 0], sizes = [2, 16], strides = [1, 1]} : vector<2x512xf32> to vector<2x16xf32>
    %229 = vector.extract_strided_slice %227 {offsets = [0, 16], sizes = [2, 16], strides = [1, 1]} : vector<2x512xf32> to vector<2x16xf32>
    %230 = arith.addf %228, %229 : vector<2x16xf32>
    %231 = vector.extract_strided_slice %227 {offsets = [0, 32], sizes = [2, 16], strides = [1, 1]} : vector<2x512xf32> to vector<2x16xf32>
    %232 = arith.addf %230, %231 : vector<2x16xf32>
    %233 = vector.extract_strided_slice %227 {offsets = [0, 48], sizes = [2, 16], strides = [1, 1]} : vector<2x512xf32> to vector<2x16xf32>
    %234 = arith.addf %232, %233 : vector<2x16xf32>
    %235 = vector.extract_strided_slice %227 {offsets = [0, 64], sizes = [2, 16], strides = [1, 1]} : vector<2x512xf32> to vector<2x16xf32>
    %236 = arith.addf %234, %235 : vector<2x16xf32>
    %237 = vector.extract_strided_slice %227 {offsets = [0, 80], sizes = [2, 16], strides = [1, 1]} : vector<2x512xf32> to vector<2x16xf32>
    %238 = arith.addf %236, %237 : vector<2x16xf32>
    %239 = vector.extract_strided_slice %227 {offsets = [0, 96], sizes = [2, 16], strides = [1, 1]} : vector<2x512xf32> to vector<2x16xf32>
    %240 = arith.addf %238, %239 : vector<2x16xf32>
    %241 = vector.extract_strided_slice %227 {offsets = [0, 112], sizes = [2, 16], strides = [1, 1]} : vector<2x512xf32> to vector<2x16xf32>
    %242 = arith.addf %240, %241 : vector<2x16xf32>
    %243 = vector.extract_strided_slice %227 {offsets = [0, 128], sizes = [2, 16], strides = [1, 1]} : vector<2x512xf32> to vector<2x16xf32>
    %244 = arith.addf %242, %243 : vector<2x16xf32>
    %245 = vector.extract_strided_slice %227 {offsets = [0, 144], sizes = [2, 16], strides = [1, 1]} : vector<2x512xf32> to vector<2x16xf32>
    %246 = arith.addf %244, %245 : vector<2x16xf32>
    %247 = vector.extract_strided_slice %227 {offsets = [0, 160], sizes = [2, 16], strides = [1, 1]} : vector<2x512xf32> to vector<2x16xf32>
    %248 = arith.addf %246, %247 : vector<2x16xf32>
    %249 = vector.extract_strided_slice %227 {offsets = [0, 176], sizes = [2, 16], strides = [1, 1]} : vector<2x512xf32> to vector<2x16xf32>
    %250 = arith.addf %248, %249 : vector<2x16xf32>
    %251 = vector.extract_strided_slice %227 {offsets = [0, 192], sizes = [2, 16], strides = [1, 1]} : vector<2x512xf32> to vector<2x16xf32>
    %252 = arith.addf %250, %251 : vector<2x16xf32>
    %253 = vector.extract_strided_slice %227 {offsets = [0, 208], sizes = [2, 16], strides = [1, 1]} : vector<2x512xf32> to vector<2x16xf32>
    %254 = arith.addf %252, %253 : vector<2x16xf32>
    %255 = vector.extract_strided_slice %227 {offsets = [0, 224], sizes = [2, 16], strides = [1, 1]} : vector<2x512xf32> to vector<2x16xf32>
    %256 = arith.addf %254, %255 : vector<2x16xf32>
    %257 = vector.extract_strided_slice %227 {offsets = [0, 240], sizes = [2, 16], strides = [1, 1]} : vector<2x512xf32> to vector<2x16xf32>
    %258 = arith.addf %256, %257 : vector<2x16xf32>
    %259 = vector.extract_strided_slice %227 {offsets = [0, 256], sizes = [2, 16], strides = [1, 1]} : vector<2x512xf32> to vector<2x16xf32>
    %260 = arith.addf %258, %259 : vector<2x16xf32>
    %261 = vector.extract_strided_slice %227 {offsets = [0, 272], sizes = [2, 16], strides = [1, 1]} : vector<2x512xf32> to vector<2x16xf32>
    %262 = arith.addf %260, %261 : vector<2x16xf32>
    %263 = vector.extract_strided_slice %227 {offsets = [0, 288], sizes = [2, 16], strides = [1, 1]} : vector<2x512xf32> to vector<2x16xf32>
    %264 = arith.addf %262, %263 : vector<2x16xf32>
    %265 = vector.extract_strided_slice %227 {offsets = [0, 304], sizes = [2, 16], strides = [1, 1]} : vector<2x512xf32> to vector<2x16xf32>
    %266 = arith.addf %264, %265 : vector<2x16xf32>
    %267 = vector.extract_strided_slice %227 {offsets = [0, 320], sizes = [2, 16], strides = [1, 1]} : vector<2x512xf32> to vector<2x16xf32>
    %268 = arith.addf %266, %267 : vector<2x16xf32>
    %269 = vector.extract_strided_slice %227 {offsets = [0, 336], sizes = [2, 16], strides = [1, 1]} : vector<2x512xf32> to vector<2x16xf32>
    %270 = arith.addf %268, %269 : vector<2x16xf32>
    %271 = vector.extract_strided_slice %227 {offsets = [0, 352], sizes = [2, 16], strides = [1, 1]} : vector<2x512xf32> to vector<2x16xf32>
    %272 = arith.addf %270, %271 : vector<2x16xf32>
    %273 = vector.extract_strided_slice %227 {offsets = [0, 368], sizes = [2, 16], strides = [1, 1]} : vector<2x512xf32> to vector<2x16xf32>
    %274 = arith.addf %272, %273 : vector<2x16xf32>
    %275 = vector.extract_strided_slice %227 {offsets = [0, 384], sizes = [2, 16], strides = [1, 1]} : vector<2x512xf32> to vector<2x16xf32>
    %276 = arith.addf %274, %275 : vector<2x16xf32>
    %277 = vector.extract_strided_slice %227 {offsets = [0, 400], sizes = [2, 16], strides = [1, 1]} : vector<2x512xf32> to vector<2x16xf32>
    %278 = arith.addf %276, %277 : vector<2x16xf32>
    %279 = vector.extract_strided_slice %227 {offsets = [0, 416], sizes = [2, 16], strides = [1, 1]} : vector<2x512xf32> to vector<2x16xf32>
    %280 = arith.addf %278, %279 : vector<2x16xf32>
    %281 = vector.extract_strided_slice %227 {offsets = [0, 432], sizes = [2, 16], strides = [1, 1]} : vector<2x512xf32> to vector<2x16xf32>
    %282 = arith.addf %280, %281 : vector<2x16xf32>
    %283 = vector.extract_strided_slice %227 {offsets = [0, 448], sizes = [2, 16], strides = [1, 1]} : vector<2x512xf32> to vector<2x16xf32>
    %284 = arith.addf %282, %283 : vector<2x16xf32>
    %285 = vector.extract_strided_slice %227 {offsets = [0, 464], sizes = [2, 16], strides = [1, 1]} : vector<2x512xf32> to vector<2x16xf32>
    %286 = arith.addf %284, %285 : vector<2x16xf32>
    %287 = vector.extract_strided_slice %227 {offsets = [0, 480], sizes = [2, 16], strides = [1, 1]} : vector<2x512xf32> to vector<2x16xf32>
    %288 = arith.addf %286, %287 : vector<2x16xf32>
    %289 = vector.extract_strided_slice %227 {offsets = [0, 496], sizes = [2, 16], strides = [1, 1]} : vector<2x512xf32> to vector<2x16xf32>
    %290 = arith.addf %288, %289 : vector<2x16xf32>
    %cst_56 = arith.constant 9.765625E-4 : f32
    %291 = vector.broadcast %cst_56 : f32 to vector<2x16xf32>
    %292 = arith.mulf %290, %291 : vector<2x16xf32>
    %c0_57 = arith.constant 0 : index
    %c0_58 = arith.constant 0 : index
    %293 = vector.load %arg7[%c0_57, %c0_58] : memref<16x1xf32, #tpu.memory_space<vmem>>, vector<16x1xf32>
    %cst_59 = arith.constant dense<0.000000e+00> : vector<2x1xf32>
    %294 = tpu.matmul %292, %293, %cst_59 {dimension_numbers = #tpu.dot_dimension_numbers<[1], [0], [0], [1], [0, 0, 1, 1], [], []>} : vector<2x16xf32>, vector<16x1xf32>, vector<2x1xf32> -> vector<2x1xf32>
    %c0_60 = arith.constant 0 : index
    %c0_61 = arith.constant 0 : index
    %295 = vector.load %arg8[%c0_60, %c0_61] : memref<1x1xf32, #tpu.memory_space<vmem>>, vector<1x1xf32>
    %296 = vector.broadcast %295 : vector<1x1xf32> to vector<2x1xf32>
    %297 = arith.addf %294, %296 : vector<2x1xf32>
    %cst_62 = arith.constant 0.000000e+00 : f32
    %298 = vector.broadcast %cst_62 : f32 to vector<2x1xf32>
    %299 = arith.maximumf %297, %298 : vector<2x1xf32>
    %c0_63 = arith.constant 0 : index
    %c0_64 = arith.constant 0 : index
    %300 = vector.load %arg9[%c0_63, %c0_64] : memref<1x16xf32, #tpu.memory_space<vmem>>, vector<1x16xf32>
    %cst_65 = arith.constant dense<0.000000e+00> : vector<2x16xf32>
    %301 = tpu.matmul %299, %300, %cst_65 {dimension_numbers = #tpu.dot_dimension_numbers<[1], [0], [0], [1], [0, 0, 1, 1], [], []>} : vector<2x1xf32>, vector<1x16xf32>, vector<2x16xf32> -> vector<2x16xf32>
    %c0_66 = arith.constant 0 : index
    %c0_67 = arith.constant 0 : index
    %302 = vector.load %arg10[%c0_66, %c0_67] : memref<1x16xf32, #tpu.memory_space<vmem>>, vector<1x16xf32>
    %303 = vector.broadcast %302 : vector<1x16xf32> to vector<2x16xf32>
    %304 = arith.addf %301, %303 : vector<2x16xf32>
    %cst_68 = arith.constant 0.000000e+00 : f32
    %305 = vector.broadcast %cst_68 : f32 to vector<2x16xf32>
    %306 = arith.subf %305, %304 : vector<2x16xf32>
    %307 = math.exp %306 : vector<2x16xf32>
    %cst_69 = arith.constant 1.000000e+00 : f32
    %308 = vector.broadcast %cst_69 : f32 to vector<2x16xf32>
    %309 = arith.addf %308, %307 : vector<2x16xf32>
    %cst_70 = arith.constant 1.000000e+00 : f32
    %310 = vector.broadcast %cst_70 : f32 to vector<2x16xf32>
    %311 = arith.divf %310, %309 : vector<2x16xf32>
    %312 = vector.extract_strided_slice %311 {offsets = [0, 0], sizes = [1, 16], strides = [1, 1]} : vector<2x16xf32> to vector<1x16xf32>
    %313 = tpu.concatenate %312, %312, %312, %312, %312, %312, %312, %312, %312, %312, %312, %312, %312, %312, %312, %312, %312, %312, %312, %312, %312, %312, %312, %312, %312, %312, %312, %312, %312, %312, %312, %312 in 1 : vector<1x16xf32>, vector<1x16xf32>, vector<1x16xf32>, vector<1x16xf32>, vector<1x16xf32>, vector<1x16xf32>, vector<1x16xf32>, vector<1x16xf32>, vector<1x16xf32>, vector<1x16xf32>, vector<1x16xf32>, vector<1x16xf32>, vector<1x16xf32>, vector<1x16xf32>, vector<1x16xf32>, vector<1x16xf32>, vector<1x16xf32>, vector<1x16xf32>, vector<1x16xf32>, vector<1x16xf32>, vector<1x16xf32>, vector<1x16xf32>, vector<1x16xf32>, vector<1x16xf32>, vector<1x16xf32>, vector<1x16xf32>, vector<1x16xf32>, vector<1x16xf32>, vector<1x16xf32>, vector<1x16xf32>, vector<1x16xf32>, vector<1x16xf32> -> vector<1x512xf32>
    %314 = vector.extract_strided_slice %220 {offsets = [0, 0], sizes = [32, 512], strides = [1, 1]} : vector<64x512xf32> to vector<32x512xf32>
    %315 = vector.broadcast %313 : vector<1x512xf32> to vector<32x512xf32>
    %316 = arith.mulf %314, %315 : vector<32x512xf32>
    %c0_71 = arith.constant 0 : index
    %c0_72 = arith.constant 0 : index
    %317 = vector.load %arg11[%c0_71, %c0_72] : memref<64x512xf32, #tpu.memory_space<vmem>>, vector<32x512xf32>
    tpu.vector_store %arg11[%c0_71, %c0_72], %316 {strides = array<i32>} : memref<64x512xf32, #tpu.memory_space<vmem>>, vector<32x512xf32>,
    %318 = vector.extract_strided_slice %311 {offsets = [1, 0], sizes = [1, 16], strides = [1, 1]} : vector<2x16xf32> to vector<1x16xf32>
    %319 = tpu.concatenate %318, %318, %318, %318, %318, %318, %318, %318, %318, %318, %318, %318, %318, %318, %318, %318, %318, %318, %318, %318, %318, %318, %318, %318, %318, %318, %318, %318, %318, %318, %318, %318 in 1 : vector<1x16xf32>, vector<1x16xf32>, vector<1x16xf32>, vector<1x16xf32>, vector<1x16xf32>, vector<1x16xf32>, vector<1x16xf32>, vector<1x16xf32>, vector<1x16xf32>, vector<1x16xf32>, vector<1x16xf32>, vector<1x16xf32>, vector<1x16xf32>, vector<1x16xf32>, vector<1x16xf32>, vector<1x16xf32>, vector<1x16xf32>, vector<1x16xf32>, vector<1x16xf32>, vector<1x16xf32>, vector<1x16xf32>, vector<1x16xf32>, vector<1x16xf32>, vector<1x16xf32>, vector<1x16xf32>, vector<1x16xf32>, vector<1x16xf32>, vector<1x16xf32>, vector<1x16xf32>, vector<1x16xf32>, vector<1x16xf32>, vector<1x16xf32> -> vector<1x512xf32>
    %320 = vector.extract_strided_slice %220 {offsets = [32, 0], sizes = [32, 512], strides = [1, 1]} : vector<64x512xf32> to vector<32x512xf32>
    %321 = vector.broadcast %319 : vector<1x512xf32> to vector<32x512xf32>
    %322 = arith.mulf %320, %321 : vector<32x512xf32>
    %c32 = arith.constant 32 : index
    %c0_73 = arith.constant 0 : index
    %323 = vector.load %arg11[%c32, %c0_73] : memref<64x512xf32, #tpu.memory_space<vmem>>, vector<32x512xf32>
    tpu.vector_store %arg11[%c32, %c0_73], %322 {strides = array<i32>} : memref<64x512xf32, #tpu.memory_space<vmem>>, vector<32x512xf32>,
    return
  }
}

</mosaic_0001>

<bundles_post_ra>
// kernel: tpu_custom_call.1
= control target key start
LH: loop header
LB: loop body
LE: loop exit
PB: predicated region body
PF: predicated region fallthrough
CT: control target
= control target key end

     0   :  { %s6013_s0 = inlined_call_operand.hbm [shape: f32[68,128], index: 0, kind: input, shape index: {}]   ;;  %s6014_s1 = inlined_call_operand.hbm [shape: bf16[384,256], index: 1, kind: input, shape index: {}]   ;;  %s6015_s2 = inlined_call_operand.vmem [shape: f32[1,8], index: 2, kind: input, shape index: {}]   ;;  %s6016_s3 = inlined_call_operand.vmem [shape: f32[1,8], index: 3, kind: input, shape index: {}]   ;;  %s6017_s4 = inlined_call_operand.hbm [shape: bf16[768,512], index: 4, kind: input, shape index: {}]   ;;  %s6018_s5 = inlined_call_operand.vmem [shape: f32[1,16], index: 5, kind: input, shape index: {}]   ;;  %s6019_s6 = inlined_call_operand.vmem [shape: f32[1,16], index: 6, kind: input, shape index: {}]   ;;  %s6020_s7 = inlined_call_operand.vmem [shape: f32[16,1], index: 7, kind: input, shape index: {}]   ;;  %s6021_s8 = inlined_call_operand.<no memory space> [shape: f32[1,1], index: 8, kind: input, shape index: {}]   ;;  %s6022_s9 = inlined_call_operand.vmem [shape: f32[1,16], index: 9, kind: input, shape index: {}]   ;;  %s6023_s10 = inlined_call_operand.vmem [shape: f32[1,16], index: 10, kind: input, shape index: {}]   ;;  %s6024_s11 = inlined_call_operand.hbm [shape: f32[64,512], index: 11, kind: output, shape index: {}]  }
   0x1   :  { %v16_v0 = vstv %s6021_s8 }
   0x2   :  { %17 = vst [vmem:[#allocation3] sm:$0x1] %v16_v0 }
   0x3   :  { %18 = vsyncpa [#allocation5], 0 }
   0x4   :  { %19 = vsyncpa [#allocation8], 0 }
   0x5   :  { %20 = vsyncpa [#allocation6], 0  ;;  %s4582_s19 = smov [#allocation7]   ;;  %s4583_s21 = smov [#allocation4]  }
   0x6   :  { %s38_s20 = sshll.u32 %s4582_s19, 4  ;;  %s26_s22 = sshll.u32 %s4583_s21, 4  ;;  %s39_s20 = int_to_ptr.vmem [resolvable:$true] %s38_s20  ;;  %s27_s22 = int_to_ptr.vmem [resolvable:$true] %s26_s22 }
   0x7   :  { %s4504_s23 = scalar_lea.vmem %s39_s20, 6144  ;;  %p4509_p1 = scmp.lt.s32.totalorder %s39_s20, %s39_s20 }
   0x8   :  { %p4505_p0 = scmp.ne.s32.totalorder %s39_s20, %s4504_s23  ;;  %p4510_p2 = scmp.lt.s32.totalorder %s4504_s23, %s4504_s23 }
   0xa   :  { %p4511_p3 = por %p4510_p2, %p4509_p1 }
   0xc   :  { %p4512_p4 = pnand %p4511_p3, %p4505_p0 }
   0xe   :  { %4515 = shalt.err (!%p4512_p4)
}
   0xf   :  { %s4584_s24 = smov 128   ;;  %s4585_s25 = smov 8  }
  0x10   :  { %44 = dma.hbm_to_vmem [thread:$0]  %s6014_s1, 6144, %s39_s20, [#allocation8], %s4584_s24, %s4584_s24, %s4585_s25  }
  0x11   :  { %s4524_s27 = scalar_lea.vmem %s27_s22, 1152  ;;  %p4529_p6 = scmp.lt.s32.totalorder %s27_s22, %s27_s22 }
  0x12   :  { %p4525_p5 = scmp.ne.s32.totalorder %s27_s22, %s4524_s27  ;;  %p4530_p7 = scmp.lt.s32.totalorder %s4524_s27, %s4524_s27 }
  0x14   :  { %p4531_p8 = por %p4530_p7, %p4529_p6 }
  0x16   :  { %p4532_p9 = pnand %p4531_p8, %p4525_p5 }
  0x18   :  { %4535 = shalt.err (!%p4532_p9)
}
  0x19   :  { %32 = dma.hbm_to_vmem [thread:$0]  %s6013_s0, 1152, %s27_s22, [#allocation5], %s4584_s24, %s4584_s24, %s4585_s25  }
  0x1a   :  { %s4586_s30 = smov [#allocation9]  }
  0x1b   :  { %s54_s12 = sshll.u32 %s4586_s30, 4  ;;  %s55_s12 = int_to_ptr.vmem [resolvable:$true] %s54_s12 }
  0x1c   :  { %s4544_s13 = scalar_lea.vmem %s55_s12, 24576  ;;  %p4549_p11 = scmp.lt.s32.totalorder %s55_s12, %s55_s12 }
  0x1d   :  { %p4545_p10 = scmp.ne.s32.totalorder %s55_s12, %s4544_s13  ;;  %p4550_p12 = scmp.lt.s32.totalorder %s4544_s13, %s4544_s13 }
  0x1f   :  { %p4551_p13 = por %p4550_p12, %p4549_p11 }
  0x21   :  { %p4552_p0 = pnand %p4551_p13, %p4545_p10 }
  0x23   :  { %4555 = shalt.err (!%p4552_p0)
}
  0x24   :  { %s4587_s1 = smov 256   ;;  %s4588_s14 = smov 16  }
  0x25   :  { %60 = dma.hbm_to_vmem [thread:$0]  %s6017_s4, 24576, %s55_s12, [#allocation8], %s4587_s1, %s4587_s1, %s4588_s14  }
  0x26   :  { %4576 = dma.done.wait [#allocation5], 1152  }
  0x27   :  { %4577 = vsyncadd [#allocation5], 4294966144 }
  0x28   :  { %4578 = dma.done.wait [#allocation8], 30720  }
  0x29   :  { %4579 = vsyncadd [#allocation8], 4294936576  ;;  %v4589_v1 = vmov 0   ;;  %v4128_v2 = vld [vmem:[#allocation7 + $0x74] ss:$8 sps:$4 sm:$0xff]   ;;  %v92_v36 = vld [vmem:[#allocation4 + $0x9] sm:$0xff] }
  0x2a   :  { %512 = vmatprep.mubr.bf16.mxu1 %v4589_v1  ;;  %v4130_v3 = vld [vmem:[#allocation7 + $0x70] ss:$8 sps:$4 sm:$0xff]   ;;  %407 = vmatprep.subr.bf16.mxu0 %v4128_v2  ;;  %v4131_v4 = vld [vmem:[#allocation7 + $0x64] ss:$8 sps:$4 sm:$0xff]   ;;  %v4133_v5 = vld [vmem:[#allocation7 + $0x60] ss:$8 sps:$4 sm:$0xff]  }
  0x2b   :  { %408 = vmatpush1.bf16.msra.mxu0 %v4130_v3  ;;  %v4134_v6 = vld [vmem:[#allocation7 + $0x54] ss:$8 sps:$4 sm:$0xff]   ;;  %v4136_v7 = vld [vmem:[#allocation7 + $0x50] ss:$8 sps:$4 sm:$0xff]   ;;  %v4137_v8 = vld [vmem:[#allocation7 + $0x44] ss:$8 sps:$4 sm:$0xff]  }
  0x2c   :  { %409 = vmatprep.subr.bf16.mxu0 %v4131_v4  ;;  %v4149_v9 = vld [vmem:[#allocation7 + $0x174] ss:$8 sps:$4 sm:$0xff]   ;;  %v4151_v10 = vld [vmem:[#allocation7 + $0x170] ss:$8 sps:$4 sm:$0xff]   ;;  %v4139_v11 = vld [vmem:[#allocation7 + $0x40] ss:$8 sps:$4 sm:$0xff]  }
  0x2d   :  { %v4140_v12 = vld [vmem:[#allocation7 + $0x34] ss:$8 sps:$4 sm:$0xff]   ;;  %480 = vmatprep.subr.bf16.mxu1 %v4149_v9  ;;  %v4155_v13 = vld [vmem:[#allocation7 + $0x164] ss:$8 sps:$4 sm:$0xff]   ;;  %v4157_v14 = vld [vmem:[#allocation7 + $0x160] ss:$8 sps:$4 sm:$0xff]  }
  0x2e   :  { %481 = vmatpush1.bf16.msra.mxu1 %v4151_v10  ;;  %v4142_v15 = vld [vmem:[#allocation7 + $0x30] ss:$8 sps:$4 sm:$0xff]   ;;  %v4161_v16 = vld [vmem:[#allocation7 + $0x154] ss:$8 sps:$4 sm:$0xff]   ;;  %v4143_v17 = vld [vmem:[#allocation7 + $0x24] ss:$8 sps:$4 sm:$0xff]  }
  0x2f   :  { %410 = vmatpush1.bf16.msra.mxu0 %v4133_v5  ;;  %482 = vmatprep.subr.bf16.mxu1 %v4155_v13  ;;  %v4163_v18 = vld [vmem:[#allocation7 + $0x150] ss:$8 sps:$4 sm:$0xff]   ;;  %v4167_v19 = vld [vmem:[#allocation7 + $0x144] ss:$8 sps:$4 sm:$0xff]   ;;  %v4145_v20 = vld [vmem:[#allocation7 + $0x20] ss:$8 sps:$4 sm:$0xff]  }
  0x30   :  { %411 = vmatprep.subr.bf16.mxu0 %v4134_v6  ;;  %v4146_v21 = vld [vmem:[#allocation7 + $0x14] ss:$8 sps:$4 sm:$0xff]   ;;  %v4169_v22 = vld [vmem:[#allocation7 + $0x140] ss:$8 sps:$4 sm:$0xff]   ;;  %v4148_v24 = vld [vmem:[#allocation7 + $0x10] ss:$8 sps:$4 sm:$0xff]  }
  0x31   :  { %v4173_v23 = vld [vmem:[#allocation7 + $0x134] ss:$8 sps:$4 sm:$0xff]   ;;  %v4152_v25 = vld [vmem:[#allocation7 + $0x4] ss:$8 sps:$4 sm:$0xff]   ;;  %v4175_v26 = vld [vmem:[#allocation7 + $0x130] ss:$8 sps:$4 sm:$0xff]  }
  0x32   :  { %483 = vmatpush1.bf16.msra.mxu1 %v4157_v14  ;;  %v4179_v27 = vld [vmem:[#allocation7 + $0x124] ss:$8 sps:$4 sm:$0xff]   ;;  %v4154_v28 = vld [vmem:[#allocation7] ss:$8 sps:$4 sm:$0xff]   ;;  %v4158_v29 = vld [vmem:[#allocation7 + $0xf4] ss:$8 sps:$4 sm:$0xff]  }
  0x33   :  { %412 = vmatpush1.bf16.msra.mxu0 %v4136_v7  ;;  %484 = vmatprep.subr.bf16.mxu1 %v4161_v16  ;;  %v4181_v30 = vld [vmem:[#allocation7 + $0x120] ss:$8 sps:$4 sm:$0xff]   ;;  %v4185_v31 = vld [vmem:[#allocation7 + $0x114] ss:$8 sps:$4 sm:$0xff]   ;;  %v4160_v32 = vld [vmem:[#allocation7 + $0xf0] ss:$8 sps:$4 sm:$0xff]  }
  0x34   :  { %413 = vmatprep.subr.bf16.mxu0 %v4137_v8  ;;  %v4164_v33 = vld [vmem:[#allocation7 + $0xe4] ss:$8 sps:$4 sm:$0xff]   ;;  %v91_v34 = vld [vmem:[#allocation4 + $0x1] sm:$0xff]  ;;  %v94_v2 = vld [vmem:[#allocation4 + $0x19] sm:$0xff]  ;;  %vm621_vm0 = vcmask 1040384   ;;  %s4590_s0 = smov 104  }
  0x35   :  { %v4187_v35 = vld [vmem:[#allocation7 + $0x110] ss:$8 sps:$4 sm:$0xff]   ;;  %v4191_v37 = vld [vmem:[#allocation7 + $0x104] ss:$8 sps:$4 sm:$0xff]   ;;  %v108_v38 = vpack.c.bf16 %v92_v36, %v91_v34  ;;  %v4166_v39 = vld [vmem:[#allocation7 + $0xe0] ss:$8 sps:$4 sm:$0xff]  }
  0x36   :  { %485 = vmatpush1.bf16.msra.mxu1 %v4163_v18  ;;  %v4170_v40 = vld [vmem:[#allocation7 + $0xd4] ss:$8 sps:$4 sm:$0xff]   ;;  %v4193_v41 = vld [vmem:[#allocation7 + $0x100] ss:$8 sps:$4 sm:$0xff]   ;;  %v4172_v44 = vld [vmem:[#allocation7 + $0xd0] ss:$8 sps:$4 sm:$0xff]  }
  0x37   :  { %414 = vmatpush1.bf16.msra.mxu0 %v4139_v11  ;;  %486 = vmatprep.subr.bf16.mxu1 %v4167_v19  ;;  %v99_v42 = vld [vmem:[#allocation4 + $0x2] sm:$0xff]  ;;  %v100_v43 = vld [vmem:[#allocation4 + $0xa] sm:$0xff]  ;;  %v101_v49 = vld [vmem:[#allocation4 + $0x12] sm:$0xff]  ;;  %s4591_s4 = smov 120   ;;  %s4592_s17 = smov 96   ;;  %vm827_vm2 = vcmask 64512  }
  0x38   :  { %415 = vmatprep.subr.bf16.mxu0 %v4140_v12  ;;  %439 = vmatprep.mubr.bf16.mxu0 %v108_v38  ;;  %v4176_v45 = vld [vmem:[#allocation7 + $0xc4] ss:$8 sps:$4 sm:$0xff]   ;;  %v109_v46 = vpack.c.bf16 %v100_v43, %v99_v42  ;;  %v4178_v47 = vld [vmem:[#allocation7 + $0xc0] ss:$8 sps:$4 sm:$0xff]   ;;  %v4182_v48 = vld [vmem:[#allocation7 + $0xb4] ss:$8 sps:$4 sm:$0xff]  }
  0x39   :  { %v102_v50 = vld [vmem:[#allocation4 + $0x1a] sm:$0xff]  ;;  %v4188_v52 = vld [vmem:[#allocation7 + $0xa4] ss:$8 sps:$4 sm:$0xff]   ;;  %v4190_v54 = vld [vmem:[#allocation7 + $0xa0] ss:$8 sps:$4 sm:$0xff]   ;;  %s4593_s18 = smov 112  }
  0x3a   :  { %487 = vmatpush1.bf16.msra.mxu1 %v4169_v22  ;;  %v4184_v51 = vld [vmem:[#allocation7 + $0xb0] ss:$8 sps:$4 sm:$0xff]   ;;  %v112_v53 = vpack.c.bf16 %v102_v50, %v101_v49  ;;  %v4194_v55 = vld [vmem:[#allocation7 + $0x94] ss:$8 sps:$4 sm:$0xff]   ;;  %v104_v57 = vld [vmem:[#allocation4 + $0x2c] sm:$0xff]  ;;  %s4594_s19 = smov 80  }
  0x3b   :  { %416 = vmatpush1.bf16.msra.mxu0 %v4142_v15  ;;  %488 = vmatprep.subr.bf16.mxu1 %v4173_v23  ;;  %v103_v56 = vld [vmem:[#allocation4 + $0x24] sm:$0xff]  ;;  %v4196_v58 = vld [vmem:[#allocation7 + $0x90] ss:$8 sps:$4 sm:$0xff]   ;;  %v4197_v59 = vld [vmem:[#allocation7 + $0x84] ss:$8 sps:$4 sm:$0xff]   ;;  %s4595_s20 = smov 88  }
  0x3c   :  { %417 = vmatprep.subr.bf16.mxu0 %v4143_v17  ;;  %v115_v60 = vpack.c.bf16 %v104_v57, %v103_v56  ;;  %v4199_v61 = vld [vmem:[#allocation7 + $0x80] ss:$8 sps:$4 sm:$0xff]   ;;  %v83_v62 = vld [vmem:[#allocation4] sm:$0xff]  ;;  %v105_v3 = vld [vmem:[#allocation4 + $0x34] sm:$0xff]  ;;  %s4596_s21 = smov 64   ;;  %s4597_s22 = smov 72  }
  0x3d   :  { %v84_v63 = vld [vmem:[#allocation4 + $0x8] sm:$0xff]  ;;  %v93_v0 = vld [vmem:[#allocation4 + $0x11] sm:$0xff]  ;;  %v106_v4 = vld [vmem:[#allocation4 + $0x3c] sm:$0xff]  ;;  %s4598_s23 = smov 48   ;;  %s4599_s24 = smov 56   ;;  %vm829_vm3 = vcmask 130048  }
  0x3e   :  { %489 = vmatpush1.bf16.msra.mxu1 %v4175_v26  ;;  %v107_v5 = vpack.c.bf16 %v84_v63, %v83_v62  ;;  %v111_v6 = vpack.c.bf16 %v94_v2, %v93_v0  ;;  %v118_v7 = vpack.c.bf16 %v106_v4, %v105_v3  ;;  %v85_v8 = vld [vmem:[#allocation4 + $0x10] sm:$0xff]  ;;  %v86_v9 = vld [vmem:[#allocation4 + $0x18] sm:$0xff]  ;;  %v95_v10 = vld [vmem:[#allocation4 + $0x23] sm:$0xff]  ;;  %s4600_s8 = smov 32   ;;  %s4601_s26 = smov 40   ;;  %vm831_vm4 = vcmask 195584  }
  0x3f   :  { %418 = vmatpush1.bf16.msra.mxu0 %v4145_v20  ;;  %490 = vmatprep.subr.bf16.mxu1 %v4179_v27  ;;  %v96_v11 = vld [vmem:[#allocation4 + $0x2b] sm:$0xff]  ;;  %v110_v12 = vpack.c.bf16 %v86_v9, %v85_v8  ;;  %v87_v14 = vld [vmem:[#allocation4 + $0x22] sm:$0xff]  ;;  %v97_v16 = vld [vmem:[#allocation4 + $0x33] sm:$0xff]  ;;  %s4602_s27 = smov 24   ;;  %vm833_vm5 = vcmask 261120   ;;  %vm835_vm6 = vcmask 326656  }
  0x40   :  { %419 = vmatprep.subr.bf16.mxu0 %v4146_v21  ;;  %v114_v13 = vpack.c.bf16 %v96_v11, %v95_v10  ;;  %v88_v15 = vld [vmem:[#allocation4 + $0x2a] sm:$0xff]  ;;  %v98_v17 = vld [vmem:[#allocation4 + $0x3b] sm:$0xff]  ;;  %v89_v19 = vld [vmem:[#allocation4 + $0x32] sm:$0xff]  ;;  %vm837_vm7 = vcmask 392192   ;;  %vm839_vm8 = vcmask 457728   ;;  %vm841_vm9 = vcmask 523264  }
  0x41   :  { %v117_v18 = vpack.c.bf16 %v98_v17, %v97_v16  ;;  %v90_v20 = vld [vmem:[#allocation4 + $0x3a] sm:$0xff]  ;;  %vm843_vm10 = vcmask 588800   ;;  %vm845_vm11 = vcmask 654336   ;;  %vm847_vm12 = vcmask 719872  }
  0x42   :  { %491 = vmatpush1.bf16.msra.mxu1 %v4181_v30  ;;  %v116_v21 = vpack.c.bf16 %v90_v20, %v89_v19  ;;  %vm849_vm13 = vcmask 785408   ;;  %vm851_vm14 = vcmask 850944   ;;  %vm853_vm15 = vcmask 916480  }
  0x43   :  { %420 = vmatpush1.bf16.msra.mxu0 %v4148_v24  ;;  %492 = vmatprep.subr.bf16.mxu1 %v4185_v31 }
  0x44   :  { %421 = vmatprep.subr.bf16.mxu0 %v4152_v25 }
  0x46   :  { %493 = vmatpush1.bf16.msra.mxu1 %v4187_v35 }
  0x47   :  { %422 = vmatpush1.bf16.msra.mxu0 %v4154_v28  ;;  %494 = vmatprep.subr.bf16.mxu1 %v4191_v37 }
  0x48   :  { %423 = vmatprep.subr.bf16.mxu0 %v4158_v29 }
  0x4a   :  { %495 = vmatpush1.bf16.msra.mxu1 %v4193_v41 }
  0x4b   :  { %424 = vmatpush2.bf16.msra.mxu0 %v4160_v32 }
  0x4c   :  { %425 = vmatprep.subr.bf16.mxu0 %v4164_v33 }
  0x4d   :  { %513 = vmatmul.mubr.bf16.vlgmr.msra.gmra.mxu1 %v109_v46 }
  0x4e   :  { %522 = vmatprep.mubr.bf16.mxu1 %v4589_v1 }
  0x4f   :  { %426 = vmatpush2.bf16.msra.mxu0 %v4166_v39 }
  0x50   :  { %427 = vmatprep.subr.bf16.mxu0 %v4170_v40 }
  0x53   :  { %428 = vmatpush2.bf16.msra.mxu0 %v4172_v44 }
  0x54   :  { %429 = vmatprep.subr.bf16.mxu0 %v4176_v45 }
  0x55   :  { %523 = vmatmul.mubr.bf16.gmra.mxu1 %v112_v53 }
  0x56   :  { %532 = vmatprep.mubr.bf16.mxu1 %v4589_v1 }
  0x57   :  { %430 = vmatpush2.bf16.msra.mxu0 %v4178_v47 }
  0x58   :  { %431 = vmatprep.subr.bf16.mxu0 %v4182_v48 }
  0x5b   :  { %432 = vmatpush2.bf16.msra.mxu0 %v4184_v51 }
  0x5c   :  { %433 = vmatprep.subr.bf16.mxu0 %v4188_v52 }
  0x5d   :  { %533 = vmatmul.mubr.bf16.gmra.mxu1 %v115_v60 }
  0x5e   :  { %542 = vmatprep.mubr.bf16.mxu1 %v4589_v1  ;;  %v113_v1 = vpack.c.bf16 %v88_v15, %v87_v14 }
  0x5f   :  { %434 = vmatpush2.bf16.msra.mxu0 %v4190_v54 }
  0x60   :  { %435 = vmatprep.subr.bf16.mxu0 %v4194_v55 }
  0x63   :  { %436 = vmatpush2.bf16.msra.mxu0 %v4196_v58 }
  0x64   :  { %437 = vmatprep.subr.bf16.mxu0 %v4197_v59 }
  0x65   :  { %543 = vmatmul.mubr.bf16.gmra.mxu1 %v118_v7 }
  0x67   :  { %438 = vmatpush2.bf16.msra.mxu0 %v4199_v61 }
  0x6a   :  { %440 = vmatmul.mubr.bf16.vlgmr.msra.gmra.mxu0 %v107_v5 }
  0x6b   :  { %449 = vmatprep.mubr.bf16.mxu0 %v111_v6 }
  0x72   :  { %450 = vmatmul.mubr.bf16.gmra.mxu0 %v110_v12 }
  0x73   :  { %459 = vmatprep.mubr.bf16.mxu0 %v114_v13 }
  0x7a   :  { %460 = vmatmul.mubr.bf16.gmra.mxu0 %v113_v1 }
  0x7b   :  { %469 = vmatprep.mubr.bf16.mxu0 %v117_v18 }
  0x82   :  { %470 = vmatmul.mubr.bf16.gmra.mxu0 %v116_v21 }
 0x10d   :  { %v514_v22 = vpop.f32.mrf.mxu1 }
 0x10f   :  { %v516_v23 = vpop.f32.mrf.mxu1 }
 0x111   :  { %v518_v24 = vpop.f32.mrf.mxu1 }
 0x113   :  { %v520_v25 = vpop.f32.mrf.mxu1 }
 0x115   :  { %v524_v26 = vpop.f32.mrf.mxu1 }
 0x117   :  { %v526_v27 = vpop.f32.mrf.mxu1 }
 0x119   :  { %v528_v28 = vpop.f32.mrf.mxu1 }
 0x11b   :  { %v530_v30 = vpop.f32.mrf.mxu1 }
 0x11d   :  { %v534_v33 = vpop.f32.mrf.mxu1 }
 0x11f   :  { %v536_v36 = vpop.f32.mrf.mxu1 }
 0x121   :  { %v538_v39 = vpop.f32.mrf.mxu1 }
 0x123   :  { %v540_v45 = vpop.f32.mrf.mxu1 }
 0x125   :  { %v544_v53 = vpop.f32.mrf.mxu1 }
 0x127   :  { %v546_v63 = vpop.f32.mrf.mxu1 }
 0x129   :  { %v548_v13 = vpop.f32.mrf.mxu1 }
 0x12a   :  { %v441_v29 = vpop.f32.mrf.mxu0 }
 0x12b   :  { %v4689_v42 = vadd.f32 %v514_v22, %v441_v29 }
 0x12c   :  { %v443_v31 = vpop.f32.mrf.mxu0 }
 0x12d   :  { %v579_v49 = vmul.f32 %v4689_v42, %v4689_v42  ;;  %v4723_v11 = vadd.f32 %v516_v23, %v443_v31 }
 0x12e   :  { %v445_v32 = vpop.f32.mrf.mxu0 }
 0x12f   :  { %v4687_v40 = vadd.f32 %v518_v24, %v445_v32  ;;  %v580_v22 = vmul.f32 %v4723_v11, %v4723_v11 }
 0x130   :  { %v447_v34 = vpop.f32.mrf.mxu0 }
 0x131   :  { %v581_v46 = vmul.f32 %v4687_v40, %v4687_v40  ;;  %v553_v50 = vadd.f32 %v4687_v40, %v4689_v42  ;;  %v4718_v6 = vadd.f32 %v520_v25, %v447_v34 }
 0x132   :  { %v451_v35 = vpop.f32.mrf.mxu0 }
 0x133   :  { %v4691_v43 = vadd.f32 %v524_v26, %v451_v35  ;;  %v595_v55 = vadd.f32 %v581_v46, %v579_v49  ;;  %v582_v1 = vmul.f32 %v4718_v6, %v4718_v6  ;;  %v566_v32 = vadd.f32 %v4718_v6, %v4723_v11 }
 0x134   :  { %v453_v37 = vpop.f32.mrf.mxu0 }
 0x135   :  { %v583_v51 = vmul.f32 %v4691_v43, %v4691_v43  ;;  %v554_v56 = vadd.f32 %v553_v50, %v4691_v43  ;;  %v4725_v12 = vadd.f32 %v526_v27, %v453_v37  ;;  %v608_v27 = vadd.f32 %v582_v1, %v580_v22 }
 0x136   :  { %v455_v38 = vpop.f32.mrf.mxu0 }
 0x137   :  { %v4695_v47 = vadd.f32 %v528_v28, %v455_v38  ;;  %v596_v60 = vadd.f32 %v595_v55, %v583_v51  ;;  %v584_v23 = vmul.f32 %v4725_v12, %v4725_v12 }
 0x138   :  { %v457_v41 = vpop.f32.mrf.mxu0 }
 0x139   :  { %v585_v57 = vmul.f32 %v4695_v47, %v4695_v47  ;;  %v555_v61 = vadd.f32 %v554_v56, %v4695_v47  ;;  %v4732_v18 = vadd.f32 %v530_v30, %v457_v41 }
 0x13a   :  { %v461_v44 = vpop.f32.mrf.mxu0 }
 0x13b   :  { %v4703_v52 = vadd.f32 %v534_v33, %v461_v44  ;;  %v597_v2 = vadd.f32 %v596_v60, %v585_v57  ;;  %v586_v28 = vmul.f32 %v4732_v18, %v4732_v18  ;;  %v609_v33 = vadd.f32 %v608_v27, %v584_v23  ;;  %v550_v44 = vpop.f32.mrf.mxu1 }
 0x13c   :  { %v463_v48 = vpop.f32.mrf.mxu0 }
 0x13d   :  { %v587_v62 = vmul.f32 %v4703_v52, %v4703_v52  ;;  %v556_v3 = vadd.f32 %v555_v61, %v4703_v52  ;;  %v4741_v24 = vadd.f32 %v536_v36, %v463_v48  ;;  %v610_v41 = vadd.f32 %v609_v33, %v586_v28 }
 0x13e   :  { %v465_v54 = vpop.f32.mrf.mxu0 }
 0x13f   :  { %v4708_v58 = vadd.f32 %v538_v39, %v465_v54  ;;  %v598_v8 = vadd.f32 %v597_v2, %v587_v62  ;;  %v588_v35 = vmul.f32 %v4741_v24, %v4741_v24  ;;  %v567_v39 = vadd.f32 %v566_v32, %v4725_v12 }
 0x140   :  { %v467_v59 = vpop.f32.mrf.mxu0 }
 0x141   :  { %v589_v4 = vmul.f32 %v4708_v58, %v4708_v58  ;;  %v557_v9 = vadd.f32 %v556_v3, %v4708_v58  ;;  %v4745_v29 = vadd.f32 %v540_v45, %v467_v59  ;;  %v568_v50 = vadd.f32 %v567_v39, %v4732_v18 }
 0x142   :  { %v471_v0 = vpop.f32.mrf.mxu0  ;;  %v611_v51 = vadd.f32 %v610_v41, %v588_v35 }
 0x143   :  { %v4716_v5 = vadd.f32 %v544_v53, %v471_v0  ;;  %v599_v15 = vadd.f32 %v598_v8, %v589_v4  ;;  %v590_v45 = vmul.f32 %v4745_v29, %v4745_v29  ;;  %v569_v56 = vadd.f32 %v568_v50, %v4741_v24 }
 0x144   :  { %v473_v7 = vpop.f32.mrf.mxu0 }
 0x145   :  { %v591_v10 = vmul.f32 %v4716_v5, %v4716_v5  ;;  %v558_v16 = vadd.f32 %v557_v9, %v4716_v5  ;;  %v4751_v36 = vadd.f32 %v546_v63, %v473_v7  ;;  %v612_v57 = vadd.f32 %v611_v51, %v590_v45 }
 0x146   :  { %v475_v14 = vpop.f32.mrf.mxu0  ;;  %v570_v61 = vadd.f32 %v569_v56, %v4745_v29 }
 0x147   :  { %v4728_v17 = vadd.f32 %v548_v13, %v475_v14  ;;  %v600_v19 = vadd.f32 %v599_v15, %v591_v10  ;;  %v592_v53 = vmul.f32 %v4751_v36, %v4751_v36 }
 0x148   :  { %v477_v34 = vpop.f32.mrf.mxu0  ;;  %v571_v2 = vadd.f32 %v570_v61, %v4751_v36 }
 0x149   :  { %v559_v20 = vadd.f32 %v558_v16, %v4728_v17  ;;  %v593_v21 = vmul.f32 %v4728_v17, %v4728_v17  ;;  %v4756_v49 = vadd.f32 %v550_v44, %v477_v34  ;;  %v613_v62 = vadd.f32 %v612_v57, %v592_v53 }
 0x14b   :  { %v560_v25 = vrot.slane %v559_v20, 4  ;;  %v601_v26 = vadd.f32 %v600_v19, %v593_v21  ;;  %v594_v60 = vmul.f32 %v4756_v49, %v4756_v49  ;;  %v572_v7 = vadd.f32 %v571_v2, %v4756_v49 }
 0x14d   :  { %v561_v30 = vadd.f32 %v560_v25, %v559_v20  ;;  %v602_v31 = vrot.slane %v601_v26, 4  ;;  %v614_v4 = vadd.f32 %v613_v62, %v594_v60  ;;  %v573_v9 = vrot.slane %v572_v7, 4 }
 0x14e   :  { %v760_v25 = vlaneseq }
 0x14f   :  { %v562_v37 = vrot.slane %v561_v30, 2  ;;  %v603_v38 = vadd.f32 %v602_v31, %v601_v26  ;;  %v615_v8 = vrot.slane %v614_v4, 4  ;;  %v574_v13 = vadd.f32 %v573_v9, %v572_v7 }
 0x150   :  { %vm980_vm1 = vcmp.lt.s32.totalorder %v760_v25, 256  ;;  %v4603_v26 = vmov 0.0  }
 0x151   :  { %v563_v46 = vadd.f32 %v562_v37, %v561_v30  ;;  %v604_v48 = vrot.slane %v603_v38, 2  ;;  %v616_v10 = vadd.f32 %v615_v8, %v614_v4  ;;  %v575_v15 = vrot.slane %v574_v13, 2  ;;  %982 = vst.msk [vmem:[#allocation2] ss:$8 sm:$0x3] %vm980_vm1, %v4603_v26 }
 0x152   :  { %1027 = vst.msk [vmem:[#allocation2 + $0x41] ss:$8 sm:$0x3] %vm980_vm1, %v4603_v26  ;;  %1030 = vst.msk [vmem:[#allocation2 + $0x42] ss:$8 sm:$0x3] %vm980_vm1, %v4603_v26 }
 0x153   :  { %v564_v54 = vrot.slane %v563_v46, 1  ;;  %v605_v55 = vadd.f32 %v604_v48, %v603_v38  ;;  %v617_v14 = vrot.slane %v616_v10, 2  ;;  %v576_v1 = vadd.f32 %v575_v15, %v574_v13  ;;  %1076 = vst.msk [vmem:[#allocation2 + $0x83] ss:$8 sm:$0x3] %vm980_vm1, %v4603_v26 }
 0x154   :  { %vm855_vm1 = vcmask 982016  }
 0x155   :  { %v606_v59 = vrot.slane %v605_v55, 1  ;;  %v565_v63 = vadd.f32 %v564_v54, %v563_v46  ;;  %v618_v16 = vadd.f32 %v617_v14, %v616_v10  ;;  %v577_v20 = vrot.slane %v576_v1, 1 }
 0x157   :  { %v607_v0 = vadd.f32 %v606_v59, %v605_v55  ;;  %v619_v19 = vrot.slane %v618_v16, 1  ;;  %v578_v22 = vadd.f32 %v577_v20, %v576_v1 }
 0x159   :  { %v4767_v3 = vsel %vm621_vm0, %v565_v63, %v607_v0  ;;  %v620_v21 = vadd.f32 %v619_v19, %v618_v16 }
 0x15a   :  { %633 = vrot.lane.b32.xlu1 %v4767_v3, %s4590_s0  ;;  %625 = vrot.lane.b32.xlu0 %v4767_v3, %s4591_s4 }
 0x15b   :  { %v623_v23 = vsel %vm621_vm0, %v578_v22, %v620_v21 }
 0x15e   :  { %637 = vrot.lane.b32.xlu1 %v4767_v3, %s4592_s17  ;;  %629 = vrot.lane.b32.xlu0 %v4767_v3, %s4593_s18 }
 0x162   :  { %645 = vrot.lane.b32.xlu1 %v4767_v3, %s4594_s19  ;;  %641 = vrot.lane.b32.xlu0 %v4767_v3, %s4595_s20 }
 0x166   :  { %653 = vrot.lane.b32.xlu1 %v4767_v3, %s4596_s21  ;;  %649 = vrot.lane.b32.xlu0 %v4767_v3, %s4597_s22 }
 0x16a   :  { %661 = vrot.lane.b32.xlu1 %v4767_v3, %s4598_s23  ;;  %657 = vrot.lane.b32.xlu0 %v4767_v3, %s4599_s24 }
 0x16e   :  { %669 = vrot.lane.b32.xlu1 %v4767_v3, %s4600_s8  ;;  %665 = vrot.lane.b32.xlu0 %v4767_v3, %s4601_s26 }
 0x172   :  { %677 = vrot.lane.b32.xlu1 %v4767_v3, %s4588_s14  ;;  %673 = vrot.lane.b32.xlu0 %v4767_v3, %s4602_s27 }
 0x176   :  { %681 = vrot.lane.b32.xlu0 %v4767_v3, %s4585_s25  ;;  %687 = vrot.lane.b32.xlu1 %v623_v23, %s4591_s4 }
 0x17a   :  { %691 = vrot.lane.b32.xlu0 %v623_v23, %s4593_s18  ;;  %695 = vrot.lane.b32.xlu1 %v623_v23, %s4590_s0 }
 0x17e   :  { %699 = vrot.lane.b32.xlu0 %v623_v23, %s4592_s17  ;;  %703 = vrot.lane.b32.xlu1 %v623_v23, %s4595_s20 }
 0x182   :  { %707 = vrot.lane.b32.xlu0 %v623_v23, %s4594_s19  ;;  %711 = vrot.lane.b32.xlu1 %v623_v23, %s4597_s22 }
 0x186   :  { %715 = vrot.lane.b32.xlu0 %v623_v23, %s4596_s21  ;;  %719 = vrot.lane.b32.xlu1 %v623_v23, %s4599_s24 }
 0x18a   :  { %723 = vrot.lane.b32.xlu0 %v623_v23, %s4598_s23  ;;  %727 = vrot.lane.b32.xlu1 %v623_v23, %s4601_s26 }
 0x18e   :  { %731 = vrot.lane.b32.xlu0 %v623_v23, %s4600_s8  ;;  %735 = vrot.lane.b32.xlu1 %v623_v23, %s4602_s27 }
 0x192   :  { %739 = vrot.lane.b32.xlu0 %v623_v23, %s4588_s14  ;;  %743 = vrot.lane.b32.xlu1 %v623_v23, %s4585_s25 }
 0x1cc   :  { %v634_v27 = vpop.permute.xlu1 %633  ;;  %v626_v28 = vpop.permute.xlu0 %625 }
 0x1cd   :  { %v628_v30 = vadd.f32 %v626_v28, %v4767_v3 }
 0x1d0   :  { %v638_v31 = vpop.permute.xlu1 %637  ;;  %v630_v32 = vpop.permute.xlu0 %629 }
 0x1d1   :  { %v632_v33 = vadd.f32 %v630_v32, %v628_v30 }
 0x1d3   :  { %v636_v34 = vadd.f32 %v634_v27, %v632_v33 }
 0x1d4   :  { %v646_v35 = vpop.permute.xlu1 %645  ;;  %v642_v37 = vpop.permute.xlu0 %641 }
 0x1d5   :  { %v640_v38 = vadd.f32 %v638_v31, %v636_v34 }
 0x1d7   :  { %v644_v39 = vadd.f32 %v642_v37, %v640_v38 }
 0x1d8   :  { %v654_v41 = vpop.permute.xlu1 %653  ;;  %v650_v44 = vpop.permute.xlu0 %649 }
 0x1d9   :  { %v648_v45 = vadd.f32 %v646_v35, %v644_v39 }
 0x1db   :  { %v652_v46 = vadd.f32 %v650_v44, %v648_v45 }
 0x1dc   :  { %v662_v48 = vpop.permute.xlu1 %661  ;;  %v658_v50 = vpop.permute.xlu0 %657 }
 0x1dd   :  { %v656_v51 = vadd.f32 %v654_v41, %v652_v46 }
 0x1df   :  { %v660_v53 = vadd.f32 %v658_v50, %v656_v51 }
 0x1e0   :  { %v670_v54 = vpop.permute.xlu1 %669  ;;  %v666_v55 = vpop.permute.xlu0 %665 }
 0x1e1   :  { %v664_v56 = vadd.f32 %v662_v48, %v660_v53 }
 0x1e3   :  { %v668_v57 = vadd.f32 %v666_v55, %v664_v56  ;;  %v4604_v55 = vmov 1966171168  }
 0x1e4   :  { %v678_v59 = vpop.permute.xlu1 %677  ;;  %v674_v60 = vpop.permute.xlu0 %673  ;;  %v758_v56 = vunpack.c.l.s4 %v4604_v55  ;;  %v4247_v55 = vld [vmem:[#allocation9 + $0x204] ss:$16 sps:$4 sm:$0xff]  }
 0x1e5   :  { %v672_v61 = vadd.f32 %v670_v54, %v668_v57 }
 0x1e6   :  { %v759_v57 = vunpack.c.0.s8 %v758_v56  ;;  %v4245_v56 = vld [vmem:[#allocation9 + $0x200] ss:$16 sps:$4 sm:$0xff]  }
 0x1e7   :  { %v676_v62 = vadd.f32 %v674_v60, %v672_v61 }
 0x1e8   :  { %v682_v63 = vpop.permute.xlu0 %681  ;;  %v688_v0 = vpop.permute.xlu1 %687 }
 0x1e9   :  { %v680_v2 = vadd.f32 %v678_v59, %v676_v62  ;;  %v4823_v59 = vshrl.u32 %v760_v25, 7  ;;  %v774_v25 = vld [vmem:[%s6016_s3] sm:$0x1] }
 0x1eb   :  { %v684_v3 = vadd.f32 %v682_v63, %v680_v2  ;;  %v4826_v60 = vsub.s32 %v759_v57, %v4823_v59  ;;  %v4833_v2 = vsub.s32 0, %v4823_v59  ;;  %v4250_v57 = vld [vmem:[#allocation9 + $0x1e4] ss:$16 sps:$4 sm:$0xff]  }
 0x1ec   :  { %v692_v4 = vpop.permute.xlu0 %691  ;;  %v696_v7 = vpop.permute.xlu1 %695 }
 0x1ed   :  { %v685_v8 = vadd.f32 %v684_v3, %v623_v23 }
 0x1ef   :  { %v690_v9 = vadd.f32 %v688_v0, %v685_v8  ;;  %v753_v0 = vld [vmem:[%s6015_s2] sm:$0x1] }
 0x1f0   :  { %v700_v10 = vpop.permute.xlu0 %699  ;;  %v704_v13 = vpop.permute.xlu1 %703 }
 0x1f1   :  { %v694_v14 = vadd.f32 %v692_v4, %v690_v9 }
 0x1f3   :  { %v698_v15 = vadd.f32 %v696_v7, %v694_v14  ;;  %v4202_v7 = vld [vmem:[#allocation9 + $0xe4] ss:$16 sps:$4 sm:$0xff]  }
 0x1f4   :  { %v708_v16 = vpop.permute.xlu0 %707  ;;  %v712_v1 = vpop.permute.xlu1 %711  ;;  %2454 = vmatprep.subr.bf16.mxu1 %v4202_v7  ;;  %v4205_v14 = vld [vmem:[#allocation9 + $0x2e4] ss:$16 sps:$4 sm:$0xff]   ;;  %v4257_v7 = vld [vmem:[#allocation9 + $0x3c0] ss:$16 sps:$4 sm:$0xff]  }
 0x1f5   :  { %v702_v19 = vadd.f32 %v700_v10, %v698_v15  ;;  %v4200_v10 = vld [vmem:[#allocation9 + $0xe0] ss:$16 sps:$4 sm:$0xff]   ;;  %2527 = vmatprep.subr.bf16.mxu0 %v4205_v14  ;;  %v4265_v14 = vld [vmem:[#allocation9 + $0x3a4] ss:$16 sps:$4 sm:$0xff]  }
 0x1f6   :  { %2455 = vmatpush1.bf16.msra.mxu1 %v4200_v10  ;;  %v4203_v15 = vld [vmem:[#allocation9 + $0x2e0] ss:$16 sps:$4 sm:$0xff]  }
 0x1f7   :  { %v706_v20 = vadd.f32 %v704_v13, %v702_v19  ;;  %v4206_v19 = vld [vmem:[#allocation9 + $0xc0] ss:$16 sps:$4 sm:$0xff]   ;;  %2528 = vmatpush1.bf16.msra.mxu0 %v4203_v15 }
 0x1f8   :  { %v716_v21 = vpop.permute.xlu0 %715  ;;  %v720_v22 = vpop.permute.xlu1 %719  ;;  %v4260_v10 = vld [vmem:[#allocation9 + $0x1a0] ss:$16 sps:$4 sm:$0xff]  }
 0x1f9   :  { %v710_v27 = vadd.f32 %v708_v16, %v706_v20  ;;  %v4208_v16 = vld [vmem:[#allocation9 + $0xc4] ss:$16 sps:$4 sm:$0xff]   ;;  %v4263_v15 = vld [vmem:[#allocation9 + $0x3a0] ss:$16 sps:$4 sm:$0xff]  }
 0x1fa   :  { %2456 = vmatprep.subr.bf16.mxu1 %v4208_v16  ;;  %v4211_v20 = vld [vmem:[#allocation9 + $0x2c4] ss:$16 sps:$4 sm:$0xff]  }
 0x1fb   :  { %v714_v28 = vadd.f32 %v712_v1, %v710_v27  ;;  %2457 = vmatpush1.bf16.msra.mxu1 %v4206_v19  ;;  %2529 = vmatprep.subr.bf16.mxu0 %v4211_v20  ;;  %v4212_v27 = vld [vmem:[#allocation9 + $0xa0] ss:$16 sps:$4 sm:$0xff]   ;;  %v4268_v16 = vld [vmem:[#allocation9 + $0x184] ss:$16 sps:$4 sm:$0xff]  }
 0x1fc   :  { %v724_v30 = vpop.permute.xlu0 %723  ;;  %v728_v32 = vpop.permute.xlu1 %727  ;;  %v4266_v19 = vld [vmem:[#allocation9 + $0x180] ss:$16 sps:$4 sm:$0xff]   ;;  %v4271_v20 = vld [vmem:[#allocation9 + $0x384] ss:$16 sps:$4 sm:$0xff]  }
 0x1fd   :  { %v718_v31 = vadd.f32 %v716_v21, %v714_v28  ;;  %v4209_v21 = vld [vmem:[#allocation9 + $0x2c0] ss:$16 sps:$4 sm:$0xff]   ;;  %v4217_v28 = vld [vmem:[#allocation9 + $0x2a4] ss:$16 sps:$4 sm:$0xff]  }
 0x1fe   :  { %2530 = vmatpush1.bf16.msra.mxu0 %v4209_v21  ;;  %v4269_v21 = vld [vmem:[#allocation9 + $0x380] ss:$16 sps:$4 sm:$0xff]  }
 0x1ff   :  { %v722_v33 = vadd.f32 %v720_v22, %v718_v31  ;;  %v4214_v22 = vld [vmem:[#allocation9 + $0xa4] ss:$16 sps:$4 sm:$0xff]   ;;  %2531 = vmatprep.subr.bf16.mxu0 %v4217_v28 }
 0x200   :  { %v732_v35 = vpop.permute.xlu0 %731  ;;  %v736_v37 = vpop.permute.xlu1 %735  ;;  %2458 = vmatprep.subr.bf16.mxu1 %v4214_v22  ;;  %v4220_v31 = vld [vmem:[#allocation9 + $0x84] ss:$16 sps:$4 sm:$0xff]   ;;  %v4272_v22 = vld [vmem:[#allocation9 + $0x160] ss:$16 sps:$4 sm:$0xff]  }
 0x201   :  { %v726_v34 = vadd.f32 %v724_v30, %v722_v33  ;;  %2459 = vmatpush1.bf16.msra.mxu1 %v4212_v27  ;;  %v4215_v30 = vld [vmem:[#allocation9 + $0x2a0] ss:$16 sps:$4 sm:$0xff]   ;;  %v4223_v33 = vld [vmem:[#allocation9 + $0x284] ss:$16 sps:$4 sm:$0xff]  }
 0x202   :  { %2460 = vmatprep.subr.bf16.mxu1 %v4220_v31  ;;  %2532 = vmatpush1.bf16.msra.mxu0 %v4215_v30  ;;  %v4274_v27 = vld [vmem:[#allocation9 + $0x164] ss:$16 sps:$4 sm:$0xff]   ;;  %v4275_v30 = vld [vmem:[#allocation9 + $0x360] ss:$16 sps:$4 sm:$0xff]  }
 0x203   :  { %v730_v23 = vadd.f32 %v728_v32, %v726_v34  ;;  %v4218_v32 = vld [vmem:[#allocation9 + $0x80] ss:$16 sps:$4 sm:$0xff]   ;;  %2533 = vmatprep.subr.bf16.mxu0 %v4223_v33  ;;  %v4277_v28 = vld [vmem:[#allocation9 + $0x364] ss:$16 sps:$4 sm:$0xff]  }
 0x204   :  { %v740_v41 = vpop.permute.xlu0 %739  ;;  %v744_v45 = vpop.permute.xlu1 %743  ;;  %v4221_v34 = vld [vmem:[#allocation9 + $0x280] ss:$16 sps:$4 sm:$0xff]   ;;  %v4280_v31 = vld [vmem:[#allocation9 + $0x144] ss:$16 sps:$4 sm:$0xff]  }
 0x205   :  { %v734_v38 = vadd.f32 %v732_v35, %v730_v23  ;;  %2461 = vmatpush1.bf16.msra.mxu1 %v4218_v32  ;;  %v4226_v35 = vld [vmem:[#allocation9 + $0x64] ss:$16 sps:$4 sm:$0xff]   ;;  %v4224_v23 = vld [vmem:[#allocation9 + $0x60] ss:$16 sps:$4 sm:$0xff]  }
 0x206   :  { %2462 = vmatprep.subr.bf16.mxu1 %v4226_v35  ;;  %2534 = vmatpush1.bf16.msra.mxu0 %v4221_v34  ;;  %v4278_v32 = vld [vmem:[#allocation9 + $0x140] ss:$16 sps:$4 sm:$0xff]   ;;  %v4283_v33 = vld [vmem:[#allocation9 + $0x344] ss:$16 sps:$4 sm:$0xff]  }
 0x207   :  { %v738_v39 = vadd.f32 %v736_v37, %v734_v38  ;;  %v4229_v37 = vld [vmem:[#allocation9 + $0x264] ss:$16 sps:$4 sm:$0xff]   ;;  %v4227_v38 = vld [vmem:[#allocation9 + $0x260] ss:$16 sps:$4 sm:$0xff]  }
 0x208   :  { %2535 = vmatprep.subr.bf16.mxu0 %v4229_v37  ;;  %v4286_v34 = vld [vmem:[#allocation9 + $0x124] ss:$16 sps:$4 sm:$0xff]   ;;  %v4281_v35 = vld [vmem:[#allocation9 + $0x340] ss:$16 sps:$4 sm:$0xff]  }
 0x209   :  { %v742_v44 = vadd.f32 %v740_v41, %v738_v39  ;;  %2463 = vmatpush1.bf16.msra.mxu1 %v4224_v23  ;;  %v4232_v39 = vld [vmem:[#allocation9 + $0x44] ss:$16 sps:$4 sm:$0xff]   ;;  %v4230_v41 = vld [vmem:[#allocation9 + $0x40] ss:$16 sps:$4 sm:$0xff]  }
 0x20a   :  { %2464 = vmatprep.subr.bf16.mxu1 %v4232_v39  ;;  %2536 = vmatpush1.bf16.msra.mxu0 %v4227_v38  ;;  %v4284_v23 = vld [vmem:[#allocation9 + $0x120] ss:$16 sps:$4 sm:$0xff]   ;;  %v4289_v37 = vld [vmem:[#allocation9 + $0x324] ss:$16 sps:$4 sm:$0xff]  }
 0x20b   :  { %v746_v46 = vadd.f32 %v744_v45, %v742_v44  ;;  %v4235_v44 = vld [vmem:[#allocation9 + $0x244] ss:$16 sps:$4 sm:$0xff]   ;;  %v4233_v45 = vld [vmem:[#allocation9 + $0x240] ss:$16 sps:$4 sm:$0xff]  }
 0x20c   :  { %2537 = vmatprep.subr.bf16.mxu0 %v4235_v44  ;;  %v4292_v38 = vld [vmem:[#allocation9 + $0x104] ss:$16 sps:$4 sm:$0xff]   ;;  %v4287_v39 = vld [vmem:[#allocation9 + $0x320] ss:$16 sps:$4 sm:$0xff]  }
 0x20d   :  { %v747_v48 = vmul.f32 0.00048828125, %v746_v46  ;;  %2465 = vmatpush1.bf16.msra.mxu1 %v4230_v41  ;;  %v4238_v46 = vld [vmem:[#allocation9 + $0x24] ss:$16 sps:$4 sm:$0xff]   ;;  %v4293_v44 = vld [vmem:[#allocation9 + $0x300] ss:$16 sps:$4 sm:$0xff]  }
 0x20e   :  { %2466 = vmatprep.subr.bf16.mxu1 %v4238_v46  ;;  %2538 = vmatpush1.bf16.msra.mxu0 %v4233_v45  ;;  %v4295_v41 = vld [vmem:[#allocation9 + $0x304] ss:$16 sps:$4 sm:$0xff]   ;;  %v4301_v46 = vld [vmem:[#allocation9 + $0xec] ss:$16 sps:$4 sm:$0xff]  }
 0x20f   :  { %v748_v50 = vmul.f32 %v747_v48, %v747_v48  ;;  %v4298_v45 = vld [vmem:[#allocation9 + $0x4e4] ss:$16 sps:$4 sm:$0xff]  }
 0x211   :  { %v750_v51 = vrot.slane %v748_v50, 7  ;;  %v4241_v50 = vld [vmem:[#allocation9 + $0x224] ss:$16 sps:$4 sm:$0xff]  }
 0x212   :  { %2539 = vmatprep.subr.bf16.mxu0 %v4241_v50 }
 0x213   :  { %v752_v53 = vsub.f32 %v747_v48, %v750_v51  ;;  %v4239_v51 = vld [vmem:[#allocation9 + $0x220] ss:$16 sps:$4 sm:$0xff]  }
 0x214   :  { %2540 = vmatpush1.bf16.msra.mxu0 %v4239_v51 }
 0x215   :  { %v754_v54 = vadd.f32 1e-05, %v752_v53  ;;  %v4244_v53 = vld [vmem:[#allocation9 + $0x4] ss:$16 sps:$4 sm:$0xff]   ;;  %2541 = vmatprep.subr.bf16.mxu0 %v4247_v55 }
 0x217   :  { %4488 = vrsqrt.f32 %v754_v54  ;;  %v4242_v54 = vld [vmem:[#allocation9] ss:$16 sps:$4 sm:$0xff]  }
 0x218   :  { %2542 = vmatpush1.bf16.msra.mxu0 %v4245_v56 }
 0x224   :  { %v4489_v61 = vpop.eup %4488 }
 0x225   :  { %v763_v62 = vrot.slane %v4489_v61, %v4826_v60  ;;  %v4248_v61 = vld [vmem:[#allocation9 + $0x1e0] ss:$16 sps:$4 sm:$0xff]  }
 0x227   :  { %v764_v63 = vcombine.high %v763_v62, %v763_v62  ;;  %v4253_v62 = vld [vmem:[#allocation9 + $0x3e4] ss:$16 sps:$4 sm:$0xff]  }
 0x228   :  { %2543 = vmatprep.subr.bf16.mxu0 %v4253_v62 }
 0x229   :  { %v771_v3 = vrot.slane %v764_v63, %v4826_v60  ;;  %v4251_v63 = vld [vmem:[#allocation9 + $0x3e0] ss:$16 sps:$4 sm:$0xff]  }
 0x22a   :  { %2544 = vmatpush2.bf16.msra.mxu0 %v4251_v63 }
 0x22b   :  { %v4836_v4 = vmul.f32 %v771_v3, %v753_v0  ;;  %v4256_v0 = vld [vmem:[#allocation9 + $0x1c4] ss:$16 sps:$4 sm:$0xff]   ;;  %v4254_v3 = vld [vmem:[#allocation9 + $0x1c0] ss:$16 sps:$4 sm:$0xff]  }
 0x22d   :  { %v775_v8 = vmul.f32 %v4836_v4, %v747_v48  ;;  %v4844_v9 = vrot.slane %v4836_v4, %v4833_v2  ;;  %v4236_v48 = vld [vmem:[#allocation9 + $0x20] ss:$16 sps:$4 sm:$0xff]  }
 0x22e   :  { %2467 = vmatpush1.bf16.msra.mxu1 %v4236_v48 }
 0x22f   :  { %v4846_v13 = vsub.f32 %v774_v25, %v775_v8  ;;  %785 = vrot.lane.b32.xlu1 %v4844_v9, %s4588_s14  ;;  %782 = vrot.lane.b32.xlu0 %v4844_v9, %s4585_s25  ;;  %v4259_v25 = vld [vmem:[#allocation9 + $0x3c4] ss:$16 sps:$4 sm:$0xff]  }
 0x230   :  { %2468 = vmatprep.subr.bf16.mxu1 %v4244_v53  ;;  %v4262_v8 = vld [vmem:[#allocation9 + $0x1a4] ss:$16 sps:$4 sm:$0xff]   ;;  %2545 = vmatprep.subr.bf16.mxu0 %v4259_v25 }
 0x231   :  { %v4854_v1 = vrot.slane %v4846_v13, %v4833_v2  ;;  %2546 = vmatpush2.bf16.msra.mxu0 %v4257_v7 }
 0x232   :  { %2469 = vmatpush1.bf16.msra.mxu1 %v4242_v54  ;;  %2547 = vmatprep.subr.bf16.mxu0 %v4265_v14 }
 0x233   :  { %788 = vrot.lane.b32.xlu0 %v4844_v9, %s4602_s27  ;;  %862 = vrot.lane.b32.xlu1 %v4854_v1, %s4585_s25 }
 0x234   :  { %2470 = vmatprep.subr.bf16.mxu1 %v4250_v57 }
 0x235   :  { %2548 = vmatpush2.bf16.msra.mxu0 %v4263_v15 }
 0x236   :  { %2471 = vmatpush2.bf16.msra.mxu1 %v4248_v61  ;;  %2549 = vmatprep.subr.bf16.mxu0 %v4271_v20 }
 0x237   :  { %791 = vrot.lane.b32.xlu0 %v4844_v9, %s4600_s8  ;;  %865 = vrot.lane.b32.xlu1 %v4854_v1, %s4588_s14 }
 0x238   :  { %2472 = vmatprep.subr.bf16.mxu1 %v4256_v0 }
 0x239   :  { %2550 = vmatpush2.bf16.msra.mxu0 %v4269_v21 }
 0x23a   :  { %2473 = vmatpush2.bf16.msra.mxu1 %v4254_v3  ;;  %2551 = vmatprep.subr.bf16.mxu0 %v4277_v28 }
 0x23b   :  { %794 = vrot.lane.b32.xlu0 %v4844_v9, %s4601_s26  ;;  %868 = vrot.lane.b32.xlu1 %v4854_v1, %s4602_s27 }
 0x23c   :  { %2474 = vmatprep.subr.bf16.mxu1 %v4262_v8 }
 0x23d   :  { %2552 = vmatpush2.bf16.msra.mxu0 %v4275_v30 }
 0x23e   :  { %2475 = vmatpush2.bf16.msra.mxu1 %v4260_v10  ;;  %2553 = vmatprep.subr.bf16.mxu0 %v4283_v33 }
 0x23f   :  { %797 = vrot.lane.b32.xlu0 %v4844_v9, %s4598_s23  ;;  %871 = vrot.lane.b32.xlu1 %v4854_v1, %s4600_s8 }
 0x240   :  { %2476 = vmatprep.subr.bf16.mxu1 %v4268_v16 }
 0x241   :  { %2554 = vmatpush2.bf16.msra.mxu0 %v4281_v35 }
 0x242   :  { %2477 = vmatpush2.bf16.msra.mxu1 %v4266_v19  ;;  %2555 = vmatprep.subr.bf16.mxu0 %v4289_v37 }
 0x243   :  { %800 = vrot.lane.b32.xlu0 %v4844_v9, %s4599_s24  ;;  %874 = vrot.lane.b32.xlu1 %v4854_v1, %s4601_s26 }
 0x244   :  { %2478 = vmatprep.subr.bf16.mxu1 %v4274_v27 }
 0x245   :  { %2556 = vmatpush2.bf16.msra.mxu0 %v4287_v39 }
 0x246   :  { %2479 = vmatpush2.bf16.msra.mxu1 %v4272_v22  ;;  %2557 = vmatprep.subr.bf16.mxu0 %v4295_v41 }
 0x247   :  { %803 = vrot.lane.b32.xlu0 %v4844_v9, %s4596_s21  ;;  %877 = vrot.lane.b32.xlu1 %v4854_v1, %s4598_s23 }
 0x248   :  { %2480 = vmatprep.subr.bf16.mxu1 %v4280_v31 }
 0x249   :  { %2558 = vmatpush2.bf16.msra.mxu0 %v4293_v44 }
 0x24a   :  { %2481 = vmatpush2.bf16.msra.mxu1 %v4278_v32  ;;  %2673 = vmatprep.subr.bf16.mxu0 %v4301_v46 }
 0x24b   :  { %806 = vrot.lane.b32.xlu0 %v4844_v9, %s4597_s22  ;;  %880 = vrot.lane.b32.xlu1 %v4854_v1, %s4599_s24 }
 0x24c   :  { %2482 = vmatprep.subr.bf16.mxu1 %v4286_v34 }
 0x24e   :  { %2483 = vmatpush2.bf16.msra.mxu1 %v4284_v23 }
 0x24f   :  { %809 = vrot.lane.b32.xlu0 %v4844_v9, %s4594_s19  ;;  %883 = vrot.lane.b32.xlu1 %v4854_v1, %s4596_s21 }
 0x250   :  { %2484 = vmatprep.subr.bf16.mxu1 %v4292_v38 }
 0x253   :  { %812 = vrot.lane.b32.xlu0 %v4844_v9, %s4595_s20  ;;  %886 = vrot.lane.b32.xlu1 %v4854_v1, %s4597_s22 }
 0x257   :  { %815 = vrot.lane.b32.xlu0 %v4844_v9, %s4592_s17  ;;  %889 = vrot.lane.b32.xlu1 %v4854_v1, %s4594_s19 }
 0x25b   :  { %818 = vrot.lane.b32.xlu0 %v4844_v9, %s4590_s0  ;;  %892 = vrot.lane.b32.xlu1 %v4854_v1, %s4595_s20 }
 0x25f   :  { %821 = vrot.lane.b32.xlu0 %v4844_v9, %s4593_s18  ;;  %895 = vrot.lane.b32.xlu1 %v4854_v1, %s4592_s17 }
 0x263   :  { %824 = vrot.lane.b32.xlu0 %v4844_v9, %s4591_s4  ;;  %898 = vrot.lane.b32.xlu1 %v4854_v1, %s4590_s0  ;;  %v4290_v9 = vld [vmem:[#allocation9 + $0x100] ss:$16 sps:$4 sm:$0xff]  }
 0x264   :  { %2485 = vmatpush2.bf16.msra.mxu1 %v4290_v9 }
 0x265   :  { %2600 = vmatprep.subr.bf16.mxu1 %v4298_v45 }
 0x267   :  { %901 = vrot.lane.b32.xlu0 %v4854_v1, %s4593_s18  ;;  %904 = vrot.lane.b32.xlu1 %v4854_v1, %s4591_s4 }
 0x2a1   :  { %v786_v48 = vpop.permute.xlu1 %785  ;;  %v783_v50 = vpop.permute.xlu0 %782 }
 0x2a2   :  { %v828_v16 = vsel %vm827_vm2, %v4836_v4, %v783_v50 }
 0x2a3   :  { %v830_v19 = vsel %vm829_vm3, %v828_v16, %v786_v48 }
 0x2a5   :  { %v789_v51 = vpop.permute.xlu0 %788  ;;  %v863_v53 = vpop.permute.xlu1 %862 }
 0x2a6   :  { %v832_v22 = vsel %vm831_vm4, %v830_v19, %v789_v51  ;;  %v907_v4 = vsel %vm827_vm2, %v4846_v13, %v863_v53  ;;  %vm1151_vm2 = vcmask 1046528  }
 0x2a9   :  { %v792_v54 = vpop.permute.xlu0 %791  ;;  %v866_v1 = vpop.permute.xlu1 %865 }
 0x2aa   :  { %v834_v27 = vsel %vm833_vm5, %v832_v22, %v792_v54  ;;  %v908_v33 = vsel %vm829_vm3, %v907_v4, %v866_v1 }
 0x2ad   :  { %v795_v55 = vpop.permute.xlu0 %794  ;;  %v869_v56 = vpop.permute.xlu1 %868 }
 0x2ae   :  { %v836_v28 = vsel %vm835_vm6, %v834_v27, %v795_v55  ;;  %v909_v35 = vsel %vm831_vm4, %v908_v33, %v869_v56  ;;  %vm1040_vm4 = vcmask 1042432  }
 0x2b1   :  { %v798_v57 = vpop.permute.xlu0 %797  ;;  %v872_v61 = vpop.permute.xlu1 %871 }
 0x2b2   :  { %v838_v30 = vsel %vm837_vm7, %v836_v28, %v798_v57  ;;  %v910_v37 = vsel %vm833_vm5, %v909_v35, %v872_v61 }
 0x2b5   :  { %v801_v62 = vpop.permute.xlu0 %800  ;;  %v875_v63 = vpop.permute.xlu1 %874 }
 0x2b6   :  { %v840_v34 = vsel %vm839_vm8, %v838_v30, %v801_v62  ;;  %v911_v13 = vsel %vm835_vm6, %v910_v37, %v875_v63  ;;  %vm1106_vm6 = vcmask 1045504  }
 0x2b9   :  { %v804_v0 = vpop.permute.xlu0 %803  ;;  %v878_v3 = vpop.permute.xlu1 %877 }
 0x2ba   :  { %v842_v23 = vsel %vm841_vm9, %v840_v34, %v804_v0  ;;  %v912_v44 = vsel %vm837_vm7, %v911_v13, %v878_v3 }
 0x2bd   :  { %v807_v25 = vpop.permute.xlu0 %806  ;;  %v881_v7 = vpop.permute.xlu1 %880 }
 0x2be   :  { %v844_v38 = vsel %vm843_vm10, %v842_v23, %v807_v25  ;;  %v913_v46 = vsel %vm839_vm8, %v912_v44, %v881_v7  ;;  %vm1182_vm8 = vcmask 1044480  }
 0x2c1   :  { %v810_v8 = vpop.permute.xlu0 %809  ;;  %v884_v10 = vpop.permute.xlu1 %883 }
 0x2c2   :  { %v846_v39 = vsel %vm845_vm11, %v844_v38, %v810_v8  ;;  %v914_v50 = vsel %vm841_vm9, %v913_v46, %v884_v10 }
 0x2c5   :  { %v813_v14 = vpop.permute.xlu0 %812  ;;  %v887_v15 = vpop.permute.xlu1 %886 }
 0x2c6   :  { %v848_v45 = vsel %vm847_vm12, %v846_v39, %v813_v14  ;;  %v915_v53 = vsel %vm843_vm10, %v914_v50, %v887_v15  ;;  %vm1251_vm10 = vcmask 1043456  }
 0x2c9   :  { %v816_v20 = vpop.permute.xlu0 %815  ;;  %v890_v21 = vpop.permute.xlu1 %889 }
 0x2ca   :  { %v850_v48 = vsel %vm849_vm13, %v848_v45, %v816_v20  ;;  %v916_v56 = vsel %vm845_vm11, %v915_v53, %v890_v21 }
 0x2cd   :  { %v819_v31 = vpop.permute.xlu0 %818  ;;  %v893_v32 = vpop.permute.xlu1 %892 }
 0x2ce   :  { %v852_v51 = vsel %vm851_vm14, %v850_v48, %v819_v31  ;;  %v917_v61 = vsel %vm847_vm12, %v916_v56, %v893_v32  ;;  %vm4605_vm12 = vmmov 0  }
 0x2d1   :  { %v822_v41 = vpop.permute.xlu0 %821  ;;  %v896_v9 = vpop.permute.xlu1 %895 }
 0x2d2   :  { %v854_v54 = vsel %vm853_vm15, %v852_v51, %v822_v41  ;;  %v918_v63 = vsel %vm849_vm13, %v917_v61, %v896_v9 }
 0x2d5   :  { %v825_v1 = vpop.permute.xlu0 %824  ;;  %v899_v55 = vpop.permute.xlu1 %898 }
 0x2d6   :  { %v856_v57 = vsel %vm855_vm1, %v854_v54, %v825_v1  ;;  %v919_v0 = vsel %vm851_vm14, %v918_v63, %v899_v55  ;;  %vm3638_vm14 = vcmask 7168  }
 0x2d7   :  { %v4941_v62 = vrot.slane %v856_v57, %v4833_v2 }
 0x2d9   :  { %v902_v3 = vpop.permute.xlu0 %901  ;;  %v905_v25 = vpop.permute.xlu1 %904  ;;  %v927_v10 = vmul.f32 %v4941_v62, %v4723_v11  ;;  %v929_v14 = vmul.f32 %v4941_v62, %v4718_v6  ;;  %v926_v15 = vmul.f32 %v4941_v62, %v4689_v42  ;;  %v928_v19 = vmul.f32 %v4941_v62, %v4687_v40 }
 0x2da   :  { %v920_v7 = vsel %vm853_vm15, %v919_v0, %v902_v3  ;;  %v931_v20 = vmul.f32 %v4941_v62, %v4725_v12  ;;  %v933_v21 = vmul.f32 %v4941_v62, %v4732_v18  ;;  %v930_v11 = vmul.f32 %v4941_v62, %v4691_v43 }
 0x2db   :  { %v921_v8 = vsel %vm855_vm1, %v920_v7, %v905_v25  ;;  %v932_v6 = vmul.f32 %v4941_v62, %v4695_v47  ;;  %v935_v42 = vmul.f32 %v4941_v62, %v4741_v24  ;;  %v937_v22 = vmul.f32 %v4941_v62, %v4745_v29 }
 0x2dc   :  { %v4954_v16 = vrot.slane %v921_v8, %v4833_v2  ;;  %v939_v48 = vmul.f32 %v4941_v62, %v4751_v36  ;;  %v934_v50 = vmul.f32 %v4941_v62, %v4703_v52  ;;  %v936_v63 = vmul.f32 %v4941_v62, %v4708_v58 }
 0x2dd   :  { %v938_v0 = vmul.f32 %v4941_v62, %v4716_v5  ;;  %v5014_v7 = vmul.f32 %v4941_v62, %v4756_v49  ;;  %v5018_v8 = vmul.f32 %v4941_v62, %v4728_v17 }
 0x2de   :  { %v947_v40 = vadd.f32 %v4954_v16, %v927_v10  ;;  %v949_v27 = vadd.f32 %v4954_v16, %v929_v14  ;;  %v946_v12 = vadd.f32 %v4954_v16, %v926_v15  ;;  %v948_v18 = vadd.f32 %v4954_v16, %v928_v19  ;;  %v4296_v15 = vld [vmem:[#allocation9 + $0x4e0] ss:$16 sps:$4 sm:$0xff]  }
 0x2df   :  { %v951_v43 = vadd.f32 %v4954_v16, %v931_v20  ;;  %v953_v28 = vadd.f32 %v4954_v16, %v933_v21  ;;  %v950_v47 = vadd.f32 %v4954_v16, %v930_v11  ;;  %v952_v24 = vadd.f32 %v4954_v16, %v932_v6  ;;  %v4304_v6 = vld [vmem:[#allocation9 + $0x4c4] ss:$16 sps:$4 sm:$0xff]  }
 0x2e0   :  { %v963_v4 = vmax.f32 %v947_v40, 0.0  ;;  %v965_v30 = vmax.f32 %v949_v27, 0.0  ;;  %v962_v29 = vmax.f32 %v946_v12, 0.0  ;;  %v964_v31 = vmax.f32 %v948_v18, 0.0 }
 0x2e1   :  { %v967_v32 = vmax.f32 %v951_v43, 0.0  ;;  %v969_v33 = vmax.f32 %v953_v28, 0.0  ;;  %v966_v34 = vmax.f32 %v950_v47, 0.0  ;;  %v968_v35 = vmax.f32 %v952_v24, 0.0 }
 0x2e2   :  { %v993_v23 = vrot.slane %v963_v4, 7  ;;  %v996_v37 = vrot.slane %v965_v30, 7  ;;  %v992_v38 = vrot.slane %v962_v29, 7  ;;  %v994_v13 = vrot.slane %v964_v31, 7 }
 0x2e3   :  { %v1000_v39 = vrot.slane %v967_v32, 7  ;;  %v1004_v41 = vrot.slane %v969_v33, 7  ;;  %v998_v9 = vrot.slane %v966_v34, 7  ;;  %v1002_v44 = vrot.slane %v968_v35, 7 }
 0x2e4   :  { %v4979_v45 = vsel %vm621_vm0, %v993_v23, %v996_v37  ;;  %1017 = vst [vmem:[#allocation2 + $0x8] sm:$0xfe] %v993_v23  ;;  %v4982_v46 = vsel %vm621_vm0, %v992_v38, %v994_v13  ;;  %1016 = vst [vmem:[#allocation2] sm:$0xfe] %v992_v38  ;;  %v955_v54 = vadd.f32 %v4954_v16, %v935_v42  ;;  %v4299_v38 = vld [vmem:[#allocation9 + $0xe8] ss:$16 sps:$4 sm:$0xff]  }
 0x2e5   :  { %v1156_v51 = vrot.slane %v4979_v45, 1  ;;  %v1153_v53 = vrot.slane %v4982_v46, 1  ;;  %1025 = vst [vmem:[#allocation2 + $0x48] sm:$0x1] %v1004_v41  ;;  %1024 = vst [vmem:[#allocation2 + $0x40] sm:$0x1] %v1002_v44  ;;  %v957_v1 = vadd.f32 %v4954_v16, %v937_v22  ;;  %v4993_v55 = vsel %vm621_vm0, %v996_v37, %v1000_v39 }
 0x2e6   :  { %v4996_v56 = vsel %vm621_vm0, %v1000_v39, %v1004_v41  ;;  %v4999_v36 = vsel %vm621_vm0, %v994_v13, %v998_v9  ;;  %v5002_v52 = vsel %vm621_vm0, %v998_v9, %v1002_v44  ;;  %v1160_v57 = vrot.slane %v4993_v55, 1  ;;  %v4302_v39 = vld [vmem:[#allocation9 + $0x4c0] ss:$16 sps:$4 sm:$0xff]  }
 0x2e7   :  { %v1164_v61 = vrot.slane %v4996_v56, 1  ;;  %v1225_v3 = vrot.slane %v4979_v45, 2  ;;  %v1158_v25 = vrot.slane %v4999_v36, 1  ;;  %v5022_v10 = vpack.c.bf16 %v4996_v56, %v4993_v55 }
 0x2e8   :  { %v1161_v58 = vsel %vm1151_vm2, %v1156_v51, %v1160_v57  ;;  %v1162_v5 = vrot.slane %v5002_v52, 1  ;;  %v959_v14 = vadd.f32 %v4954_v16, %v939_v48  ;;  %v971_v20 = vmax.f32 %v955_v54, 0.0 }
 0x2e9   :  { %v1159_v49 = vsel %vm1151_vm2, %v1153_v53, %v1158_v25  ;;  %v1165_v19 = vsel %vm1151_vm2, %v1160_v57, %v1164_v61  ;;  %v973_v17 = vmax.f32 %v957_v1, 0.0  ;;  %v954_v22 = vadd.f32 %v4954_v16, %v934_v50  ;;  %v4305_v1 = vld [vmem:[#allocation9 + $0xc8] ss:$16 sps:$4 sm:$0xff]   ;;  %v4310_v57 = vld [vmem:[#allocation9 + $0x4a4] ss:$16 sps:$4 sm:$0xff]  }
 0x2ea   :  { %v975_v42 = vmax.f32 %v959_v14, 0.0  ;;  %v956_v40 = vadd.f32 %v4954_v16, %v936_v63  ;;  %v958_v27 = vadd.f32 %v4954_v16, %v938_v0  ;;  %v1042_v24 = vrot.slane %v971_v20, 5  ;;  %v4308_v14 = vld [vmem:[#allocation9 + $0x4a0] ss:$16 sps:$4 sm:$0xff]  }
 0x2eb   :  { %v1079_v62 = vld [vmem:[#allocation2 + $0x8] sm:$0xff]  ;;  %v1078_v21 = vld [vmem:[#allocation2] sm:$0xff]  ;;  %v1045_v29 = vrot.slane %v973_v17, 5  ;;  %v970_v35 = vmax.f32 %v954_v22, 0.0  ;;  %v1222_v44 = vrot.slane %v4982_v46, 2  ;;  %v1229_v17 = vrot.slane %v4993_v55, 2 }
 0x2ec   :  { %v1134_v11 = vld [vmem:[#allocation2 + $0x8] sm:$0xfe]  ;;  %v5035_v12 = vpack.c.bf16 %v4979_v45, %v1079_v62  ;;  %v5038_v18 = vpack.c.bf16 %v4982_v46, %v1078_v21  ;;  %v1133_v28 = vld [vmem:[#allocation2] sm:$0xfe]  ;;  %v1136_v47 = vld [vmem:[#allocation2 + $0x48] sm:$0x1] }
 0x2ed   :  { %v1155_v43 = vrot.slane %v1134_v11, 1  ;;  %v1152_v4 = vrot.slane %v1133_v28, 1  ;;  %v1168_v30 = vrot.slane %v1136_v47, 1  ;;  %v5040_v31 = vrot.slane %v975_v42, 5  ;;  %v1135_v32 = vld [vmem:[#allocation2 + $0x40] sm:$0x1] }
 0x2ee   :  { %2486 = vmatprep.mubr.bf16.mxu1 %v5035_v12  ;;  %1066 = vst [vmem:[#allocation2 + $0x48] sm:$0xf8] %v1042_v24  ;;  %v1166_v34 = vrot.slane %v1135_v32, 1  ;;  %v972_v23 = vmax.f32 %v956_v40, 0.0  ;;  %v5050_v9 = vsel %vm1040_vm4, %v1042_v24, %v1045_v29  ;;  %v1231_v62 = vrot.slane %v5002_v52, 2 }
 0x2ef   :  { %v1157_v33 = vsel %vm1151_vm2, %v1155_v43, %v1156_v51  ;;  %2487 = vmatmul.mubr.bf16.vlgmr.msra.gmra.mxu1 %v5038_v18  ;;  %v1154_v13 = vsel %vm1151_vm2, %v1152_v4, %v1153_v53  ;;  %v1169_v41 = vsel %vm1151_vm2, %v1164_v61, %v1168_v30  ;;  %v4307_v51 = vld [vmem:[#allocation9 + $0xcc] ss:$16 sps:$4 sm:$0xff]   ;;  %v5060_v54 = vsel %vm1040_vm4, %v1045_v29, %v5040_v31  ;;  %v1210_v53 = vld [vmem:[#allocation2 + $0x8] sm:$0xfc]  ;;  %v4311_v32 = vld [vmem:[#allocation9 + $0xa8] ss:$16 sps:$4 sm:$0xff]  }
 0x2f0   :  { %v5045_v37 = vpack.c.bf16 %v1161_v58, %v1157_v33  ;;  %2601 = vmatpush1.bf16.msra.mxu1 %v4296_v15  ;;  %2496 = vmatprep.mubr.bf16.mxu1 %v5022_v10  ;;  %v5054_v48 = vpack.c.bf16 %v1159_v49, %v1154_v13  ;;  %v5056_v50 = vpack.c.bf16 %v1169_v41, %v1165_v19  ;;  %v1111_v61 = vrot.slane %v5050_v9, 2  ;;  %v4313_v21 = vld [vmem:[#allocation9 + $0xac] ss:$16 sps:$4 sm:$0xff]   ;;  %v4316_v22 = vld [vmem:[#allocation9 + $0x484] ss:$16 sps:$4 sm:$0xff]  }
 0x2f1   :  { %2602 = vmatprep.subr.bf16.mxu1 %v4304_v6  ;;  %v1115_v63 = vrot.slane %v5060_v54, 2  ;;  %v1167_v0 = vsel %vm1151_vm2, %v1162_v5, %v1166_v34  ;;  %v1187_v58 = vrot.slane %v5050_v9, 3  ;;  %v1191_v15 = vrot.slane %v5060_v54, 3  ;;  %v4314_v13 = vld [vmem:[#allocation9 + $0x480] ss:$16 sps:$4 sm:$0xff]  }
 0x2f2   :  { %2559 = vmatprep.mubr.bf16.mxu0 %v5045_v37  ;;  %v974_v49 = vmax.f32 %v958_v27, 0.0  ;;  %v1041_v19 = vrot.slane %v970_v35, 5  ;;  %v1043_v20 = vrot.slane %v972_v23, 5  ;;  %v961_v11 = vadd.f32 %v4954_v16, %v5014_v7  ;;  %v1209_v7 = vld [vmem:[#allocation2] sm:$0xfc] }
 0x2f3   :  { %2560 = vmatmul.mubr.bf16.vlgmr.msra.gmra.mxu0 %v5054_v48  ;;  %v1224_v6 = vrot.slane %v1210_v53, 2  ;;  %v1163_v42 = vsel %vm1151_vm2, %v1158_v25, %v1162_v5  ;;  %v960_v43 = vadd.f32 %v4954_v16, %v5018_v8  ;;  %v5090_v28 = vpack.c.bf16 %v5002_v52, %v4999_v36  ;;  %v4401_v55 = vld [vmem:[#allocation9 + $0x4c8] ss:$16 sps:$4 sm:$0xff]  }
 0x2f4   :  { %2674 = vmatpush1.bf16.msra.mxu0 %v4299_v38  ;;  %2569 = vmatprep.mubr.bf16.mxu0 %v5056_v50  ;;  %v5082_v40 = vsel %vm1040_vm4, %v1041_v19, %v1043_v20  ;;  %v5084_v27 = vrot.slane %v974_v49, 5  ;;  %1065 = vst [vmem:[#allocation2 + $0x40] sm:$0xf8] %v1041_v19  ;;  %v1116_v25 = vsel %vm1106_vm6, %v1111_v61, %v1115_v63  ;;  %v977_v4 = vmax.f32 %v961_v11, 0.0  ;;  %v4317_v49 = vld [vmem:[#allocation9 + $0x88] ss:$16 sps:$4 sm:$0xff]  }
 0x2f5   :  { %2603 = vmatpush1.bf16.msra.mxu1 %v4302_v39  ;;  %2675 = vmatprep.subr.bf16.mxu0 %v4307_v51  ;;  %v1087_v47 = vld [vmem:[#allocation2 + $0x48] sm:$0xfc]  ;;  %v5095_v5 = vpack.c.bf16 %v1167_v0, %v1163_v42  ;;  %v1192_v16 = vsel %vm1182_vm8, %v1187_v58, %v1191_v15  ;;  %v1108_v33 = vrot.slane %v5082_v40, 2  ;;  %v976_v35 = vmax.f32 %v960_v43, 0.0 }
 0x2f6   :  { %2604 = vmatprep.subr.bf16.mxu1 %v4310_v57  ;;  %v1138_v24 = vld [vmem:[#allocation2 + $0x48] sm:$0xf8]  ;;  %v1110_v30 = vrot.slane %v1087_v47, 2  ;;  %v5102_v8 = vsel %vm1040_vm4, %v1043_v20, %v5084_v27  ;;  %v1053_v34 = vrot.slane %v977_v4, 5  ;;  %v1226_v23 = vsel %vm1106_vm6, %v1224_v6, %v1225_v3  ;;  %v4325_v47 = vld [vmem:[#allocation9 + $0x6c] ss:$16 sps:$4 sm:$0xff]  }
 0x2f7   :  { %v1186_v29 = vrot.slane %v1138_v24, 3  ;;  %2497 = vmatmul.mubr.bf16.gmra.mxu1 %v5090_v28  ;;  %v1113_v41 = vrot.slane %v5102_v8, 2  ;;  %v1221_v51 = vrot.slane %v1209_v7, 2  ;;  %v4322_v57 = vld [vmem:[#allocation9 + $0x464] ss:$16 sps:$4 sm:$0xff]   ;;  %v1051_v20 = vrot.slane %v976_v35, 5 }
 0x2f8   :  { %2676 = vmatpush1.bf16.msra.mxu0 %v4305_v1  ;;  %v1112_v38 = vsel %vm1106_vm6, %v1110_v30, %v1111_v61  ;;  %v4319_v1 = vld [vmem:[#allocation9 + $0x8c] ss:$16 sps:$4 sm:$0xff]   ;;  %v5116_v0 = vsel %vm1040_vm4, %v5040_v31, %v1053_v34  ;;  %1074 = vst [vmem:[#allocation2 + $0x88] sm:$0x7] %v1053_v34  ;;  %v1189_v61 = vrot.slane %v5102_v8, 3  ;;  %v1230_v31 = vsel %vm1106_vm6, %v1225_v3, %v1229_v17 }
 0x2f9   :  { %2605 = vmatpush1.bf16.msra.mxu1 %v4308_v14  ;;  %2677 = vmatprep.subr.bf16.mxu0 %v4313_v21  ;;  %v1188_v39 = vsel %vm1182_vm8, %v1186_v29, %v1187_v58  ;;  %v5112_v53 = vpack.c.bf16 %v1116_v25, %v1112_v38  ;;  %v1184_v14 = vrot.slane %v5082_v40, 3  ;;  %v1119_v19 = vrot.slane %v5116_v0, 2  ;;  %v1211_v21 = vld [vmem:[#allocation2 + $0x40] sm:$0x3]  ;;  %v4320_v7 = vld [vmem:[#allocation9 + $0x460] ss:$16 sps:$4 sm:$0xff]  }
 0x2fa   :  { %2606 = vmatprep.subr.bf16.mxu1 %v4316_v22  ;;  %v5121_v58 = vpack.c.bf16 %v1192_v16, %v1188_v39  ;;  %v1195_v42 = vrot.slane %v5116_v0, 3  ;;  %v5131_v22 = vpack.c.bf16 %v1230_v31, %v1226_v23  ;;  %v1227_v43 = vrot.slane %v4999_v36, 2  ;;  %1073 = vst [vmem:[#allocation2 + $0x80] sm:$0x7] %v1051_v20  ;;  %v4328_v4 = vld [vmem:[#allocation9 + $0x444] ss:$16 sps:$4 sm:$0xff]  }
 0x2fb   :  { %2570 = vmatmul.mubr.bf16.gmra.mxu0 %v5095_v5  ;;  %2506 = vmatprep.mubr.bf16.mxu1 %v5112_v53  ;;  %v1086_v11 = vld [vmem:[#allocation2 + $0x40] sm:$0xfc]  ;;  %v1114_v3 = vsel %vm1106_vm6, %v1108_v33, %v1113_v41  ;;  %v1223_v24 = vsel %vm1106_vm6, %v1221_v51, %v1222_v44  ;;  %v1190_v36 = vsel %vm1182_vm8, %v1184_v14, %v1189_v61  ;;  %v1235_v16 = vrot.slane %v1211_v21, 2 }
 0x2fc   :  { %2678 = vmatpush1.bf16.msra.mxu0 %v4311_v32  ;;  %v1137_v6 = vld [vmem:[#allocation2 + $0x40] sm:$0xf8]  ;;  %2579 = vmatprep.mubr.bf16.mxu0 %v5121_v58  ;;  %v1107_v45 = vrot.slane %v1086_v11, 2  ;;  %v5144_v30 = vsel %vm1040_vm4, %v5084_v27, %v1051_v20  ;;  %v1228_v29 = vsel %vm1106_vm6, %v1222_v44, %v1227_v43  ;;  %v1214_v32 = vld [vmem:[#allocation2 + $0x48] sm:$0xf0]  ;;  %v1120_v35 = vsel %vm1106_vm6, %v1115_v63, %v1119_v19 }
 0x2fd   :  { %2607 = vmatpush1.bf16.msra.mxu1 %v4314_v13  ;;  %v1183_v25 = vrot.slane %v1137_v6, 3  ;;  %2679 = vmatprep.subr.bf16.mxu0 %v4319_v1  ;;  %v4323_v23 = vld [vmem:[#allocation9 + $0x68] ss:$16 sps:$4 sm:$0xff]   ;;  %v4326_v13 = vld [vmem:[#allocation9 + $0x440] ss:$16 sps:$4 sm:$0xff]   ;;  %v1117_v27 = vrot.slane %v5144_v30, 2  ;;  %v1196_v44 = vsel %vm1182_vm8, %v1191_v15, %v1195_v42  ;;  %v5163_v51 = vpack.c.bf16 %v1228_v29, %v1223_v24 }
 0x2fe   :  { %2608 = vmatprep.subr.bf16.mxu1 %v4322_v57  ;;  %v1109_v34 = vsel %vm1106_vm6, %v1107_v45, %v1108_v33  ;;  %v4331_v33 = vld [vmem:[#allocation9 + $0x4c] ss:$16 sps:$4 sm:$0xff]   ;;  %v1193_v39 = vrot.slane %v5144_v30, 3  ;;  %v1232_v20 = vsel %vm1106_vm6, %v1227_v43, %v1231_v62  ;;  %v1255_v31 = vrot.slane %v1214_v32, 4  ;;  %v4329_v11 = vld [vmem:[#allocation9 + $0x48] ss:$16 sps:$4 sm:$0xff]  }
 0x2ff   :  { %v1185_v38 = vsel %vm1182_vm8, %v1183_v25, %v1184_v14  ;;  %v5157_v46 = vpack.c.bf16 %v1114_v3, %v1109_v34  ;;  %v1213_v1 = vld [vmem:[#allocation2 + $0x40] sm:$0xf0]  ;;  %v1095_v63 = vld [vmem:[#allocation2 + $0x88] sm:$0x3]  ;;  %v4334_v6 = vld [vmem:[#allocation9 + $0x424] ss:$16 sps:$4 sm:$0xff]  }
 0x300   :  { %2680 = vmatpush1.bf16.msra.mxu0 %v4317_v49  ;;  %v5165_v57 = vpack.c.bf16 %v1190_v36, %v1185_v38  ;;  %v1140_v14 = vld [vmem:[#allocation2 + $0x88] sm:$0x7]  ;;  %v1118_v49 = vsel %vm1106_vm6, %v1113_v41, %v1117_v27  ;;  %v1123_v15 = vrot.slane %v1095_v63, 2  ;;  %v1256_v45 = vrot.slane %v5050_v9, 4 }
 0x301   :  { %2609 = vmatpush1.bf16.msra.mxu1 %v4320_v7  ;;  %2681 = vmatprep.subr.bf16.mxu0 %v4325_v47  ;;  %v1199_v21 = vrot.slane %v1140_v14, 3  ;;  %v1236_v7 = vsel %vm1106_vm6, %v1231_v62, %v1235_v16  ;;  %v1260_v43 = vrot.slane %v5060_v54, 4  ;;  %v1252_v3 = vrot.slane %v1213_v1, 4  ;;  %v1216_v25 = vld [vmem:[#allocation2 + $0x88] sm:$0xf] }
 0x302   :  { %2507 = vmatmul.mubr.bf16.gmra.mxu1 %v5157_v46  ;;  %2610 = vmatprep.subr.bf16.mxu1 %v4328_v4  ;;  %v5177_v41 = vpack.c.bf16 %v1236_v7, %v1232_v20  ;;  %v1253_v47 = vrot.slane %v5082_v40, 4  ;;  %v1124_v24 = vsel %vm1106_vm6, %v1119_v19, %v1123_v15  ;;  %v1094_v62 = vld [vmem:[#allocation2 + $0x80] sm:$0x3]  ;;  %v1257_v9 = vsel %vm1251_vm10, %v1255_v31, %v1256_v45  ;;  %v4332_v40 = vld [vmem:[#allocation9 + $0x420] ss:$16 sps:$4 sm:$0xff]  }
 0x303   :  { %2580 = vmatmul.mubr.bf16.gmra.mxu0 %v5165_v57  ;;  %v1200_v52 = vsel %vm1182_vm8, %v1195_v42, %v1199_v21  ;;  %v1139_v36 = vld [vmem:[#allocation2 + $0x80] sm:$0x7]  ;;  %v1258_v4 = vrot.slane %v5102_v8, 4  ;;  %v5187_v29 = vpack.c.bf16 %v1124_v24, %v1120_v35  ;;  %v1121_v16 = vrot.slane %v1094_v62, 2  ;;  %v4337_v32 = vld [vmem:[#allocation9 + $0x2c] ss:$16 sps:$4 sm:$0xff]  }
 0x304   :  { %2682 = vmatpush1.bf16.msra.mxu0 %v4323_v23  ;;  %v5189_v54 = vpack.c.bf16 %v1200_v52, %v1196_v44  ;;  %v1197_v34 = vrot.slane %v1139_v36, 3  ;;  %v4340_v19 = vld [vmem:[#allocation9 + $0x404] ss:$16 sps:$4 sm:$0xff]   ;;  %v1261_v42 = vsel %vm1251_vm10, %v1256_v45, %v1260_v43  ;;  %v1254_v23 = vsel %vm1251_vm10, %v1252_v3, %v1253_v47  ;;  %v4335_v20 = vld [vmem:[#allocation9 + $0x28] ss:$16 sps:$4 sm:$0xff]  }
 0x305   :  { %2611 = vmatpush1.bf16.msra.mxu1 %v4326_v13  ;;  %2683 = vmatprep.subr.bf16.mxu0 %v4331_v33  ;;  %v1259_v38 = vsel %vm1251_vm10, %v1253_v47, %v1258_v4  ;;  %v1264_v1 = vrot.slane %v5116_v0, 4  ;;  %v1215_v35 = vld [vmem:[#allocation2 + $0x80] sm:$0xf]  ;;  %v1122_v13 = vsel %vm1106_vm6, %v1117_v27, %v1121_v16  ;;  %v5199_v33 = vpack.c.bf16 %v1261_v42, %v1257_v9  ;;  %v4338_v21 = vld [vmem:[#allocation9 + $0x400] ss:$16 sps:$4 sm:$0xff]  }
 0x306   :  { %2612 = vmatprep.subr.bf16.mxu1 %v4334_v6  ;;  %2516 = vmatprep.mubr.bf16.mxu1 %v5187_v29  ;;  %v1198_v44 = vsel %vm1182_vm8, %v1193_v39, %v1197_v34  ;;  %v1268_v63 = vrot.slane %v1216_v25, 4  ;;  %v5201_v14 = vpack.c.bf16 %v1122_v13, %v1118_v49  ;;  %v1194_v0 = vsel %vm1182_vm8, %v1189_v61, %v1193_v39  ;;  %v4343_v6 = vld [vmem:[#allocation9 + $0xc] ss:$16 sps:$4 sm:$0xff]   ;;  %v4346_v8 = vld [vmem:[#allocation9 + $0x5e4] ss:$16 sps:$4 sm:$0xff]  }
 0x307   :  { %2589 = vmatprep.mubr.bf16.mxu0 %v5189_v54  ;;  %v5206_v31 = vpack.c.bf16 %v1259_v38, %v1254_v23  ;;  %v1265_v15 = vsel %vm1251_vm10, %v1260_v43, %v1264_v1  ;;  %v5209_v27 = vpack.c.bf16 %v1198_v44, %v1194_v0  ;;  %v1262_v49 = vrot.slane %v5144_v30, 4  ;;  %v4341_v43 = vld [vmem:[#allocation9 + $0x8] ss:$16 sps:$4 sm:$0xff]   ;;  %v4344_v3 = vld [vmem:[#allocation9 + $0x5e0] ss:$16 sps:$4 sm:$0xff]  }
 0x308   :  { %2684 = vmatpush1.bf16.msra.mxu0 %v4329_v11  ;;  %v1269_v7 = vsel %vm1251_vm10, %v1264_v1, %v1268_v63  ;;  %v1266_v11 = vrot.slane %v1215_v35, 4  ;;  %v4349_v47 = vld [vmem:[#allocation9 + $0x1ec] ss:$16 sps:$4 sm:$0xff]   ;;  %v4352_v25 = vld [vmem:[#allocation9 + $0x5c4] ss:$16 sps:$4 sm:$0xff]  }
 0x309   :  { %2613 = vmatpush1.bf16.msra.mxu1 %v4332_v40  ;;  %2685 = vmatprep.subr.bf16.mxu0 %v4337_v32  ;;  %v5214_v61 = vpack.c.bf16 %v1269_v7, %v1265_v15  ;;  %v1263_v39 = vsel %vm1251_vm10, %v1258_v4, %v1262_v49  ;;  %v4347_v24 = vld [vmem:[#allocation9 + $0x1e8] ss:$16 sps:$4 sm:$0xff]   ;;  %v4350_v52 = vld [vmem:[#allocation9 + $0x5c0] ss:$16 sps:$4 sm:$0xff]   ;;  %v4355_v62 = vld [vmem:[#allocation9 + $0x1cc] ss:$16 sps:$4 sm:$0xff]  }
 0x30a   :  { %2517 = vmatmul.mubr.bf16.gmra.mxu1 %v5201_v14  ;;  %2614 = vmatprep.subr.bf16.mxu1 %v4340_v19  ;;  %v1267_v45 = vsel %vm1251_vm10, %v1262_v49, %v1266_v11  ;;  %v4358_v36 = vld [vmem:[#allocation9 + $0x5a4] ss:$16 sps:$4 sm:$0xff]   ;;  %v4353_v9 = vld [vmem:[#allocation9 + $0x1c8] ss:$16 sps:$4 sm:$0xff]   ;;  %v4361_v4 = vld [vmem:[#allocation9 + $0x1ac] ss:$16 sps:$4 sm:$0xff]  }
 0x30b   :  { %2632 = vmatprep.mubr.bf16.mxu1 %v5131_v22  ;;  %2590 = vmatmul.mubr.bf16.gmra.mxu0 %v5209_v27  ;;  %v5221_v30 = vpack.c.bf16 %v1267_v45, %v1263_v39  ;;  %v4364_v40 = vld [vmem:[#allocation9 + $0x584] ss:$16 sps:$4 sm:$0xff]   ;;  %v4359_v16 = vld [vmem:[#allocation9 + $0x1a8] ss:$16 sps:$4 sm:$0xff]   ;;  %v4362_v32 = vld [vmem:[#allocation9 + $0x580] ss:$16 sps:$4 sm:$0xff]  }
 0x30c   :  { %2686 = vmatpush1.bf16.msra.mxu0 %v4335_v20  ;;  %2705 = vmatprep.mubr.bf16.mxu0 %v5035_v12  ;;  %v4356_v12 = vld [vmem:[#allocation9 + $0x5a0] ss:$16 sps:$4 sm:$0xff]   ;;  %v4367_v34 = vld [vmem:[#allocation9 + $0x18c] ss:$16 sps:$4 sm:$0xff]   ;;  %v4370_v19 = vld [vmem:[#allocation9 + $0x564] ss:$16 sps:$4 sm:$0xff]  }
 0x30d   :  { %2615 = vmatpush1.bf16.msra.mxu1 %v4338_v21  ;;  %2687 = vmatprep.subr.bf16.mxu0 %v4343_v6  ;;  %v4365_v42 = vld [vmem:[#allocation9 + $0x188] ss:$16 sps:$4 sm:$0xff]   ;;  %v4368_v23 = vld [vmem:[#allocation9 + $0x560] ss:$16 sps:$4 sm:$0xff]   ;;  %v4373_v38 = vld [vmem:[#allocation9 + $0x16c] ss:$16 sps:$4 sm:$0xff]  }
 0x30e   :  { %2616 = vmatprep.subr.bf16.mxu1 %v4346_v8  ;;  %v4376_v1 = vld [vmem:[#allocation9 + $0x544] ss:$16 sps:$4 sm:$0xff]   ;;  %v4371_v35 = vld [vmem:[#allocation9 + $0x168] ss:$16 sps:$4 sm:$0xff]   ;;  %v4374_v13 = vld [vmem:[#allocation9 + $0x540] ss:$16 sps:$4 sm:$0xff]  }
 0x30f   :  { %v4379_v44 = vld [vmem:[#allocation9 + $0x14c] ss:$16 sps:$4 sm:$0xff]   ;;  %v4382_v63 = vld [vmem:[#allocation9 + $0x524] ss:$16 sps:$4 sm:$0xff]   ;;  %v4377_v20 = vld [vmem:[#allocation9 + $0x148] ss:$16 sps:$4 sm:$0xff]  }
 0x310   :  { %2688 = vmatpush1.bf16.msra.mxu0 %v4341_v43  ;;  %v4380_v0 = vld [vmem:[#allocation9 + $0x520] ss:$16 sps:$4 sm:$0xff]   ;;  %v4385_v15 = vld [vmem:[#allocation9 + $0x12c] ss:$16 sps:$4 sm:$0xff]   ;;  %v4388_v6 = vld [vmem:[#allocation9 + $0x504] ss:$16 sps:$4 sm:$0xff]  }
 0x311   :  { %2617 = vmatpush2.bf16.msra.mxu1 %v4344_v3  ;;  %2689 = vmatprep.subr.bf16.mxu0 %v4349_v47  ;;  %v1212_v21 = vld [vmem:[#allocation2 + $0x48] sm:$0x3]  ;;  %v4383_v7 = vld [vmem:[#allocation9 + $0x128] ss:$16 sps:$4 sm:$0xff]   ;;  %v1233_v39 = vrot.slane %v4996_v56, 2 }
 0x312   :  { %2618 = vmatprep.subr.bf16.mxu1 %v4352_v25  ;;  %v1237_v49 = vrot.slane %v1212_v21, 2  ;;  %v4386_v11 = vld [vmem:[#allocation9 + $0x500] ss:$16 sps:$4 sm:$0xff]   ;;  %v4391_v8 = vld [vmem:[#allocation9 + $0x10c] ss:$16 sps:$4 sm:$0xff]  }
 0x313   :  { %v4394_v45 = vld [vmem:[#allocation9 + $0x2ec] ss:$16 sps:$4 sm:$0xff]   ;;  %v4389_v43 = vld [vmem:[#allocation9 + $0x108] ss:$16 sps:$4 sm:$0xff]   ;;  %v1234_v25 = vsel %vm1106_vm6, %v1229_v17, %v1233_v39 }
 0x314   :  { %2690 = vmatpush2.bf16.msra.mxu0 %v4347_v24  ;;  %v1238_v3 = vsel %vm1106_vm6, %v1233_v39, %v1237_v49  ;;  %v4392_v47 = vld [vmem:[#allocation9 + $0x2e8] ss:$16 sps:$4 sm:$0xff]   ;;  %v4397_v24 = vld [vmem:[#allocation9 + $0x4ec] ss:$16 sps:$4 sm:$0xff]  }
 0x315   :  { %2619 = vmatpush2.bf16.msra.mxu1 %v4350_v52  ;;  %2691 = vmatprep.subr.bf16.mxu0 %v4355_v62  ;;  %v4400_v52 = vld [vmem:[#allocation9 + $0x2cc] ss:$16 sps:$4 sm:$0xff]   ;;  %v5228_v62 = vpack.c.bf16 %v1238_v3, %v1234_v25  ;;  %v4395_v56 = vld [vmem:[#allocation9 + $0x4e8] ss:$16 sps:$4 sm:$0xff]  }
 0x316   :  { %2620 = vmatprep.subr.bf16.mxu1 %v4358_v36  ;;  %v4398_v36 = vld [vmem:[#allocation9 + $0x2c8] ss:$16 sps:$4 sm:$0xff]   ;;  %v4457_v39 = vld [vmem:[#allocation9 + $0x5ac] ss:$16 sps:$4 sm:$0xff]  }
 0x317   :  { %v4404_v17 = vld [vmem:[#allocation9 + $0x2a8] ss:$16 sps:$4 sm:$0xff]   ;;  %v4466_v25 = vld [vmem:[#allocation9 + $0x36c] ss:$16 sps:$4 sm:$0xff]  }
 0x318   :  { %2692 = vmatpush2.bf16.msra.mxu0 %v4353_v9  ;;  %v4403_v9 = vld [vmem:[#allocation9 + $0x4cc] ss:$16 sps:$4 sm:$0xff]   ;;  %v4440_v21 = vld [vmem:[#allocation9 + $0x3e8] ss:$16 sps:$4 sm:$0xff]  }
 0x319   :  { %2621 = vmatpush2.bf16.msra.mxu1 %v4356_v12  ;;  %2693 = vmatprep.subr.bf16.mxu0 %v4361_v4  ;;  %v4406_v12 = vld [vmem:[#allocation9 + $0x2ac] ss:$16 sps:$4 sm:$0xff]   ;;  %v4443_v49 = vld [vmem:[#allocation9 + $0x5e8] ss:$16 sps:$4 sm:$0xff]  }
 0x31a   :  { %2622 = vmatprep.subr.bf16.mxu1 %v4364_v40  ;;  %v4409_v4 = vld [vmem:[#allocation9 + $0x4ac] ss:$16 sps:$4 sm:$0xff]   ;;  %v4458_v3 = vld [vmem:[#allocation9 + $0x388] ss:$16 sps:$4 sm:$0xff]  }
 0x31b   :  { %v4412_v40 = vld [vmem:[#allocation9 + $0x28c] ss:$16 sps:$4 sm:$0xff]  }
 0x31c   :  { %2694 = vmatpush2.bf16.msra.mxu0 %v4359_v16  ;;  %v4407_v16 = vld [vmem:[#allocation9 + $0x4a8] ss:$16 sps:$4 sm:$0xff]  }
 0x31d   :  { %2623 = vmatpush2.bf16.msra.mxu1 %v4362_v32  ;;  %2695 = vmatprep.subr.bf16.mxu0 %v4367_v34  ;;  %v4410_v32 = vld [vmem:[#allocation9 + $0x288] ss:$16 sps:$4 sm:$0xff]   ;;  %v4415_v34 = vld [vmem:[#allocation9 + $0x48c] ss:$16 sps:$4 sm:$0xff]  }
 0x31e   :  { %2624 = vmatprep.subr.bf16.mxu1 %v4370_v19  ;;  %v4416_v19 = vld [vmem:[#allocation9 + $0x268] ss:$16 sps:$4 sm:$0xff]  }
 0x320   :  { %2696 = vmatpush2.bf16.msra.mxu0 %v4365_v42  ;;  %v4421_v42 = vld [vmem:[#allocation9 + $0x46c] ss:$16 sps:$4 sm:$0xff]  }
 0x321   :  { %2625 = vmatpush2.bf16.msra.mxu1 %v4368_v23  ;;  %2697 = vmatprep.subr.bf16.mxu0 %v4373_v38  ;;  %v4424_v23 = vld [vmem:[#allocation9 + $0x24c] ss:$16 sps:$4 sm:$0xff]   ;;  %v4419_v38 = vld [vmem:[#allocation9 + $0x468] ss:$16 sps:$4 sm:$0xff]  }
 0x322   :  { %2626 = vmatprep.subr.bf16.mxu1 %v4376_v1  ;;  %v4422_v1 = vld [vmem:[#allocation9 + $0x248] ss:$16 sps:$4 sm:$0xff]  }
 0x324   :  { %2698 = vmatpush2.bf16.msra.mxu0 %v4371_v35  ;;  %v4427_v35 = vld [vmem:[#allocation9 + $0x44c] ss:$16 sps:$4 sm:$0xff]  }
 0x325   :  { %2627 = vmatpush2.bf16.msra.mxu1 %v4374_v13  ;;  %2699 = vmatprep.subr.bf16.mxu0 %v4379_v44  ;;  %v4428_v13 = vld [vmem:[#allocation9 + $0x228] ss:$16 sps:$4 sm:$0xff]   ;;  %v4433_v44 = vld [vmem:[#allocation9 + $0x42c] ss:$16 sps:$4 sm:$0xff]  }
 0x326   :  { %2628 = vmatprep.subr.bf16.mxu1 %v4382_v63  ;;  %v4436_v63 = vld [vmem:[#allocation9 + $0x20c] ss:$16 sps:$4 sm:$0xff]  }
 0x328   :  { %2700 = vmatpush2.bf16.msra.mxu0 %v4377_v20  ;;  %v4431_v20 = vld [vmem:[#allocation9 + $0x428] ss:$16 sps:$4 sm:$0xff]  }
 0x329   :  { %2629 = vmatpush2.bf16.msra.mxu1 %v4380_v0  ;;  %2701 = vmatprep.subr.bf16.mxu0 %v4385_v15  ;;  %v4434_v0 = vld [vmem:[#allocation9 + $0x208] ss:$16 sps:$4 sm:$0xff]   ;;  %v4439_v15 = vld [vmem:[#allocation9 + $0x40c] ss:$16 sps:$4 sm:$0xff]  }
 0x32a   :  { %2630 = vmatprep.subr.bf16.mxu1 %v4388_v6  ;;  %v4445_v6 = vld [vmem:[#allocation9 + $0x5ec] ss:$16 sps:$4 sm:$0xff]  }
 0x32c   :  { %2702 = vmatpush2.bf16.msra.mxu0 %v4383_v7  ;;  %v4448_v7 = vld [vmem:[#allocation9 + $0x3cc] ss:$16 sps:$4 sm:$0xff]  }
 0x32d   :  { %2631 = vmatpush2.bf16.msra.mxu1 %v4386_v11  ;;  %2703 = vmatprep.subr.bf16.mxu0 %v4391_v8  ;;  %v4451_v11 = vld [vmem:[#allocation9 + $0x5cc] ss:$16 sps:$4 sm:$0xff]  }
 0x32e   :  { %2746 = vmatprep.subr.bf16.mxu1 %v4394_v45  ;;  %v4454_v8 = vld [vmem:[#allocation9 + $0x3ac] ss:$16 sps:$4 sm:$0xff]  }
 0x32f   :  { %v4460_v45 = vld [vmem:[#allocation9 + $0x38c] ss:$16 sps:$4 sm:$0xff]  }
 0x330   :  { %2633 = vmatmul.mubr.bf16.vlgmr.msra.gmra.mxu1 %v5163_v51  ;;  %2704 = vmatpush2.bf16.msra.mxu0 %v4389_v43  ;;  %v4455_v43 = vld [vmem:[#allocation9 + $0x5a8] ss:$16 sps:$4 sm:$0xff]  }
 0x331   :  { %2642 = vmatprep.mubr.bf16.mxu1 %v5228_v62  ;;  %2747 = vmatpush1.bf16.msra.mxu1 %v4392_v47  ;;  %v4463_v47 = vld [vmem:[#allocation9 + $0x58c] ss:$16 sps:$4 sm:$0xff]  }
 0x332   :  { %2819 = vmatprep.subr.bf16.mxu0 %v4397_v24  ;;  %2748 = vmatprep.subr.bf16.mxu1 %v4400_v52  ;;  %v4461_v24 = vld [vmem:[#allocation9 + $0x588] ss:$16 sps:$4 sm:$0xff]  }
 0x333   :  { %2706 = vmatmul.mubr.bf16.vlgmr.msra.gmra.mxu0 %v5038_v18  ;;  %v4413_v18 = vld [vmem:[#allocation9 + $0x488] ss:$16 sps:$4 sm:$0xff]  }
 0x334   :  { %2715 = vmatprep.mubr.bf16.mxu0 %v5022_v10  ;;  %2820 = vmatpush1.bf16.msra.mxu0 %v4395_v56  ;;  %v4418_v10 = vld [vmem:[#allocation9 + $0x26c] ss:$16 sps:$4 sm:$0xff]   ;;  %v4464_v52 = vld [vmem:[#allocation9 + $0x368] ss:$16 sps:$4 sm:$0xff]  }
 0x335   :  { %2749 = vmatpush1.bf16.msra.mxu1 %v4398_v36  ;;  %2821 = vmatprep.subr.bf16.mxu0 %v4403_v9  ;;  %v4469_v56 = vld [vmem:[#allocation9 + $0x56c] ss:$16 sps:$4 sm:$0xff]   ;;  %v4467_v9 = vld [vmem:[#allocation9 + $0x568] ss:$16 sps:$4 sm:$0xff]  }
 0x336   :  { %2750 = vmatprep.subr.bf16.mxu1 %v4406_v12  ;;  %v4472_v36 = vld [vmem:[#allocation9 + $0x34c] ss:$16 sps:$4 sm:$0xff]   ;;  %v4470_v12 = vld [vmem:[#allocation9 + $0x348] ss:$16 sps:$4 sm:$0xff]  }
 0x338   :  { %2643 = vmatmul.mubr.bf16.gmra.mxu1 %v5177_v41  ;;  %2822 = vmatpush1.bf16.msra.mxu0 %v4401_v55  ;;  %v4475_v55 = vld [vmem:[#allocation9 + $0x54c] ss:$16 sps:$4 sm:$0xff]  }
 0x339   :  { %2652 = vmatprep.mubr.bf16.mxu1 %v5199_v33  ;;  %2751 = vmatpush1.bf16.msra.mxu1 %v4404_v17  ;;  %v4478_v17 = vld [vmem:[#allocation9 + $0x32c] ss:$16 sps:$4 sm:$0xff]  }
 0x33a   :  { %2823 = vmatprep.subr.bf16.mxu0 %v4409_v4  ;;  %2752 = vmatprep.subr.bf16.mxu1 %v4412_v40  ;;  %v4473_v4 = vld [vmem:[#allocation9 + $0x548] ss:$16 sps:$4 sm:$0xff]  }
 0x33b   :  { %2716 = vmatmul.mubr.bf16.gmra.mxu0 %v5090_v28  ;;  %v4430_v28 = vld [vmem:[#allocation9 + $0x22c] ss:$16 sps:$4 sm:$0xff]   ;;  %v4476_v40 = vld [vmem:[#allocation9 + $0x328] ss:$16 sps:$4 sm:$0xff]  }
 0x33c   :  { %2725 = vmatprep.mubr.bf16.mxu0 %v5112_v53  ;;  %2824 = vmatpush1.bf16.msra.mxu0 %v4407_v16  ;;  %v4425_v53 = vld [vmem:[#allocation9 + $0x448] ss:$16 sps:$4 sm:$0xff]   ;;  %v4481_v16 = vld [vmem:[#allocation9 + $0x52c] ss:$16 sps:$4 sm:$0xff]  }
 0x33d   :  { %2753 = vmatpush1.bf16.msra.mxu1 %v4410_v32  ;;  %2825 = vmatprep.subr.bf16.mxu0 %v4415_v34  ;;  %v4484_v32 = vld [vmem:[#allocation9 + $0x30c] ss:$16 sps:$4 sm:$0xff]   ;;  %v4479_v34 = vld [vmem:[#allocation9 + $0x528] ss:$16 sps:$4 sm:$0xff]  }
 0x33e   :  { %2754 = vmatprep.subr.bf16.mxu1 %v4418_v10  ;;  %v4482_v10 = vld [vmem:[#allocation9 + $0x308] ss:$16 sps:$4 sm:$0xff]  }
 0x340   :  { %2653 = vmatmul.mubr.bf16.gmra.mxu1 %v5206_v31  ;;  %2826 = vmatpush1.bf16.msra.mxu0 %v4413_v18  ;;  %v4487_v18 = vld [vmem:[#allocation9 + $0x50c] ss:$16 sps:$4 sm:$0xff]  }
 0x341   :  { %2662 = vmatprep.mubr.bf16.mxu1 %v5214_v61  ;;  %2755 = vmatpush1.bf16.msra.mxu1 %v4416_v19  ;;  %v4485_v19 = vld [vmem:[#allocation9 + $0x508] ss:$16 sps:$4 sm:$0xff]  }
 0x342   :  { %2827 = vmatprep.subr.bf16.mxu0 %v4421_v42  ;;  %2756 = vmatprep.subr.bf16.mxu1 %v4424_v23 }
 0x343   :  { %2726 = vmatmul.mubr.bf16.gmra.mxu0 %v5157_v46  ;;  %v4442_v46 = vld [vmem:[#allocation9 + $0x3ec] ss:$16 sps:$4 sm:$0xff]  }
 0x344   :  { %2735 = vmatprep.mubr.bf16.mxu0 %v5187_v29  ;;  %2828 = vmatpush1.bf16.msra.mxu0 %v4419_v38  ;;  %v4437_v29 = vld [vmem:[#allocation9 + $0x408] ss:$16 sps:$4 sm:$0xff]  }
 0x345   :  { %2757 = vmatpush1.bf16.msra.mxu1 %v4422_v1  ;;  %2829 = vmatprep.subr.bf16.mxu0 %v4427_v35 }
 0x346   :  { %2758 = vmatprep.subr.bf16.mxu1 %v4430_v28 }
 0x348   :  { %2663 = vmatmul.mubr.bf16.gmra.mxu1 %v5221_v30  ;;  %2830 = vmatpush1.bf16.msra.mxu0 %v4425_v53 }
 0x349   :  { %2759 = vmatpush1.bf16.msra.mxu1 %v4428_v13  ;;  %2778 = vmatprep.mubr.bf16.mxu1 %v5045_v37  ;;  %v4446_v37 = vld [vmem:[#allocation9 + $0x3c8] ss:$16 sps:$4 sm:$0xff]  }
 0x34a   :  { %2831 = vmatprep.subr.bf16.mxu0 %v4433_v44  ;;  %2760 = vmatprep.subr.bf16.mxu1 %v4436_v63 }
 0x34b   :  { %2736 = vmatmul.mubr.bf16.gmra.mxu0 %v5201_v14  ;;  %v4449_v14 = vld [vmem:[#allocation9 + $0x5c8] ss:$16 sps:$4 sm:$0xff]  }
 0x34c   :  { %2832 = vmatpush1.bf16.msra.mxu0 %v4431_v20  ;;  %2851 = vmatprep.mubr.bf16.mxu0 %v5131_v22  ;;  %v4452_v22 = vld [vmem:[#allocation9 + $0x3a8] ss:$16 sps:$4 sm:$0xff]  }
 0x34d   :  { %2761 = vmatpush1.bf16.msra.mxu1 %v4434_v0  ;;  %2833 = vmatprep.subr.bf16.mxu0 %v4439_v15 }
 0x34e   :  { %2762 = vmatprep.subr.bf16.mxu1 %v4442_v46 }
 0x350   :  { %2834 = vmatpush1.bf16.msra.mxu0 %v4437_v29 }
 0x351   :  { %2763 = vmatpush2.bf16.msra.mxu1 %v4440_v21  ;;  %2835 = vmatprep.subr.bf16.mxu0 %v4445_v6 }
 0x352   :  { %2764 = vmatprep.subr.bf16.mxu1 %v4448_v7 }
 0x354   :  { %2836 = vmatpush2.bf16.msra.mxu0 %v4443_v49 }
 0x355   :  { %2765 = vmatpush2.bf16.msra.mxu1 %v4446_v37  ;;  %2837 = vmatprep.subr.bf16.mxu0 %v4451_v11 }
 0x356   :  { %2766 = vmatprep.subr.bf16.mxu1 %v4454_v8 }
 0x358   :  { %2838 = vmatpush2.bf16.msra.mxu0 %v4449_v14 }
 0x359   :  { %2767 = vmatpush2.bf16.msra.mxu1 %v4452_v22  ;;  %2839 = vmatprep.subr.bf16.mxu0 %v4457_v39 }
 0x35a   :  { %2768 = vmatprep.subr.bf16.mxu1 %v4460_v45 }
 0x35c   :  { %2840 = vmatpush2.bf16.msra.mxu0 %v4455_v43 }
 0x35d   :  { %2769 = vmatpush2.bf16.msra.mxu1 %v4458_v3  ;;  %2841 = vmatprep.subr.bf16.mxu0 %v4463_v47 }
 0x35e   :  { %2770 = vmatprep.subr.bf16.mxu1 %v4466_v25 }
 0x360   :  { %2842 = vmatpush2.bf16.msra.mxu0 %v4461_v24 }
 0x361   :  { %2771 = vmatpush2.bf16.msra.mxu1 %v4464_v52  ;;  %2843 = vmatprep.subr.bf16.mxu0 %v4469_v56 }
 0x362   :  { %2772 = vmatprep.subr.bf16.mxu1 %v4472_v36 }
 0x364   :  { %2844 = vmatpush2.bf16.msra.mxu0 %v4467_v9 }
 0x365   :  { %2773 = vmatpush2.bf16.msra.mxu1 %v4470_v12  ;;  %2845 = vmatprep.subr.bf16.mxu0 %v4475_v55 }
 0x366   :  { %2774 = vmatprep.subr.bf16.mxu1 %v4478_v17 }
 0x368   :  { %2846 = vmatpush2.bf16.msra.mxu0 %v4473_v4 }
 0x369   :  { %2775 = vmatpush2.bf16.msra.mxu1 %v4476_v40  ;;  %2847 = vmatprep.subr.bf16.mxu0 %v4481_v16 }
 0x36a   :  { %2776 = vmatprep.subr.bf16.mxu1 %v4484_v32 }
 0x36c   :  { %2848 = vmatpush2.bf16.msra.mxu0 %v4479_v34 }
 0x36d   :  { %2777 = vmatpush2.bf16.msra.mxu1 %v4482_v10  ;;  %2849 = vmatprep.subr.bf16.mxu0 %v4487_v18 }
 0x36e   :  { %4090 = vmatprep.subr.mxu1 %v4603_v26 }
 0x370   :  { %2779 = vmatmul.mubr.bf16.vlgmr.msra.gmra.mxu1 %v5054_v48  ;;  %2850 = vmatpush2.bf16.msra.mxu0 %v4485_v19 }
 0x371   :  { %2788 = vmatprep.mubr.bf16.mxu1 %v5056_v50 }
 0x373   :  { %2852 = vmatmul.mubr.bf16.vlgmr.msra.gmra.mxu0 %v5163_v51 }
 0x374   :  { %2861 = vmatprep.mubr.bf16.mxu0 %v5228_v62 }
 0x378   :  { %2789 = vmatmul.mubr.bf16.gmra.mxu1 %v5095_v5 }
 0x379   :  { %2798 = vmatprep.mubr.bf16.mxu1 %v5121_v58 }
 0x37b   :  { %2862 = vmatmul.mubr.bf16.gmra.mxu0 %v5177_v41 }
 0x37c   :  { %2871 = vmatprep.mubr.bf16.mxu0 %v5199_v33 }
 0x380   :  { %2799 = vmatmul.mubr.bf16.gmra.mxu1 %v5165_v57 }
 0x381   :  { %2808 = vmatprep.mubr.bf16.mxu1 %v5189_v54 }
 0x383   :  { %2872 = vmatmul.mubr.bf16.gmra.mxu0 %v5206_v31 }
 0x384   :  { %2881 = vmatprep.mubr.bf16.mxu0 %v5214_v61 }
 0x388   :  { %2809 = vmatmul.mubr.bf16.gmra.mxu1 %v5209_v27 }
 0x389   :  { %4094 = vmatprep.mubr.msk.f32.mxu1 %vm4605_vm12, %v4603_v26 }
 0x38b   :  { %2882 = vmatmul.mubr.bf16.gmra.mxu0 %v5221_v30 }
 0x3af   :  { %v2488_v48 = vpop.f32.mrf.mxu1 }
 0x3b1   :  { %v2490_v50 = vpop.f32.mrf.mxu1 }
 0x3b3   :  { %v2561_v5 = vpop.f32.mrf.mxu0  ;;  %v2492_v58 = vpop.f32.mrf.mxu1 }
 0x3b4   :  { %v2562_v3 = vadd.f32 %v2561_v5, %v2488_v48 }
 0x3b5   :  { %v2563_v51 = vpop.f32.mrf.mxu0  ;;  %v2494_v41 = vpop.f32.mrf.mxu1 }
 0x3b6   :  { %v2564_v56 = vadd.f32 %v2563_v51, %v2490_v50 }
 0x3b7   :  { %v2565_v62 = vpop.f32.mrf.mxu0  ;;  %v2498_v33 = vpop.f32.mrf.mxu1 }
 0x3b8   :  { %v2566_v45 = vadd.f32 %v2565_v62, %v2492_v58 }
 0x3b9   :  { %v2567_v42 = vpop.f32.mrf.mxu0  ;;  %v2500_v57 = vpop.f32.mrf.mxu1 }
 0x3ba   :  { %v2568_v47 = vadd.f32 %v2567_v42, %v2494_v41 }
 0x3bb   :  { %v2571_v23 = vpop.f32.mrf.mxu0  ;;  %v2502_v54 = vpop.f32.mrf.mxu1 }
 0x3bc   :  { %v2572_v25 = vadd.f32 %v2571_v23, %v2498_v33 }
 0x3bd   :  { %v2573_v38 = vpop.f32.mrf.mxu0  ;;  %v2504_v31 = vpop.f32.mrf.mxu1 }
 0x3be   :  { %v2574_v12 = vadd.f32 %v2573_v38, %v2500_v57 }
 0x3bf   :  { %v2575_v1 = vpop.f32.mrf.mxu0 }
 0x3c0   :  { %v2576_v55 = vadd.f32 %v2575_v1, %v2502_v54 }
 0x3c1   :  { %v2577_v35 = vpop.f32.mrf.mxu0 }
 0x3c2   :  { %v2508_v61 = vpop.f32.mrf.mxu1  ;;  %v2578_v16 = vadd.f32 %v2577_v35, %v2504_v31 }
 0x3c3   :  { %v2581_v28 = vpop.f32.mrf.mxu0 }
 0x3c4   :  { %v2510_v27 = vpop.f32.mrf.mxu1  ;;  %v2582_v34 = vadd.f32 %v2581_v28, %v2508_v61 }
 0x3c5   :  { %v2583_v53 = vpop.f32.mrf.mxu0 }
 0x3c6   :  { %v2512_v30 = vpop.f32.mrf.mxu1  ;;  %v2584_v50 = vadd.f32 %v2583_v53, %v2510_v27 }
 0x3c7   :  { %v2585_v44 = vpop.f32.mrf.mxu0 }
 0x3c8   :  { %v2514_v13 = vpop.f32.mrf.mxu1  ;;  %v2586_v57 = vadd.f32 %v2585_v44, %v2512_v30 }
 0x3c9   :  { %v2587_v20 = vpop.f32.mrf.mxu0 }
 0x3ca   :  { %v5261_v63 = vpop.f32.mrf.mxu1  ;;  %v2588_v27 = vadd.f32 %v2587_v20, %v2514_v13 }
 0x3cb   :  { %v2591_v15 = vpop.f32.mrf.mxu0 }
 0x3cc   :  { %v5263_v0 = vpop.f32.mrf.mxu1  ;;  %v2592_v13 = vadd.f32 %v2591_v15, %v5261_v63 }
 0x3cd   :  { %v5267_v29 = vpop.f32.mrf.mxu0 }
 0x3ce   :  { %v5265_v46 = vpop.f32.mrf.mxu1 }
 0x3cf   :  { %v5271_v6 = vpop.f32.mrf.mxu0 }
 0x3d0   :  { %v5269_v21 = vpop.f32.mrf.mxu1 }
 0x3d1   :  { %v5273_v37 = vpop.f32.mrf.mxu0 }
 0x3f0   :  { %v2634_v7 = vpop.f32.mrf.mxu1 }
 0x3f1   :  { %v5281_v36 = vadd.f32 %v2634_v7, %v2562_v3 }
 0x3f2   :  { %v2636_v49 = vpop.f32.mrf.mxu1 }
 0x3f3   :  { %v5275_v8 = vpop.f32.mrf.mxu0  ;;  %v5289_v32 = vadd.f32 %v2636_v49, %v2564_v56  ;;  %v2944_v5 = vmul.f32 %v5281_v36, %v5281_v36 }
 0x3f4   :  { %v2638_v11 = vpop.f32.mrf.mxu1 }
 0x3f5   :  { %v5277_v39 = vpop.f32.mrf.mxu0  ;;  %v5279_v24 = vadd.f32 %v2638_v11, %v2566_v45  ;;  %v2945_v23 = vmul.f32 %v5289_v32, %v5289_v32 }
 0x3f6   :  { %v2640_v14 = vpop.f32.mrf.mxu1 }
 0x3f7   :  { %v5283_v9 = vpop.f32.mrf.mxu0  ;;  %v5285_v17 = vadd.f32 %v2640_v14, %v2568_v47  ;;  %v2948_v10 = vmul.f32 %v5279_v24, %v5279_v24  ;;  %v2892_v54 = vadd.f32 %v5279_v24, %v5281_v36 }
 0x3f8   :  { %v2644_v22 = vpop.f32.mrf.mxu1 }
 0x3f9   :  { %v5287_v4 = vadd.f32 %v2644_v22, %v2572_v25  ;;  %v5299_v58 = vpop.f32.mrf.mxu0  ;;  %v2949_v51 = vmul.f32 %v5285_v17, %v5285_v17  ;;  %v2976_v38 = vadd.f32 %v2948_v10, %v2944_v5  ;;  %v2905_v28 = vadd.f32 %v5285_v17, %v5289_v32 }
 0x3fa   :  { %v2646_v43 = vpop.f32.mrf.mxu1 }
 0x3fb   :  { %v5293_v18 = vadd.f32 %v2646_v43, %v2574_v12  ;;  %v2952_v41 = vmul.f32 %v5287_v4, %v5287_v4  ;;  %v2893_v30 = vadd.f32 %v2892_v54, %v5287_v4  ;;  %v5322_v53 = vpop.f32.mrf.mxu0  ;;  %v2989_v7 = vadd.f32 %v2949_v51, %v2945_v23 }
 0x3fc   :  { %v2648_v52 = vpop.f32.mrf.mxu1  ;;  %v2594_v12 = vadd.f32 %v5267_v29, %v5263_v0 }
 0x3fd   :  { %v5295_v19 = vadd.f32 %v2648_v52, %v2576_v55  ;;  %v2953_v31 = vmul.f32 %v5293_v18, %v5293_v18  ;;  %v2977_v49 = vadd.f32 %v2976_v38, %v2952_v41  ;;  %v2906_v20 = vadd.f32 %v2905_v28, %v5293_v18  ;;  %v5341_v55 = vpop.f32.mrf.mxu0 }
 0x3fe   :  { %v2650_v40 = vpop.f32.mrf.mxu1  ;;  %v2598_v41 = vadd.f32 %v5273_v37, %v5269_v21 }
 0x3ff   :  { %v5305_v62 = vadd.f32 %v2650_v40, %v2578_v16  ;;  %v2956_v1 = vmul.f32 %v5295_v19, %v5295_v19  ;;  %v2894_v45 = vadd.f32 %v2893_v30, %v5295_v19  ;;  %v2990_v3 = vadd.f32 %v2989_v7, %v2953_v31 }
 0x400   :  { %v2654_v48 = vpop.f32.mrf.mxu1  ;;  %v2596_v16 = vadd.f32 %v5271_v6, %v5265_v46 }
 0x401   :  { %v5307_v33 = vadd.f32 %v2654_v48, %v2582_v34  ;;  %v2957_v11 = vmul.f32 %v5305_v62, %v5305_v62  ;;  %v2978_v47 = vadd.f32 %v2977_v49, %v2956_v1  ;;  %v2907_v63 = vadd.f32 %v2906_v20, %v5305_v62 }
 0x402   :  { %v2656_v42 = vpop.f32.mrf.mxu1 }
 0x403   :  { %v5317_v61 = vadd.f32 %v2656_v42, %v2584_v50  ;;  %v2960_v14 = vmul.f32 %v5307_v33, %v5307_v33  ;;  %v2895_v15 = vadd.f32 %v2894_v45, %v5307_v33  ;;  %v2991_v34 = vadd.f32 %v2990_v3, %v2957_v11 }
 0x404   :  { %v2658_v35 = vpop.f32.mrf.mxu1 }
 0x405   :  { %v5324_v44 = vadd.f32 %v2658_v35, %v2586_v57  ;;  %v2961_v25 = vmul.f32 %v5317_v61, %v5317_v61  ;;  %v2979_v10 = vadd.f32 %v2978_v47, %v2960_v14  ;;  %v2908_v5 = vadd.f32 %v2907_v63, %v5317_v61  ;;  %v5359_v57 = vpop.f32.mrf.mxu0 }
 0x406   :  { %v2660_v22 = vpop.f32.mrf.mxu1 }
 0x407   :  { %v5333_v43 = vadd.f32 %v2660_v22, %v2588_v27  ;;  %v2964_v52 = vmul.f32 %v5324_v44, %v5324_v44  ;;  %v2896_v0 = vadd.f32 %v2895_v15, %v5324_v44  ;;  %v2992_v42 = vadd.f32 %v2991_v34, %v2961_v25  ;;  %v5373_v49 = vpop.f32.mrf.mxu0 }
 0x408   :  { %v2664_v56 = vpop.f32.mrf.mxu1 }
 0x409   :  { %v5345_v40 = vadd.f32 %v2664_v56, %v2592_v13  ;;  %v2965_v48 = vmul.f32 %v5333_v43, %v5333_v43  ;;  %v2980_v46 = vadd.f32 %v2979_v10, %v2964_v52  ;;  %v2909_v23 = vadd.f32 %v2908_v5, %v5333_v43  ;;  %v5378_v47 = vpop.f32.mrf.mxu0 }
 0x40a   :  { %v2666_v50 = vpop.f32.mrf.mxu1 }
 0x40b   :  { %v2968_v29 = vmul.f32 %v5345_v40, %v5345_v40  ;;  %v5355_v51 = vadd.f32 %v2666_v50, %v2594_v12  ;;  %v2897_v54 = vadd.f32 %v2896_v0, %v5345_v40  ;;  %v2993_v1 = vadd.f32 %v2992_v42, %v2965_v48  ;;  %v5380_v34 = vpop.f32.mrf.mxu0 }
 0x40c   :  { %v2668_v6 = vpop.f32.mrf.mxu1 }
 0x40d   :  { %v2969_v38 = vmul.f32 %v5355_v51, %v5355_v51  ;;  %v5365_v31 = vadd.f32 %v2668_v6, %v2596_v16  ;;  %v2981_v35 = vadd.f32 %v2980_v46, %v2968_v29  ;;  %v2910_v28 = vadd.f32 %v2909_v23, %v5355_v51  ;;  %v5382_v29 = vpop.f32.mrf.mxu0 }
 0x40e   :  { %v2670_v27 = vpop.f32.mrf.mxu1 }
 0x40f   :  { %v2898_v21 = vadd.f32 %v2897_v54, %v5365_v31  ;;  %v2972_v37 = vmul.f32 %v5365_v31, %v5365_v31  ;;  %v5371_v30 = vadd.f32 %v2670_v27, %v2598_v41  ;;  %v2994_v7 = vadd.f32 %v2993_v1, %v2969_v38  ;;  %v5391_v54 = vpop.f32.mrf.mxu0 }
 0x411   :  { %v2899_v11 = vrot.slane %v2898_v21, 4  ;;  %v2982_v14 = vadd.f32 %v2981_v35, %v2972_v37  ;;  %v2911_v22 = vadd.f32 %v2910_v28, %v5371_v30  ;;  %v2973_v13 = vmul.f32 %v5371_v30, %v5371_v30  ;;  %v5397_v35 = vpop.f32.mrf.mxu0 }
 0x413   :  { %v2900_v20 = vadd.f32 %v2899_v11, %v2898_v21  ;;  %v2983_v45 = vrot.slane %v2982_v14, 4  ;;  %v2995_v3 = vadd.f32 %v2994_v7, %v2973_v13  ;;  %v2912_v56 = vrot.slane %v2911_v22, 4  ;;  %v5403_v21 = vpop.f32.mrf.mxu0 }
 0x415   :  { %v2901_v25 = vrot.slane %v2900_v20, 2  ;;  %v2984_v52 = vadd.f32 %v2983_v45, %v2982_v14  ;;  %v2996_v12 = vrot.slane %v2995_v3, 4  ;;  %v2913_v50 = vadd.f32 %v2912_v56, %v2911_v22  ;;  %v5412_v11 = vpop.f32.mrf.mxu0 }
 0x417   :  { %v2902_v63 = vadd.f32 %v2901_v25, %v2900_v20  ;;  %v2985_v15 = vrot.slane %v2984_v52, 2  ;;  %v2997_v16 = vadd.f32 %v2996_v12, %v2995_v3  ;;  %v2914_v46 = vrot.slane %v2913_v50, 2  ;;  %v5418_v22 = vpop.f32.mrf.mxu0 }
 0x419   :  { %v2903_v10 = vrot.slane %v2902_v63, 1  ;;  %v2986_v48 = vadd.f32 %v2985_v15, %v2984_v52  ;;  %v2998_v0 = vrot.slane %v2997_v16, 2  ;;  %v2915_v38 = vadd.f32 %v2914_v46, %v2913_v50 }
 0x41b   :  { %v2987_v5 = vrot.slane %v2986_v48, 1  ;;  %v2904_v41 = vadd.f32 %v2903_v10, %v2902_v63  ;;  %v2999_v6 = vadd.f32 %v2998_v0, %v2997_v16  ;;  %v2916_v27 = vrot.slane %v2915_v38, 1 }
 0x41d   :  { %v2988_v42 = vadd.f32 %v2987_v5, %v2986_v48  ;;  %v3000_v1 = vrot.slane %v2999_v6, 1  ;;  %v2917_v37 = vadd.f32 %v2916_v27, %v2915_v38 }
 0x41f   :  { %v5385_v23 = vsel %vm621_vm0, %v2904_v41, %v2988_v42  ;;  %v3001_v28 = vadd.f32 %v3000_v1, %v2999_v6 }
 0x420   :  { %3037 = vrot.lane.b32.xlu1 %v5385_v23, %s4592_s17  ;;  %3033 = vrot.lane.b32.xlu0 %v5385_v23, %s4593_s18 }
 0x421   :  { %v5406_v7 = vsel %vm621_vm0, %v2917_v37, %v3001_v28 }
 0x424   :  { %3045 = vrot.lane.b32.xlu1 %v5385_v23, %s4596_s21  ;;  %3041 = vrot.lane.b32.xlu0 %v5385_v23, %s4594_s19 }
 0x428   :  { %3053 = vrot.lane.b32.xlu1 %v5385_v23, %s4600_s8  ;;  %3049 = vrot.lane.b32.xlu0 %v5385_v23, %s4598_s23 }
 0x42c   :  { %3063 = vrot.lane.b32.xlu1 %v5406_v7, %s4593_s18  ;;  %3057 = vrot.lane.b32.xlu0 %v5385_v23, %s4588_s14 }
 0x430   :  { %v2780_v14 = vpop.f32.mrf.mxu1  ;;  %3071 = vrot.lane.b32.xlu1 %v5406_v7, %s4594_s19  ;;  %3067 = vrot.lane.b32.xlu0 %v5406_v7, %s4592_s17 }
 0x431   :  { %v2781_v10 = vadd.f32 %v2780_v14, %v5275_v8 }
 0x432   :  { %v2782_v13 = vpop.f32.mrf.mxu1 }
 0x433   :  { %v2853_v20 = vpop.f32.mrf.mxu0  ;;  %v2783_v41 = vadd.f32 %v2782_v13, %v5277_v39 }
 0x434   :  { %v2784_v45 = vpop.f32.mrf.mxu1  ;;  %3079 = vrot.lane.b32.xlu1 %v5406_v7, %s4598_s23  ;;  %3075 = vrot.lane.b32.xlu0 %v5406_v7, %s4596_s21 }
 0x435   :  { %v2855_v3 = vpop.f32.mrf.mxu0  ;;  %v2785_v15 = vadd.f32 %v2784_v45, %v5283_v9  ;;  %v5437_v9 = vadd.f32 %v2853_v20, %v2781_v10 }
 0x436   :  { %v2786_v25 = vpop.f32.mrf.mxu1  ;;  %v5445_v37 = vadd.f32 %v2855_v3, %v2783_v41 }
 0x437   :  { %v2857_v52 = vpop.f32.mrf.mxu0  ;;  %v2787_v48 = vadd.f32 %v2786_v25, %v5299_v58  ;;  %v2946_v25 = vmul.f32 %v5437_v9, %v5437_v9 }
 0x438   :  { %v2790_v56 = vpop.f32.mrf.mxu1  ;;  %3087 = vrot.lane.b32.xlu1 %v5406_v7, %s4588_s14  ;;  %3083 = vrot.lane.b32.xlu0 %v5406_v7, %s4600_s8  ;;  %v5434_v6 = vadd.f32 %v2857_v52, %v2785_v15 }
 0x439   :  { %v2859_v12 = vpop.f32.mrf.mxu0  ;;  %v2791_v5 = vadd.f32 %v2790_v56, %v5322_v53 }
 0x43a   :  { %v2792_v63 = vpop.f32.mrf.mxu1  ;;  %v5439_v27 = vadd.f32 %v2859_v12, %v2787_v48  ;;  %v2918_v15 = vadd.f32 %v5434_v6, %v5437_v9 }
 0x43b   :  { %v2863_v16 = vpop.f32.mrf.mxu0  ;;  %v2793_v42 = vadd.f32 %v2792_v63, %v5341_v55 }
 0x43c   :  { %v2794_v50 = vpop.f32.mrf.mxu1  ;;  %v5441_v58 = vadd.f32 %v2863_v16, %v2791_v5  ;;  %v2931_v41 = vadd.f32 %v5439_v27, %v5445_v37 }
 0x43d   :  { %v2865_v0 = vpop.f32.mrf.mxu0  ;;  %v2795_v38 = vadd.f32 %v2794_v50, %v5359_v57  ;;  %v2950_v57 = vmul.f32 %v5434_v6, %v5434_v6 }
 0x43e   :  { %v2796_v46 = vpop.f32.mrf.mxu1  ;;  %v5447_v55 = vadd.f32 %v2865_v0, %v2793_v42  ;;  %v2954_v3 = vmul.f32 %v5441_v58, %v5441_v58 }
 0x43f   :  { %v2867_v1 = vpop.f32.mrf.mxu0  ;;  %v2797_v53 = vadd.f32 %v2796_v46, %v5373_v49  ;;  %v2951_v49 = vmul.f32 %v5439_v27, %v5439_v27  ;;  %v3002_v48 = vadd.f32 %v2950_v57, %v2946_v25  ;;  %v2919_v46 = vadd.f32 %v2918_v15, %v5441_v58 }
 0x440   :  { %v2800_v8 = vpop.f32.mrf.mxu1  ;;  %v5451_v13 = vadd.f32 %v2867_v1, %v2795_v38  ;;  %v2955_v16 = vmul.f32 %v5447_v55, %v5447_v55 }
 0x441   :  { %v2801_v28 = vadd.f32 %v2800_v8, %v5378_v47  ;;  %v2869_v39 = vpop.f32.mrf.mxu0  ;;  %v3003_v8 = vadd.f32 %v3002_v48, %v2954_v3 }
 0x442   :  { %v2802_v14 = vpop.f32.mrf.mxu1  ;;  %v5460_v52 = vadd.f32 %v2869_v39, %v2797_v53  ;;  %v2958_v50 = vmul.f32 %v5451_v13, %v5451_v13 }
 0x443   :  { %v2803_v20 = vadd.f32 %v2802_v14, %v5380_v34  ;;  %v2873_v45 = vpop.f32.mrf.mxu0  ;;  %v2947_v34 = vmul.f32 %v5445_v37, %v5445_v37  ;;  %v2932_v14 = vadd.f32 %v2931_v41, %v5447_v55 }
 0x444   :  { %v2804_v47 = vpop.f32.mrf.mxu1  ;;  %v5462_v56 = vadd.f32 %v2873_v45, %v2801_v28  ;;  %v2959_v53 = vmul.f32 %v5460_v52, %v5460_v52 }
 0x445   :  { %v2805_v12 = vadd.f32 %v2804_v47, %v5382_v29  ;;  %v2875_v63 = vpop.f32.mrf.mxu0  ;;  %v3015_v42 = vadd.f32 %v2951_v49, %v2947_v34  ;;  %v3004_v49 = vadd.f32 %v3003_v8, %v2958_v50 }
 0x446   :  { %v2806_v10 = vpop.f32.mrf.mxu1  ;;  %v5473_v5 = vadd.f32 %v2875_v63, %v2803_v20  ;;  %v2962_v28 = vmul.f32 %v5462_v56, %v5462_v56  ;;  %v2920_v20 = vadd.f32 %v2919_v46, %v5451_v13 }
 0x447   :  { %v2807_v0 = vadd.f32 %v2806_v10, %v5391_v54  ;;  %v2877_v29 = vpop.f32.mrf.mxu0  ;;  %v3016_v57 = vadd.f32 %v3015_v42, %v2955_v16 }
 0x448   :  { %v5479_v38 = vadd.f32 %v2877_v29, %v2805_v12  ;;  %v2810_v1 = vpop.f32.mrf.mxu1  ;;  %v2963_v47 = vmul.f32 %v5473_v5, %v5473_v5  ;;  %v2921_v34 = vadd.f32 %v2920_v20, %v5462_v56  ;;  %v3005_v48 = vadd.f32 %v3004_v49, %v2962_v28 }
 0x449   :  { %v2811_v39 = vadd.f32 %v2810_v1, %v5397_v35  ;;  %v2879_v54 = vpop.f32.mrf.mxu0  ;;  %v2933_v35 = vadd.f32 %v2932_v14, %v5460_v52  ;;  %v3017_v10 = vadd.f32 %v3016_v57, %v2959_v53 }
 0x44a   :  { %v5488_v45 = vadd.f32 %v2879_v54, %v2807_v0  ;;  %v2812_v25 = vpop.f32.mrf.mxu1  ;;  %v2966_v3 = vmul.f32 %v5479_v38, %v5479_v38 }
 0x44b   :  { %v2813_v12 = vadd.f32 %v2812_v25, %v5403_v21  ;;  %v2883_v63 = vpop.f32.mrf.mxu0  ;;  %v2934_v41 = vadd.f32 %v2933_v35, %v5473_v5  ;;  %v2922_v21 = vadd.f32 %v2921_v34, %v5479_v38  ;;  %v3018_v8 = vadd.f32 %v3017_v10, %v2963_v47 }
 0x44c   :  { %v5497_v15 = vadd.f32 %v2883_v63, %v2811_v39  ;;  %v2814_v16 = vpop.f32.mrf.mxu1  ;;  %v2967_v50 = vmul.f32 %v5488_v45, %v5488_v45  ;;  %v3006_v39 = vadd.f32 %v3005_v48, %v2966_v3 }
 0x44d   :  { %v2815_v0 = vadd.f32 %v2814_v16, %v5412_v11  ;;  %v2885_v29 = vpop.f32.mrf.mxu0  ;;  %v2935_v54 = vadd.f32 %v2934_v41, %v5488_v45 }
 0x44e   :  { %v2970_v42 = vmul.f32 %v5497_v15, %v5497_v15  ;;  %v5506_v46 = vadd.f32 %v2885_v29, %v2813_v12  ;;  %v2816_v1 = vpop.f32.mrf.mxu1  ;;  %v2923_v11 = vadd.f32 %v2922_v21, %v5497_v15  ;;  %v3019_v20 = vadd.f32 %v3018_v8, %v2967_v50 }
 0x44f   :  { %v2817_v53 = vadd.f32 %v2816_v1, %v5418_v22  ;;  %v2887_v28 = vpop.f32.mrf.mxu0 }
 0x450   :  { %v2971_v14 = vmul.f32 %v5506_v46, %v5506_v46  ;;  %v5513_v57 = vadd.f32 %v2887_v28, %v2815_v0  ;;  %v3007_v25 = vadd.f32 %v3006_v39, %v2970_v42  ;;  %v2936_v12 = vadd.f32 %v2935_v54, %v5506_v46 }
 0x451   :  { %v2889_v49 = vpop.f32.mrf.mxu0 }
 0x452   :  { %v2924_v47 = vadd.f32 %v2923_v11, %v5513_v57  ;;  %v2974_v22 = vmul.f32 %v5513_v57, %v5513_v57  ;;  %v5519_v3 = vadd.f32 %v2889_v49, %v2817_v53  ;;  %v3020_v63 = vadd.f32 %v3019_v20, %v2971_v14 }
 0x454   :  { %v2925_v35 = vrot.slane %v2924_v47, 4  ;;  %v3008_v34 = vadd.f32 %v3007_v25, %v2974_v22  ;;  %v2937_v16 = vadd.f32 %v2936_v12, %v5519_v3  ;;  %v2975_v10 = vmul.f32 %v5519_v3, %v5519_v3 }
 0x456   :  { %v2926_v48 = vadd.f32 %v2925_v35, %v2924_v47  ;;  %v3009_v50 = vrot.slane %v3008_v34, 4  ;;  %v3021_v0 = vadd.f32 %v3020_v63, %v2975_v10  ;;  %v2938_v21 = vrot.slane %v2937_v16, 4 }
 0x458   :  { %v2927_v29 = vrot.slane %v2926_v48, 2  ;;  %v3010_v41 = vadd.f32 %v3009_v50, %v3008_v34  ;;  %v3022_v42 = vrot.slane %v3021_v0, 4  ;;  %v2939_v54 = vadd.f32 %v2938_v21, %v2937_v16 }
 0x45a   :  { %v2928_v1 = vadd.f32 %v2927_v29, %v2926_v48  ;;  %v3011_v8 = vrot.slane %v3010_v41, 2  ;;  %v3023_v39 = vadd.f32 %v3022_v42, %v3021_v0  ;;  %v2940_v49 = vrot.slane %v2939_v54, 2 }
 0x45c   :  { %v2929_v53 = vrot.slane %v2928_v1, 1  ;;  %v3012_v28 = vadd.f32 %v3011_v8, %v3010_v41  ;;  %v3024_v14 = vrot.slane %v3023_v39, 2  ;;  %v2941_v22 = vadd.f32 %v2940_v49, %v2939_v54 }
 0x45e   :  { %v3013_v11 = vrot.slane %v3012_v28, 1  ;;  %v2930_v20 = vadd.f32 %v2929_v53, %v2928_v1  ;;  %v3025_v12 = vadd.f32 %v3024_v14, %v3023_v39  ;;  %v2942_v35 = vrot.slane %v2941_v22, 1 }
 0x460   :  { %v3014_v25 = vadd.f32 %v3013_v11, %v3012_v28  ;;  %v3026_v63 = vrot.slane %v3025_v12, 1  ;;  %v2943_v16 = vadd.f32 %v2942_v35, %v2941_v22 }
 0x462   :  { %v3030_v47 = vsel %vm621_vm0, %v2930_v20, %v3014_v25  ;;  %v3027_v34 = vadd.f32 %v3026_v63, %v3025_v12 }
 0x463   :  { %3097 = vrot.lane.b32.xlu1 %v3030_v47, %s4592_s17  ;;  %3093 = vrot.lane.b32.xlu0 %v3030_v47, %s4593_s18 }
 0x464   :  { %v3031_v10 = vsel %vm621_vm0, %v2943_v16, %v3027_v34 }
 0x467   :  { %3105 = vrot.lane.b32.xlu1 %v3030_v47, %s4596_s21  ;;  %3101 = vrot.lane.b32.xlu0 %v3030_v47, %s4594_s19 }
 0x46b   :  { %3113 = vrot.lane.b32.xlu1 %v3030_v47, %s4600_s8  ;;  %3109 = vrot.lane.b32.xlu0 %v3030_v47, %s4598_s23 }
 0x46f   :  { %3123 = vrot.lane.b32.xlu1 %v3031_v10, %s4593_s18  ;;  %3117 = vrot.lane.b32.xlu0 %v3030_v47, %s4588_s14 }
 0x473   :  { %3131 = vrot.lane.b32.xlu1 %v3031_v10, %s4594_s19  ;;  %3127 = vrot.lane.b32.xlu0 %v3031_v10, %s4592_s17 }
 0x477   :  { %3139 = vrot.lane.b32.xlu1 %v3031_v10, %s4598_s23  ;;  %3135 = vrot.lane.b32.xlu0 %v3031_v10, %s4596_s21 }
 0x47b   :  { %3147 = vrot.lane.b32.xlu1 %v3031_v10, %s4588_s14  ;;  %3143 = vrot.lane.b32.xlu0 %v3031_v10, %s4600_s8 }
 0x492   :  { %v3034_v48 = vpop.permute.xlu0 %3033  ;;  %v3038_v0 = vpop.permute.xlu1 %3037 }
 0x493   :  { %v3036_v50 = vadd.f32 %v3034_v48, %v5385_v23 }
 0x495   :  { %v3040_v29 = vadd.f32 %v3038_v0, %v3036_v50 }
 0x496   :  { %v3042_v41 = vpop.permute.xlu0 %3041  ;;  %v3046_v42 = vpop.permute.xlu1 %3045 }
 0x497   :  { %v3044_v21 = vadd.f32 %v3042_v41, %v3040_v29 }
 0x499   :  { %v3048_v1 = vadd.f32 %v3046_v42, %v3044_v21 }
 0x49a   :  { %v3050_v8 = vpop.permute.xlu0 %3049  ;;  %v3054_v53 = vpop.permute.xlu1 %3053 }
 0x49b   :  { %v3052_v39 = vadd.f32 %v3050_v8, %v3048_v1 }
 0x49d   :  { %v3056_v28 = vadd.f32 %v3054_v53, %v3052_v39 }
 0x49e   :  { %v3058_v54 = vpop.permute.xlu0 %3057  ;;  %v3064_v20 = vpop.permute.xlu1 %3063 }
 0x49f   :  { %v3060_v11 = vadd.f32 %v3058_v54, %v3056_v28 }
 0x4a1   :  { %v3061_v14 = vadd.f32 %v3060_v11, %v5406_v7 }
 0x4a2   :  { %v3068_v49 = vpop.permute.xlu0 %3067  ;;  %v3072_v22 = vpop.permute.xlu1 %3071 }
 0x4a3   :  { %v3066_v25 = vadd.f32 %v3064_v20, %v3061_v14 }
 0x4a5   :  { %v3070_v12 = vadd.f32 %v3068_v49, %v3066_v25 }
 0x4a6   :  { %v3076_v63 = vpop.permute.xlu0 %3075  ;;  %v3080_v34 = vpop.permute.xlu1 %3079 }
 0x4a7   :  { %v3074_v23 = vadd.f32 %v3072_v22, %v3070_v12 }
 0x4a9   :  { %v3078_v35 = vadd.f32 %v3076_v63, %v3074_v23 }
 0x4aa   :  { %v3084_v48 = vpop.permute.xlu0 %3083  ;;  %v3088_v0 = vpop.permute.xlu1 %3087 }
 0x4ab   :  { %v3082_v16 = vadd.f32 %v3080_v34, %v3078_v35 }
 0x4ad   :  { %v3086_v50 = vadd.f32 %v3084_v48, %v3082_v16 }
 0x4af   :  { %v3090_v29 = vadd.f32 %v3088_v0, %v3086_v50 }
 0x4b1   :  { %v3091_v41 = vadd.f32 %v3090_v29, %v3030_v47 }
 0x4d5   :  { %v3098_v21 = vpop.permute.xlu1 %3097  ;;  %v3094_v42 = vpop.permute.xlu0 %3093 }
 0x4d6   :  { %v3096_v1 = vadd.f32 %v3094_v42, %v3091_v41 }
 0x4d8   :  { %v3100_v8 = vadd.f32 %v3098_v21, %v3096_v1 }
 0x4d9   :  { %v3106_v7 = vpop.permute.xlu1 %3105  ;;  %v3102_v39 = vpop.permute.xlu0 %3101 }
 0x4da   :  { %v3104_v53 = vadd.f32 %v3102_v39, %v3100_v8 }
 0x4dc   :  { %v3108_v28 = vadd.f32 %v3106_v7, %v3104_v53 }
 0x4dd   :  { %v3114_v54 = vpop.permute.xlu1 %3113  ;;  %v3110_v11 = vpop.permute.xlu0 %3109 }
 0x4de   :  { %v3112_v14 = vadd.f32 %v3110_v11, %v3108_v28  ;;  %v3157_v11 = vld [vmem:[%s6018_s5] sm:$0x1] }
 0x4e0   :  { %v3116_v20 = vadd.f32 %v3114_v54, %v3112_v14 }
 0x4e1   :  { %v3124_v25 = vpop.permute.xlu1 %3123  ;;  %v3118_v49 = vpop.permute.xlu0 %3117 }
 0x4e2   :  { %v3120_v12 = vadd.f32 %v3118_v49, %v3116_v20 }
 0x4e4   :  { %v3121_v22 = vadd.f32 %v3120_v12, %v3031_v10 }
 0x4e5   :  { %v3132_v23 = vpop.permute.xlu1 %3131  ;;  %v3128_v63 = vpop.permute.xlu0 %3127 }
 0x4e6   :  { %v3126_v35 = vadd.f32 %v3124_v25, %v3121_v22  ;;  %v3178_v25 = vld [vmem:[%s6019_s6] sm:$0x1] }
 0x4e8   :  { %v3130_v47 = vadd.f32 %v3128_v63, %v3126_v35 }
 0x4e9   :  { %v3136_v34 = vpop.permute.xlu0 %3135  ;;  %v3140_v48 = vpop.permute.xlu1 %3139 }
 0x4ea   :  { %v3134_v16 = vadd.f32 %v3132_v23, %v3130_v47 }
 0x4ec   :  { %v3138_v50 = vadd.f32 %v3136_v34, %v3134_v16 }
 0x4ed   :  { %v3144_v29 = vpop.permute.xlu0 %3143  ;;  %v3148_v21 = vpop.permute.xlu1 %3147 }
 0x4ee   :  { %v3142_v0 = vadd.f32 %v3140_v48, %v3138_v50 }
 0x4f0   :  { %v3146_v41 = vadd.f32 %v3144_v29, %v3142_v0 }
 0x4f2   :  { %v3150_v42 = vadd.f32 %v3148_v21, %v3146_v41 }
 0x4f4   :  { %v3151_v1 = vmul.f32 0.00048828125, %v3150_v42 }
 0x4f6   :  { %v3152_v8 = vmul.f32 %v3151_v1, %v3151_v1 }
 0x4f8   :  { %v3154_v7 = vrot.slane %v3152_v8, 7 }
 0x4fa   :  { %v3156_v39 = vsub.f32 %v3151_v1, %v3154_v7 }
 0x4fc   :  { %v3158_v53 = vadd.f32 1e-05, %v3156_v39 }
 0x4fe   :  { %4490 = vrsqrt.f32 %v3158_v53 }
 0x50b   :  { %v4491_v10 = vpop.eup %4490 }
 0x50c   :  { %v3167_v28 = vrot.slane %v4491_v10, %v4826_v60 }
 0x50e   :  { %v3168_v54 = vcombine.high %v3167_v28, %v3167_v28 }
 0x510   :  { %v3175_v14 = vrot.slane %v3168_v54, %v4826_v60 }
 0x512   :  { %v3177_v20 = vmul.f32 %v3175_v14, %v3157_v11 }
 0x514   :  { %v3179_v49 = vmul.f32 %v3177_v20, %v3151_v1  ;;  %v3185_v12 = vrot.slane %v3177_v20, %v4833_v2 }
 0x516   :  { %v3180_v22 = vsub.f32 %v3178_v25, %v3179_v49  ;;  %3189 = vrot.lane.b32.xlu1 %v3185_v12, %s4600_s8  ;;  %3186 = vrot.lane.b32.xlu0 %v3185_v12, %s4588_s14 }
 0x518   :  { %v3218_v23 = vrot.slane %v3180_v22, %v4833_v2 }
 0x51a   :  { %3192 = vrot.lane.b32.xlu0 %v3185_v12, %s4598_s23  ;;  %3219 = vrot.lane.b32.xlu1 %v3218_v23, %s4588_s14 }
 0x51e   :  { %3195 = vrot.lane.b32.xlu0 %v3185_v12, %s4596_s21  ;;  %3222 = vrot.lane.b32.xlu1 %v3218_v23, %s4600_s8 }
 0x522   :  { %3198 = vrot.lane.b32.xlu0 %v3185_v12, %s4594_s19  ;;  %3225 = vrot.lane.b32.xlu1 %v3218_v23, %s4598_s23 }
 0x526   :  { %3201 = vrot.lane.b32.xlu0 %v3185_v12, %s4592_s17  ;;  %3228 = vrot.lane.b32.xlu1 %v3218_v23, %s4596_s21 }
 0x52a   :  { %3204 = vrot.lane.b32.xlu0 %v3185_v12, %s4593_s18  ;;  %3231 = vrot.lane.b32.xlu1 %v3218_v23, %s4594_s19 }
 0x52e   :  { %3234 = vrot.lane.b32.xlu0 %v3218_v23, %s4592_s17  ;;  %3237 = vrot.lane.b32.xlu1 %v3218_v23, %s4593_s18 }
 0x588   :  { %v3190_v60 = vpop.permute.xlu1 %3189  ;;  %v3187_v63 = vpop.permute.xlu0 %3186 }
 0x589   :  { %v3207_v41 = vsel %vm829_vm3, %v3177_v20, %v3187_v63 }
 0x58a   :  { %v3208_v21 = vsel %vm833_vm5, %v3207_v41, %v3190_v60 }
 0x58c   :  { %v3193_v35 = vpop.permute.xlu0 %3192  ;;  %v3220_v47 = vpop.permute.xlu1 %3219 }
 0x58d   :  { %v3209_v1 = vsel %vm837_vm7, %v3208_v21, %v3193_v35  ;;  %v3240_v53 = vsel %vm829_vm3, %v3180_v22, %v3220_v47 }
 0x590   :  { %v3196_v34 = vpop.permute.xlu0 %3195  ;;  %v3223_v16 = vpop.permute.xlu1 %3222 }
 0x591   :  { %v3210_v7 = vsel %vm841_vm9, %v3209_v1, %v3196_v34  ;;  %v3241_v28 = vsel %vm833_vm5, %v3240_v53, %v3223_v16 }
 0x594   :  { %v3199_v48 = vpop.permute.xlu0 %3198  ;;  %v3226_v50 = vpop.permute.xlu1 %3225 }
 0x595   :  { %v3211_v39 = vsel %vm845_vm11, %v3210_v7, %v3199_v48  ;;  %v3242_v11 = vsel %vm837_vm7, %v3241_v28, %v3226_v50 }
 0x598   :  { %v3202_v0 = vpop.permute.xlu0 %3201  ;;  %v3229_v29 = vpop.permute.xlu1 %3228 }
 0x599   :  { %v3212_v10 = vsel %vm849_vm13, %v3211_v39, %v3202_v0  ;;  %v3243_v20 = vsel %vm841_vm9, %v3242_v11, %v3229_v29 }
 0x59c   :  { %v3205_v42 = vpop.permute.xlu0 %3204  ;;  %v3232_v8 = vpop.permute.xlu1 %3231 }
 0x59d   :  { %v3213_v54 = vsel %vm853_vm15, %v3212_v10, %v3205_v42  ;;  %v3244_v12 = vsel %vm845_vm11, %v3243_v20, %v3232_v8 }
 0x59e   :  { %v5578_v49 = vrot.slane %v3213_v54, %v4833_v2 }
 0x5a0   :  { %v3235_v14 = vpop.permute.xlu0 %3234  ;;  %v3238_v25 = vpop.permute.xlu1 %3237  ;;  %v3251_v60 = vmul.f32 %v5578_v49, %v5281_v36  ;;  %v3252_v63 = vmul.f32 %v5578_v49, %v5289_v32  ;;  %v3253_v35 = vmul.f32 %v5578_v49, %v5437_v9  ;;  %v3254_v47 = vmul.f32 %v5578_v49, %v5445_v37 }
 0x5a1   :  { %v3245_v23 = vsel %vm849_vm13, %v3244_v12, %v3235_v14  ;;  %v3255_v34 = vmul.f32 %v5578_v49, %v5279_v24  ;;  %v3256_v16 = vmul.f32 %v5578_v49, %v5285_v17  ;;  %v3257_v48 = vmul.f32 %v5578_v49, %v5434_v6 }
 0x5a2   :  { %v3246_v22 = vsel %vm853_vm15, %v3245_v23, %v3238_v25  ;;  %v3258_v32 = vmul.f32 %v5578_v49, %v5439_v27  ;;  %v3259_v9 = vmul.f32 %v5578_v49, %v5287_v4  ;;  %v3260_v37 = vmul.f32 %v5578_v49, %v5293_v18 }
 0x5a3   :  { %v5598_v36 = vrot.slane %v3246_v22, %v4833_v2  ;;  %v5608_v24 = vmul.f32 %v5578_v49, %v5441_v58  ;;  %v5612_v17 = vmul.f32 %v5578_v49, %v5447_v55  ;;  %v3263_v6 = vmul.f32 %v5578_v49, %v5295_v19 }
 0x5a4   :  { %v3264_v27 = vmul.f32 %v5578_v49, %v5305_v62  ;;  %v5620_v4 = vmul.f32 %v5578_v49, %v5451_v13  ;;  %v3267_v18 = vmul.f32 %v5578_v49, %v5307_v33  ;;  %v3268_v58 = vmul.f32 %v5578_v49, %v5317_v61 }
 0x5a5   :  { %v3269_v55 = vmul.f32 %v5578_v49, %v5462_v56  ;;  %v3271_v50 = vmul.f32 %v5578_v49, %v5324_v44  ;;  %v5632_v19 = vmul.f32 %v5578_v49, %v5473_v5  ;;  %v3272_v62 = vmul.f32 %v5578_v49, %v5333_v43 }
 0x5a6   :  { %v5637_v13 = vadd.f32 %v5598_v36, %v3251_v60  ;;  %v5640_v33 = vadd.f32 %v5598_v36, %v3255_v34  ;;  %v3273_v61 = vmul.f32 %v5578_v49, %v5479_v38  ;;  %v3275_v56 = vmul.f32 %v5578_v49, %v5345_v40 }
 0x5a7   :  { %v5647_v44 = vadd.f32 %v5598_v36, %v3267_v18  ;;  %v5650_v5 = vadd.f32 %v5598_v36, %v3271_v50  ;;  %v5654_v43 = vmul.f32 %v5578_v49, %v5488_v45  ;;  %v3276_v0 = vmul.f32 %v5578_v49, %v5355_v51 }
 0x5a8   :  { %v3277_v29 = vmul.f32 %v5578_v49, %v5497_v15  ;;  %v5661_v38 = vadd.f32 %v5598_v36, %v3259_v9  ;;  %v3279_v40 = vmul.f32 %v5578_v49, %v5365_v31  ;;  %v3280_v41 = vmul.f32 %v5578_v49, %v5371_v30 }
 0x5a9   :  { %v3281_v21 = vmul.f32 %v5578_v49, %v5513_v57  ;;  %v5670_v45 = vadd.f32 %v5598_v36, %v3275_v56  ;;  %v5673_v51 = vadd.f32 %v5598_v36, %v3252_v63  ;;  %v5676_v15 = vadd.f32 %v5598_v36, %v3263_v6 }
 0x5aa   :  { %v3319_v42 = vmax.f32 %v5637_v13, 0.0  ;;  %v6052_v1 = vmax.f32 %v5640_v33, 0.0  ;;  %v5681_v31 = vadd.f32 %v5598_v36, %v3253_v35  ;;  %v5684_v30 = vadd.f32 %v5598_v36, %v3279_v40 }
 0x5ab   :  { %v6030_v57 = vmax.f32 %v5647_v44, 0.0  ;;  %v6027_v8 = vmax.f32 %v5650_v5, 0.0  ;;  %v5689_v7 = vadd.f32 %v5598_v36, %v3254_v47  ;;  %v5692_v39 = vadd.f32 %v5598_v36, %v3256_v16 }
 0x5ac   :  { %v6033_v53 = vmax.f32 %v5661_v38, 0.0  ;;  %v3351_v10 = vadd.f32 %v6052_v1, %v3319_v42  ;;  %v5700_v28 = vadd.f32 %v5598_v36, %v3268_v58  ;;  %v5703_v54 = vadd.f32 %v5598_v36, %v3272_v62 }
 0x5ad   :  { %v6026_v11 = vmax.f32 %v5670_v45, 0.0  ;;  %v3387_v14 = vadd.f32 %v6027_v8, %v6030_v57  ;;  %v5711_v20 = vadd.f32 %v5598_v36, %v3257_v48  ;;  %v5714_v25 = vadd.f32 %v5598_v36, %v3258_v32 }
 0x5ae   :  { %v6031_v12 = vmax.f32 %v5676_v15, 0.0  ;;  %v3352_v23 = vadd.f32 %v3351_v10, %v6033_v53  ;;  %v5720_v22 = vadd.f32 %v5598_v36, %v3269_v55  ;;  %v5723_v60 = vadd.f32 %v5598_v36, %v3273_v61 }
 0x5af   :  { %v6025_v63 = vmax.f32 %v5684_v30, 0.0  ;;  %v3388_v35 = vadd.f32 %v3387_v14, %v6026_v11  ;;  %v5729_v47 = vadd.f32 %v5598_v36, %v3260_v37  ;;  %v3320_v16 = vmax.f32 %v5673_v51, 0.0 }
 0x5b0   :  { %v3353_v34 = vadd.f32 %v3352_v23, %v6031_v12  ;;  %v6040_v48 = vmax.f32 %v5692_v39, 0.0  ;;  %v5736_v32 = vadd.f32 %v5598_v36, %v3276_v0  ;;  %v6029_v6 = vmax.f32 %v5700_v28, 0.0 }
 0x5b1   :  { %v3389_v9 = vadd.f32 %v3388_v35, %v6025_v63  ;;  %v6028_v18 = vmax.f32 %v5703_v54, 0.0  ;;  %v5743_v37 = vadd.f32 %v5598_v36, %v3264_v27  ;;  %v5746_v58 = vadd.f32 %v5598_v36, %v3280_v41 }
 0x5b2   :  { %v3354_v55 = vrot.slane %v3353_v34, 4  ;;  %v3321_v50 = vmax.f32 %v5681_v31, 0.0  ;;  %v6039_v61 = vmax.f32 %v5711_v20, 0.0  ;;  %v6037_v56 = vmax.f32 %v5720_v22, 0.0 }
 0x5b3   :  { %v3390_v62 = vrot.slane %v3389_v9, 4  ;;  %v6034_v0 = vmax.f32 %v5723_v60, 0.0  ;;  %v5754_v40 = vadd.f32 %v5598_v36, %v5608_v24  ;;  %v6032_v27 = vmax.f32 %v5729_v47, 0.0 }
 0x5b4   :  { %v3355_v10 = vadd.f32 %v3354_v55, %v3353_v34  ;;  %v3360_v41 = vadd.f32 %v6040_v48, %v3320_v16  ;;  %v5762_v14 = vadd.f32 %v5598_v36, %v3277_v29  ;;  %v6036_v35 = vmax.f32 %v5736_v32, 0.0 }
 0x5b5   :  { %v3391_v23 = vadd.f32 %v3390_v62, %v3389_v9  ;;  %v3396_v24 = vadd.f32 %v6028_v18, %v6029_v6  ;;  %v6038_v34 = vmax.f32 %v5743_v37, 0.0  ;;  %v6035_v55 = vmax.f32 %v5746_v58, 0.0 }
 0x5b6   :  { %v3356_v63 = vrot.slane %v3355_v10, 2  ;;  %v3361_v11 = vadd.f32 %v3360_v41, %v6032_v27  ;;  %v3369_v29 = vadd.f32 %v6039_v61, %v3321_v50  ;;  %v3405_v9 = vadd.f32 %v6034_v0, %v6037_v56 }
 0x5b7   :  { %v3392_v8 = vrot.slane %v3391_v23, 2  ;;  %v3397_v62 = vadd.f32 %v3396_v24, %v6036_v35  ;;  %v5785_v18 = vadd.f32 %v5598_v36, %v5620_v4  ;;  %v5788_v41 = vadd.f32 %v5598_v36, %v3281_v21 }
 0x5b8   :  { %v3357_v6 = vadd.f32 %v3356_v63, %v3355_v10  ;;  %v3362_v57 = vadd.f32 %v3361_v11, %v6038_v34  ;;  %v6042_v27 = vmax.f32 %v5754_v40, 0.0  ;;  %v6041_v53 = vmax.f32 %v5762_v14, 0.0 }
 0x5b9   :  { %v3393_v12 = vadd.f32 %v3392_v8, %v3391_v23  ;;  %v3398_v0 = vadd.f32 %v3397_v62, %v6035_v55  ;;  %v5798_v24 = vadd.f32 %v5598_v36, %v5632_v19  ;;  %v5802_v4 = vadd.f32 %v5598_v36, %v5654_v43 }
 0x5ba   :  { %v3358_v21 = vrot.slane %v3357_v6, 1  ;;  %v3363_v63 = vrot.slane %v3362_v57, 4  ;;  %v3370_v8 = vadd.f32 %v3369_v29, %v6042_v27  ;;  %v3406_v11 = vadd.f32 %v3405_v9, %v6041_v53 }
 0x5bb   :  { %v3394_v10 = vrot.slane %v3393_v12, 1  ;;  %v3399_v23 = vrot.slane %v3398_v0, 4  ;;  %v3278_v62 = vmul.f32 %v5578_v49, %v5506_v46  ;;  %v6053_v19 = vmax.f32 %v5689_v7, 0.0 }
 0x5bc   :  { %v3359_v55 = vadd.f32 %v3358_v21, %v3357_v6  ;;  %v3364_v35 = vadd.f32 %v3363_v63, %v3362_v57  ;;  %v6049_v43 = vmax.f32 %v5785_v18, 0.0  ;;  %v6043_v34 = vmax.f32 %v5788_v41, 0.0 }
 0x5bd   :  { %v3395_v56 = vadd.f32 %v3394_v10, %v3393_v12  ;;  %v3400_v61 = vadd.f32 %v3399_v23, %v3398_v0  ;;  %v6051_v48 = vmax.f32 %v5714_v25, 0.0  ;;  %v6045_v29 = vmax.f32 %v5798_v24, 0.0 }
 0x5be   :  { %v6044_v9 = vmax.f32 %v5802_v4, 0.0  ;;  %v3365_v53 = vrot.slane %v3364_v35, 2  ;;  %v3371_v46 = vadd.f32 %v3370_v8, %v6049_v43  ;;  %v3407_v57 = vadd.f32 %v3406_v11, %v6043_v34 }
 0x5bf   :  { %v5817_v27 = vsel %vm621_vm0, %v3359_v55, %v3395_v56  ;;  %v3401_v12 = vrot.slane %v3400_v61, 2  ;;  %v5825_v6 = vadd.f32 %v5598_v36, %v5612_v17  ;;  %v5828_v0 = vadd.f32 %v5598_v36, %v3278_v62 }
 0x5c0   :  { %3432 = vrot.lane.b32.xlu1 %v5817_v27, %s4592_s17  ;;  %3428 = vrot.lane.b32.xlu0 %v5817_v27, %s4593_s18  ;;  %v3366_v56 = vadd.f32 %v3365_v53, %v3364_v35  ;;  %v3266_v21 = vmul.f32 %v5578_v49, %v5460_v52  ;;  %v3282_v63 = vmul.f32 %v5578_v49, %v5519_v3  ;;  %v3372_v8 = vrot.slane %v3371_v46, 4 }
 0x5c1   :  { %v3402_v55 = vadd.f32 %v3401_v12, %v3400_v61  ;;  %v3378_v17 = vadd.f32 %v6051_v48, %v6053_v19  ;;  %v3414_v10 = vadd.f32 %v6044_v9, %v6045_v29  ;;  %v3408_v11 = vrot.slane %v3407_v57, 4 }
 0x5c2   :  { %v3367_v53 = vrot.slane %v3366_v56, 1  ;;  %v5847_v35 = vadd.f32 %v5598_v36, %v3266_v21  ;;  %v6050_v52 = vmax.f32 %v5825_v6, 0.0  ;;  %v6047_v3 = vmax.f32 %v5828_v0, 0.0 }
 0x5c3   :  { %v3403_v61 = vrot.slane %v3402_v55, 1  ;;  %v5856_v49 = vadd.f32 %v5598_v36, %v3282_v63  ;;  %v3373_v12 = vadd.f32 %v3372_v8, %v3371_v46  ;;  %v3409_v21 = vadd.f32 %v3408_v11, %v3407_v57 }
 0x5c4   :  { %3440 = vrot.lane.b32.xlu1 %v5817_v27, %s4596_s21  ;;  %3436 = vrot.lane.b32.xlu0 %v5817_v27, %s4594_s19  ;;  %v3379_v23 = vadd.f32 %v3378_v17, %v6050_v52  ;;  %v3415_v62 = vadd.f32 %v3414_v10, %v6047_v3  ;;  %v3368_v34 = vadd.f32 %v3367_v53, %v3366_v56  ;;  %v6048_v29 = vmax.f32 %v5847_v35, 0.0 }
 0x5c5   :  { %v3404_v9 = vadd.f32 %v3403_v61, %v3402_v55  ;;  %v6046_v36 = vmax.f32 %v5856_v49, 0.0  ;;  %v3374_v57 = vrot.slane %v3373_v12, 2  ;;  %v3410_v56 = vrot.slane %v3409_v21, 2 }
 0x5c6   :  { %v3380_v63 = vadd.f32 %v3379_v23, %v6048_v29  ;;  %v6058_v13 = vmax.f32 %v5714_v25, 0.0  ;;  %v6059_v51 = vmax.f32 %v5661_v38, 0.0  ;;  %v6060_v31 = vmax.f32 %v5729_v47, 0.0 }
 0x5c7   :  { %v3416_v17 = vadd.f32 %v3415_v62, %v6046_v36  ;;  %v5873_v46 = vsel %vm621_vm0, %v3368_v34, %v3404_v9  ;;  %v3375_v8 = vadd.f32 %v3374_v57, %v3373_v12  ;;  %v3411_v11 = vadd.f32 %v3410_v56, %v3409_v21  ;;  %v3548_v57 = vld [vmem:[%s6020_s7 + $0x8] sm:$0xff] }
 0x5c8   :  { %3448 = vrot.lane.b32.xlu1 %v5817_v27, %s4600_s8  ;;  %3444 = vrot.lane.b32.xlu0 %v5817_v27, %s4598_s23  ;;  %v3381_v55 = vrot.slane %v3380_v63, 4  ;;  %v6064_v25 = vmax.f32 %v5743_v37, 0.0  ;;  %v6068_v37 = vmax.f32 %v5700_v28, 0.0  ;;  %v6073_v28 = vmax.f32 %v5723_v60, 0.0 }
 0x5c9   :  { %v3417_v10 = vrot.slane %v3416_v17, 4  ;;  %v3376_v53 = vrot.slane %v3375_v8, 1  ;;  %v3412_v61 = vrot.slane %v3411_v11, 1  ;;  %4091 = vmatpush3.msra.mxu1 %v3548_v57 }
 0x5ca   :  { %v3382_v34 = vadd.f32 %v3381_v55, %v3380_v63  ;;  %4092 = vmatprep.subr.mxu1 %v4603_v26 }
 0x5cb   :  { %v3418_v9 = vadd.f32 %v3417_v10, %v3416_v17  ;;  %v3377_v12 = vadd.f32 %v3376_v53, %v3375_v8  ;;  %v3413_v21 = vadd.f32 %v3412_v61, %v3411_v11 }
 0x5cc   :  { %3458 = vrot.lane.b32.xlu1 %v5873_v46, %s4593_s18  ;;  %3452 = vrot.lane.b32.xlu0 %v5817_v27, %s4588_s14  ;;  %v3383_v23 = vrot.slane %v3382_v34, 2 }
 0x5cd   :  { %v3419_v62 = vrot.slane %v3418_v9, 2  ;;  %v3425_v56 = vsel %vm621_vm0, %v3377_v12, %v3413_v21 }
 0x5ce   :  { %v3384_v63 = vadd.f32 %v3383_v23, %v3382_v34 }
 0x5cf   :  { %v3420_v17 = vadd.f32 %v3419_v62, %v3418_v9  ;;  %v3547_v9 = vld [vmem:[%s6020_s7] sm:$0xff] }
 0x5d0   :  { %3466 = vrot.lane.b32.xlu1 %v5873_v46, %s4594_s19  ;;  %3462 = vrot.lane.b32.xlu0 %v5873_v46, %s4592_s17  ;;  %v3385_v55 = vrot.slane %v3384_v63, 1 }
 0x5d1   :  { %v3421_v10 = vrot.slane %v3420_v17, 1  ;;  %4093 = vmatpush3.msra.mxu1 %v3547_v9 }
 0x5d2   :  { %v3386_v8 = vadd.f32 %v3385_v55, %v3384_v63  ;;  %4097 = vmatprep.subr.mxu1 %v4603_v26 }
 0x5d3   :  { %v3422_v11 = vadd.f32 %v3421_v10, %v3420_v17 }
 0x5d4   :  { %3474 = vrot.lane.b32.xlu1 %v5873_v46, %s4598_s23  ;;  %3470 = vrot.lane.b32.xlu0 %v5873_v46, %s4596_s21 }
 0x5d5   :  { %v3426_v34 = vsel %vm621_vm0, %v3386_v8, %v3422_v11 }
 0x5d8   :  { %3482 = vrot.lane.b32.xlu1 %v5873_v46, %s4588_s14  ;;  %3478 = vrot.lane.b32.xlu0 %v5873_v46, %s4600_s8 }
 0x5dc   :  { %3492 = vrot.lane.b32.xlu1 %v3425_v56, %s4592_s17  ;;  %3488 = vrot.lane.b32.xlu0 %v3425_v56, %s4593_s18 }
 0x5e0   :  { %3500 = vrot.lane.b32.xlu1 %v3425_v56, %s4596_s21  ;;  %3496 = vrot.lane.b32.xlu0 %v3425_v56, %s4594_s19 }
 0x5e4   :  { %3508 = vrot.lane.b32.xlu1 %v3425_v56, %s4600_s8  ;;  %3504 = vrot.lane.b32.xlu0 %v3425_v56, %s4598_s23 }
 0x5e8   :  { %3518 = vrot.lane.b32.xlu1 %v3426_v34, %s4593_s18  ;;  %3512 = vrot.lane.b32.xlu0 %v3425_v56, %s4588_s14 }
 0x5ec   :  { %3526 = vrot.lane.b32.xlu1 %v3426_v34, %s4594_s19  ;;  %3522 = vrot.lane.b32.xlu0 %v3426_v34, %s4592_s17 }
 0x5f0   :  { %3534 = vrot.lane.b32.xlu1 %v3426_v34, %s4598_s23  ;;  %3530 = vrot.lane.b32.xlu0 %v3426_v34, %s4596_s21 }
 0x5f4   :  { %3542 = vrot.lane.b32.xlu1 %v3426_v34, %s4588_s14  ;;  %3538 = vrot.lane.b32.xlu0 %v3426_v34, %s4600_s8 }
 0x632   :  { %v3433_v53 = vpop.permute.xlu1 %3432  ;;  %v3429_v61 = vpop.permute.xlu0 %3428 }
 0x633   :  { %v3431_v23 = vadd.f32 %v3429_v61, %v5817_v27 }
 0x635   :  { %v3435_v62 = vadd.f32 %v3433_v53, %v3431_v23 }
 0x636   :  { %v3441_v12 = vpop.permute.xlu1 %3440  ;;  %v3437_v21 = vpop.permute.xlu0 %3436 }
 0x637   :  { %v3439_v57 = vadd.f32 %v3437_v21, %v3435_v62 }
 0x639   :  { %v3443_v63 = vadd.f32 %v3441_v12, %v3439_v57 }
 0x63a   :  { %v3449_v17 = vpop.permute.xlu1 %3448  ;;  %v3445_v55 = vpop.permute.xlu0 %3444 }
 0x63b   :  { %v3447_v10 = vadd.f32 %v3445_v55, %v3443_v63 }
 0x63d   :  { %v3451_v8 = vadd.f32 %v3449_v17, %v3447_v10 }
 0x63e   :  { %v3459_v11 = vpop.permute.xlu1 %3458  ;;  %v3453_v9 = vpop.permute.xlu0 %3452 }
 0x63f   :  { %v3455_v36 = vadd.f32 %v3453_v9, %v3451_v8 }
 0x641   :  { %v3456_v3 = vadd.f32 %v3455_v36, %v5873_v46 }
 0x642   :  { %v3467_v29 = vpop.permute.xlu1 %3466  ;;  %v3463_v43 = vpop.permute.xlu0 %3462 }
 0x643   :  { %v3461_v52 = vadd.f32 %v3459_v11, %v3456_v3 }
 0x645   :  { %v3465_v48 = vadd.f32 %v3463_v43, %v3461_v52 }
 0x646   :  { %v3475_v1 = vpop.permute.xlu1 %3474  ;;  %v3471_v27 = vpop.permute.xlu0 %3470 }
 0x647   :  { %v3469_v53 = vadd.f32 %v3467_v29, %v3465_v48 }
 0x649   :  { %v3473_v61 = vadd.f32 %v3471_v27, %v3469_v53 }
 0x64a   :  { %v3483_v23 = vpop.permute.xlu1 %3482  ;;  %v3479_v62 = vpop.permute.xlu0 %3478 }
 0x64b   :  { %v3477_v12 = vadd.f32 %v3475_v1, %v3473_v61 }
 0x64d   :  { %v3481_v21 = vadd.f32 %v3479_v62, %v3477_v12 }
 0x64e   :  { %v3493_v57 = vpop.permute.xlu1 %3492  ;;  %v3489_v63 = vpop.permute.xlu0 %3488 }
 0x64f   :  { %v3485_v17 = vadd.f32 %v3483_v23, %v3481_v21 }
 0x651   :  { %v3486_v55 = vadd.f32 %v3485_v17, %v3425_v56 }
 0x652   :  { %v3501_v10 = vpop.permute.xlu1 %3500  ;;  %v3497_v8 = vpop.permute.xlu0 %3496 }
 0x653   :  { %v3491_v9 = vadd.f32 %v3489_v63, %v3486_v55 }
 0x655   :  { %v3495_v36 = vadd.f32 %v3493_v57, %v3491_v9 }
 0x656   :  { %v3509_v46 = vpop.permute.xlu1 %3508  ;;  %v3505_v19 = vpop.permute.xlu0 %3504 }
 0x657   :  { %v3499_v3 = vadd.f32 %v3497_v8, %v3495_v36 }
 0x659   :  { %v3503_v43 = vadd.f32 %v3501_v10, %v3499_v3 }
 0x65a   :  { %v3513_v52 = vpop.permute.xlu0 %3512  ;;  %v3519_v48 = vpop.permute.xlu1 %3518 }
 0x65b   :  { %v3507_v11 = vadd.f32 %v3505_v19, %v3503_v43  ;;  %v3630_v19 = vld [vmem:[%s6022_s9] sm:$0x1]  ;;  %s4606_s9 = smov [#allocation10]  }
 0x65d   :  { %v3511_v29 = vadd.f32 %v3509_v46, %v3507_v11 }
 0x65e   :  { %v3523_v53 = vpop.permute.xlu0 %3522  ;;  %v3527_v61 = vpop.permute.xlu1 %3526 }
 0x65f   :  { %v3515_v27 = vadd.f32 %v3513_v52, %v3511_v29  ;;  %v4082_v52 = vld [vmem:[%s6023_s10] ss:$0 sm:$0xff]  ;;  %s3827_s10 = sshll.u32 %s4606_s9, 4  ;;  %s3828_s10 = int_to_ptr.vmem [resolvable:$true] %s3827_s10 }
 0x660   :  { %p4561_p2 = scmp.lt.s32.totalorder %s3828_s10, %s3828_s10 }
 0x661   :  { %v3516_v1 = vadd.f32 %v3515_v27, %v3426_v34  ;;  %v4080_v34 = vld [vmem:[#allocation3] ss:$0 sm:$0xff] }
 0x662   :  { %v3531_v23 = vpop.permute.xlu0 %3530  ;;  %v3535_v21 = vpop.permute.xlu1 %3534 }
 0x663   :  { %v3521_v62 = vadd.f32 %v3519_v48, %v3516_v1 }
 0x665   :  { %v3525_v12 = vadd.f32 %v3523_v53, %v3521_v62 }
 0x666   :  { %v3539_v57 = vpop.permute.xlu0 %3538  ;;  %v3543_v9 = vpop.permute.xlu1 %3542 }
 0x667   :  { %v3529_v56 = vadd.f32 %v3527_v61, %v3525_v12 }
 0x669   :  { %v3533_v17 = vadd.f32 %v3531_v23, %v3529_v56 }
 0x66b   :  { %v3537_v63 = vadd.f32 %v3535_v21, %v3533_v17 }
 0x66d   :  { %v3541_v55 = vadd.f32 %v3539_v57, %v3537_v63 }
 0x66f   :  { %v3545_v8 = vadd.f32 %v3543_v9, %v3541_v55 }
 0x671   :  { %v3546_v10 = vmul.f32 0.0009765625, %v3545_v8 }
 0x673   :  { %4095 = vmatmul.mubr.msk.f32.vlgmr.msra.gmra.mxu1 %vm829_vm3, %v3546_v10  ;;  %v3788_v10 = vsub.s32 1, %v4823_v59 }
 0x674   :  { %4099 = vmatprep.mubr.msk.f32.mxu1 %vm4605_vm12, %v4603_v26  ;;  %4098 = vmatpush3.msk.msra.mxu1 %vm621_vm0, %v3630_v19 }
 0x733   :  { %v3625_v36 = vpop.f32.mrf.mxu1 }
 0x734   :  { %v3626_v46 = vadd.f32 %v4080_v34, %v3625_v36 }
 0x735   :  { %v4096_v3 = vpop.f32.mrf.mxu1 }
 0x736   :  { %v3629_v43 = vmax.f32 %v3626_v46, 0.0 }
 0x738   :  { %4100 = vmatmul.mubr.msk.f32.vlgmr.msra.gmra.mxu1 %vm3638_vm14, %v3629_v43 }
 0x7f8   :  { %v3711_v11 = vpop.f32.mrf.mxu1 }
 0x7f9   :  { %v3712_v48 = vadd.f32 %v4082_v52, %v3711_v11 }
 0x7fa   :  { %v4101_v26 = vpop.f32.mrf.mxu1 }
 0x7fb   :  { %v3715_v29 = vsub.f32 0.0, %v3712_v48  ;;  %v6054_v48 = vmax.f32 %v5689_v7, 0.0  ;;  %v6055_v26 = vmax.f32 %v5640_v33, 0.0  ;;  %v6061_v7 = vmax.f32 %v5754_v40, 0.0 }
 0x7fc   :  { %v6062_v33 = vmax.f32 %v5825_v6, 0.0 }
 0x7fd   :  { %v3716_v27 = vmul.f32 1.442695, %v3715_v29 }
 0x7ff   :  { %4492 = vpow2.f32 %v3716_v27  ;;  %v6056_v27 = vmax.f32 %v5692_v39, 0.0  ;;  %v6063_v39 = vmax.f32 %v5676_v15, 0.0  ;;  %v6067_v15 = vmax.f32 %v5647_v44, 0.0 }
 0x800   :  { %v6072_v44 = vmax.f32 %v5703_v54, 0.0  ;;  %v6079_v54 = vmax.f32 %v5684_v30, 0.0 }
 0x80c   :  { %v4493_v53 = vpop.eup %4492 }
 0x80d   :  { %v3718_v1 = vadd.f32 1.0, %v4493_v53 }
 0x80f   :  { %4494 = vrcp.f32 %v3718_v1 }
 0x81c   :  { %v4495_v61 = vpop.eup %4494 }
 0x81d   :  { %3725 = vrot.lane.b32.xlu1 %v4495_v61, %s4600_s8  ;;  %3722 = vrot.lane.b32.xlu0 %v4495_v61, %s4588_s14  ;;  %s4556_s14 = scalar_lea.vmem %s3828_s10, 4096 }
 0x81e   :  { %p4557_p1 = scmp.ne.s32.totalorder %s3828_s10, %s4556_s14  ;;  %p4562_p3 = scmp.lt.s32.totalorder %s4556_s14, %s4556_s14 }
 0x820   :  { %p4563_p4 = por %p4562_p3, %p4561_p2 }
 0x821   :  { %3731 = vrot.lane.b32.xlu1 %v4495_v61, %s4596_s21  ;;  %3728 = vrot.lane.b32.xlu0 %v4495_v61, %s4598_s23 }
 0x822   :  { %p4564_p5 = pnand %p4563_p4, %p4557_p1 }
 0x825   :  { %3737 = vrot.lane.b32.xlu1 %v4495_v61, %s4592_s17  ;;  %3734 = vrot.lane.b32.xlu0 %v4495_v61, %s4594_s19 }
 0x829   :  { %3740 = vrot.lane.b32.xlu0 %v4495_v61, %s4593_s18 }
 0x88f   :  { %v3726_v62 = vpop.permute.xlu1 %3725  ;;  %v3723_v12 = vpop.permute.xlu0 %3722 }
 0x890   :  { %v3743_v23 = vsel %vm829_vm3, %v4495_v61, %v3723_v12  ;;  %v6065_v12 = vmax.f32 %v5785_v18, 0.0  ;;  %v6069_v18 = vmax.f32 %v5720_v22, 0.0  ;;  %v6074_v22 = vmax.f32 %v5802_v4, 0.0 }
 0x891   :  { %v3744_v21 = vsel %vm833_vm5, %v3743_v23, %v3726_v62  ;;  %v6066_v23 = vmax.f32 %v5847_v35, 0.0  ;;  %v6070_v35 = vmax.f32 %v5798_v24, 0.0  ;;  %v6075_v24 = vmax.f32 %v5670_v45, 0.0 }
 0x892   :  { %v6080_v4 = vmax.f32 %v5746_v58, 0.0 }
 0x893   :  { %v3732_v56 = vpop.permute.xlu1 %3731  ;;  %v3729_v17 = vpop.permute.xlu0 %3728 }
 0x894   :  { %v3745_v63 = vsel %vm837_vm7, %v3744_v21, %v3729_v17 }
 0x895   :  { %v3746_v57 = vsel %vm841_vm9, %v3745_v63, %v3732_v56  ;;  %v6071_v63 = vmax.f32 %v5650_v5, 0.0  ;;  %v6078_v5 = vmax.f32 %v5828_v0, 0.0 }
 0x897   :  { %v3735_v55 = vpop.permute.xlu0 %3734  ;;  %v3738_v9 = vpop.permute.xlu1 %3737 }
 0x898   :  { %v3747_v8 = vsel %vm845_vm11, %v3746_v57, %v3735_v55 }
 0x899   :  { %v3748_v19 = vsel %vm849_vm13, %v3747_v8, %v3738_v9 }
 0x89b   :  { %v3741_v34 = vpop.permute.xlu0 %3740 }
 0x89c   :  { %v3749_v36 = vsel %vm853_vm15, %v3748_v19, %v3741_v34  ;;  %v6076_v19 = vmax.f32 %v5736_v32, 0.0 }
 0x89d   :  { %v3753_v46 = vrot.slane %v3749_v36, %v4833_v2  ;;  %v3789_v3 = vrot.slane %v3749_v36, %v3788_v10  ;;  %v6057_v2 = vmax.f32 %v5711_v20, 0.0  ;;  %v6077_v36 = vmax.f32 %v5762_v14, 0.0 }
 0x89f   :  { %v3754_v43 = vmul.f32 %v3753_v46, %v3319_v42  ;;  %v3755_v52 = vmul.f32 %v3753_v46, %v3320_v16  ;;  %v3756_v11 = vmul.f32 %v3753_v46, %v3321_v50  ;;  %v3757_v59 = vmul.f32 %v3753_v46, %v6054_v48 }
 0x8a0   :  { %v3758_v29 = vmul.f32 %v3753_v46, %v6055_v26  ;;  %v3759_v53 = vmul.f32 %v3753_v46, %v6056_v27  ;;  %v3760_v1 = vmul.f32 %v3753_v46, %v6057_v2  ;;  %v3761_v42 = vmul.f32 %v3753_v46, %v6058_v13 }
 0x8a1   :  { %v3762_v16 = vmul.f32 %v3753_v46, %v6059_v51  ;;  %v3763_v50 = vmul.f32 %v3753_v46, %v6060_v31  ;;  %v3764_v61 = vmul.f32 %v3753_v46, %v6061_v7  ;;  %v3765_v62 = vmul.f32 %v3753_v46, %v6062_v33  ;;  %3770 = vst [vmem:[#allocation10] sm:$0xff] %v3754_v43 }
 0x8a2   :  { %3771 = vst [vmem:[#allocation10 + $0x8] sm:$0xff] %v3755_v52  ;;  %3772 = vst [vmem:[#allocation10 + $0x10] sm:$0xff] %v3756_v11  ;;  %v3766_v20 = vmul.f32 %v3753_v46, %v6063_v39  ;;  %v3767_v38 = vmul.f32 %v3753_v46, %v6064_v25  ;;  %v3768_v47 = vmul.f32 %v3753_v46, %v6065_v12  ;;  %v6081_v52 = vmax.f32 %v5788_v41, 0.0 }
 0x8a3   :  { %3773 = vst [vmem:[#allocation10 + $0x18] sm:$0xff] %v3757_v59  ;;  %v3769_v40 = vmul.f32 %v3753_v46, %v6066_v23  ;;  %3774 = vst [vmem:[#allocation10 + $0x20] sm:$0xff] %v3758_v29  ;;  %v3790_v6 = vmul.f32 %v3789_v3, %v6067_v15  ;;  %v3791_v56 = vmul.f32 %v3789_v3, %v6068_v37  ;;  %v6082_v11 = vmax.f32 %v5856_v49, 0.0 }
 0x8a4   :  { %3775 = vst [vmem:[#allocation10 + $0x28] sm:$0xff] %v3759_v53  ;;  %3776 = vst [vmem:[#allocation10 + $0x30] sm:$0xff] %v3760_v1  ;;  %v3792_v21 = vmul.f32 %v3789_v3, %v6069_v18  ;;  %v3793_v17 = vmul.f32 %v3789_v3, %v6070_v35  ;;  %v3794_v57 = vmul.f32 %v3789_v3, %v6071_v63 }
 0x8a5   :  { %3777 = vst [vmem:[#allocation10 + $0x38] sm:$0xff] %v3761_v42  ;;  %3778 = vst [vmem:[#allocation10 + $0x40] sm:$0xff] %v3762_v16  ;;  %v3795_v55 = vmul.f32 %v3789_v3, %v6072_v44  ;;  %v3796_v9 = vmul.f32 %v3789_v3, %v6073_v28  ;;  %v3797_v8 = vmul.f32 %v3789_v3, %v6074_v22 }
 0x8a6   :  { %3779 = vst [vmem:[#allocation10 + $0x48] sm:$0xff] %v3763_v50  ;;  %3780 = vst [vmem:[#allocation10 + $0x50] sm:$0xff] %v3764_v61  ;;  %v3798_v10 = vmul.f32 %v3789_v3, %v6075_v24  ;;  %v3799_v34 = vmul.f32 %v3789_v3, %v6076_v19  ;;  %v3800_v46 = vmul.f32 %v3789_v3, %v6077_v36 }
 0x8a7   :  { %3781 = vst [vmem:[#allocation10 + $0x58] sm:$0xff] %v3765_v62  ;;  %3782 = vst [vmem:[#allocation10 + $0x60] sm:$0xff] %v3766_v20  ;;  %v3801_v43 = vmul.f32 %v3789_v3, %v6078_v5  ;;  %v3802_v60 = vmul.f32 %v3789_v3, %v6079_v54  ;;  %v3803_v45 = vmul.f32 %v3789_v3, %v6080_v4 }
 0x8a8   :  { %3783 = vst [vmem:[#allocation10 + $0x68] sm:$0xff] %v3767_v38  ;;  %3784 = vst [vmem:[#allocation10 + $0x70] sm:$0xff] %v3768_v47  ;;  %v3804_v32 = vmul.f32 %v3789_v3, %v6081_v52  ;;  %v3805_v14 = vmul.f32 %v3789_v3, %v6082_v11 }
 0x8a9   :  { %3785 = vst [vmem:[#allocation10 + $0x78] sm:$0xff] %v3769_v40  ;;  %3806 = vst [vmem:[#allocation10 + $0x80] sm:$0xff] %v3790_v6 }
 0x8aa   :  { %3807 = vst [vmem:[#allocation10 + $0x88] sm:$0xff] %v3791_v56  ;;  %3808 = vst [vmem:[#allocation10 + $0x90] sm:$0xff] %v3792_v21 }
 0x8ab   :  { %3809 = vst [vmem:[#allocation10 + $0x98] sm:$0xff] %v3793_v17  ;;  %3810 = vst [vmem:[#allocation10 + $0xa0] sm:$0xff] %v3794_v57 }
 0x8ac   :  { %3811 = vst [vmem:[#allocation10 + $0xa8] sm:$0xff] %v3795_v55  ;;  %3812 = vst [vmem:[#allocation10 + $0xb0] sm:$0xff] %v3796_v9 }
 0x8ad   :  { %3813 = vst [vmem:[#allocation10 + $0xb8] sm:$0xff] %v3797_v8  ;;  %3814 = vst [vmem:[#allocation10 + $0xc0] sm:$0xff] %v3798_v10 }
 0x8ae   :  { %3815 = vst [vmem:[#allocation10 + $0xc8] sm:$0xff] %v3799_v34  ;;  %3816 = vst [vmem:[#allocation10 + $0xd0] sm:$0xff] %v3800_v46 }
 0x8af   :  { %3817 = vst [vmem:[#allocation10 + $0xd8] sm:$0xff] %v3801_v43  ;;  %3818 = vst [vmem:[#allocation10 + $0xe0] sm:$0xff] %v3802_v60 }
 0x8b0   :  { %3819 = vst [vmem:[#allocation10 + $0xe8] sm:$0xff] %v3803_v45  ;;  %3820 = vst [vmem:[#allocation10 + $0xf0] sm:$0xff] %v3804_v32 }
 0x8b1   :  { %3821 = vst [vmem:[#allocation10 + $0xf8] sm:$0xff] %v3805_v14 }
 0x8b2   :  { %4567 = shalt.err (!%p4564_p5)
}
 0x8b3   :  { %s4607_s17 = smov 512  }
 0x8b4   :  { %3833 = dma.vmem_to_hbm [thread:$0]  %s3828_s10, 4096, %s6024_s11, [#allocation6], %s4607_s17, %s4607_s17, %s4600_s8  }
 0x8b5   :  { %4580 = dma.done.wait [#allocation6], 4096  }
 0x8b6   :  { %4581 = vsyncadd [#allocation6], 4294963200 }
 0x8b7   :  { %3837 = vsyncpa [#allocation5], 1 }
 0x8b8   :  { %3838 = vsyncpa [#allocation8], 1 }
 0x8b9   :  { %3839 = vsyncpa [#allocation6], 1 }

</bundles_post_ra>
